<compile_context>
chip_gen: v7x
topology: tpu7x:2x2x1
jax: 0.10.0
libtpu: 0.0.40
codegen_flags: <defaults>
</compile_context>

<pallas_src>
import functools

import numpy as np
import jax
import jax.numpy as jnp
from jax.experimental import pallas as pl
from jax.experimental.pallas import tpu as pltpu


def dual_lstm_kernel(x_ref, w_ref, s_ref, note_ref, dur_ref, pre0_ref, *, B, T):
    """x_ref:  (T*B, IN)  f32, time-major.
       w_ref:  (4H, 4H)   bf16 slab = [whh0 ; wih1 ; whh1 ; whead_padded].
       s_ref:  (8, 4H)    f32 slab = [b0 ; b1 ; bhead_padded ; wih0 rows ; 0s].
       note_ref: (B, NV) f32, dur_ref: (B, DV) f32.
       pre0_ref: (T*B, 4H) f32 scratch (layer-0 input projection + b0)."""
    H = w_ref.shape[0] // 4
    IN = x_ref.shape[1]
    NV = note_ref.shape[1]
    DV = dur_ref.shape[1]
    f32 = jnp.float32
    bf16 = jnp.bfloat16

    # ---- Unpack the packed f32 scalar slab (one small VMEM load) ----------
    s = s_ref[...]                       # (8, 4H) f32
    b0 = s[0:1, :]                       # (1, 4H)
    b1 = s[1:2, :]
    bhead = s[2:3, :]

    # ---- Layer-0 input projection, hoisted out of the recurrence ----------
    # K = IN (=2) is far too shallow for the MXU; do it as IN VPU FMAs
    # (column-of-x broadcast against row-of-wih0), fold b0 in, stage in VMEM.
    x = x_ref[...]                       # (T*B, IN) f32
    acc = jnp.broadcast_to(b0, (T * B, 4 * H))
    for d in range(IN):
        acc = acc + x[:, d:d + 1] * s[3 + d:4 + d, :]
    pre0_ref[...] = acc

    # Broadcast the layer-1 bias once (JAX does not CSE broadcast_in_dim).
    b1_b = jnp.broadcast_to(b1, (B, 4 * H))

    def gate_apply(gates, c):
        # Gate columns are pre-permuted to [i, f, o, g]: one contiguous
        # sigmoid slab + one tanh slab.  sigmoid(x) = 0.5*tanh(0.5*x)+0.5
        # -> a single EUP pass for the 3H slab.
        sg = 0.5 * jnp.tanh(0.5 * gates[:, :3 * H]) + 0.5
        g = jnp.tanh(gates[:, 3 * H:])
        i = sg[:, 0:H]
        f = sg[:, H:2 * H]
        o = sg[:, 2 * H:3 * H]
        c_new = f * c + i * g
        h_new = o * jnp.tanh(c_new)
        return h_new, c_new

    h0 = jnp.zeros((B, H), f32)
    c0 = jnp.zeros((B, H), f32)
    h1 = jnp.zeros((B, H), f32)
    c1 = jnp.zeros((B, H), f32)

    # Short static trip count (T=8): fully unrolled so the LLO scheduler can
    # overlap layer-0(t+1) with layer-1(t).  Loop-carried state is only h/c
    # (f32 vregs); weights are streamed from the VMEM slab at the matmul site.
    for t in range(T):
        # Layer 0: precomputed input contribution + recurrent contribution.
        gates0 = (pre0_ref[pl.ds(t * B, B), :]
                  + jnp.dot(h0.astype(bf16), w_ref[0:H, :],
                            preferred_element_type=f32))
        h0, c0 = gate_apply(gates0, c0)

        # Layer 1: two K=H dots accumulated in f32 (no lane concat / repack).
        gates1 = (jnp.dot(h0.astype(bf16), w_ref[H:2 * H, :],
                          preferred_element_type=f32)
                  + jnp.dot(h1.astype(bf16), w_ref[2 * H:3 * H, :],
                            preferred_element_type=f32)
                  + b1_b)
        h1, c1 = gate_apply(gates1, c1)

    # Dropout(0.3) on out[:, -1, :] -> identity (eval mode).
    # Fused heads: one (B, H) @ (H, 4H) matmul; cols [0:NV) = note logits,
    # [NV:NV+DV) = dur logits, remainder is zero padding.
    logits = (jnp.dot(h1.astype(bf16), w_ref[3 * H:4 * H, :],
                      preferred_element_type=f32)
              + jnp.broadcast_to(bhead, (B, 4 * H)))
    note_ref[...] = logits[:, :NV]
    dur_ref[...] = logits[:, NV:NV + DV]


def dual_lstm_forward(x, params):
    B, T, IN = x.shape
    w_slab = params["w_slab"]
    s_slab = params["s_slab"]
    H = w_slab.shape[0] // 4
    NV = params["note_vocab"]
    DV = params["dur_vocab"]

    # Pad batch to a full sublane (8) — free, same vreg count.
    Bp = ((B + 7) // 8) * 8
    if Bp != B:
        x = jnp.concatenate([x, jnp.zeros((Bp - B, T, IN), x.dtype)], axis=0)

    # Time-major flatten: per-step layer-0 activations are contiguous rows.
    x_tm = jnp.transpose(x, (1, 0, 2)).reshape(T * Bp, IN).astype(jnp.float32)

    vmem = pl.BlockSpec(memory_space=pltpu.MemorySpace.VMEM)
    kernel = functools.partial(dual_lstm_kernel, B=Bp, T=T)

    note, dur = pl.pallas_call(
        kernel,
        out_shape=(jax.ShapeDtypeStruct((Bp, NV), jnp.float32),
                   jax.ShapeDtypeStruct((Bp, DV), jnp.float32)),
        in_specs=[vmem, vmem, vmem],
        out_specs=(vmem, vmem),
        scratch_shapes=[pltpu.VMEM((T * Bp, 4 * H), jnp.float32)],
    )(x_tm, w_slab, s_slab)

    return note[:B], dur[:B]


def make_params(key, input_size, hidden_size, note_vocab, dur_vocab):
    """PyTorch-style init, then transform into the kernel layout:
       - gate rows permuted [i,f,g,o] -> [i,f,o,g]
       - recurrent/head matrices transposed to (in, out), cast to bf16, and
         row-stacked into one (4H, 4H) slab [whh0; wih1; whh1; whead_pad]
       - biases (with b_ih+b_hh folded) and the tiny f32 layer-0 input weight
         packed into one (8, 4H) f32 scalar slab
       Returns (kernel_params, raw_pytorch_params)."""
    H = hidden_size
    assert note_vocab + dur_vocab <= 4 * H, "head slab assumes NV+DV <= 4H"
    assert input_size <= 5, "scalar slab holds at most 5 wih0 rows"
    k = 1.0 / np.sqrt(H)
    keys = jax.random.split(key, 12)

    def u(k_, shape):
        return jax.random.uniform(k_, shape, jnp.float32, minval=-k, maxval=k)

    raw = {
        "w_ih0": u(keys[0], (4 * H, input_size)),
        "w_hh0": u(keys[1], (4 * H, H)),
        "b_ih0": u(keys[2], (4 * H,)),
        "b_hh0": u(keys[3], (4 * H,)),
        "w_ih1": u(keys[4], (4 * H, H)),
        "w_hh1": u(keys[5], (4 * H, H)),
        "b_ih1": u(keys[6], (4 * H,)),
        "b_hh1": u(keys[7], (4 * H,)),
        "w_note": jax.random.uniform(keys[8], (note_vocab, H), jnp.float32, -k, k),
        "b_note": jax.random.uniform(keys[9], (note_vocab,), jnp.float32, -k, k),
        "w_dur": jax.random.uniform(keys[10], (dur_vocab, H), jnp.float32, -k, k),
        "b_dur": jax.random.uniform(keys[11], (dur_vocab,), jnp.float32, -k, k),
    }

    # PyTorch gate order [i, f, g, o] -> kernel order [i, f, o, g].
    perm = np.concatenate([np.arange(0, H), np.arange(H, 2 * H),
                           np.arange(3 * H, 4 * H), np.arange(2 * H, 3 * H)])

    pad_cols = 4 * H - (note_vocab + dur_vocab)
    whh0 = raw["w_hh0"][perm].T                                   # (H, 4H)
    wih1 = raw["w_ih1"][perm].T                                   # (H, 4H)
    whh1 = raw["w_hh1"][perm].T                                   # (H, 4H)
    whead = jnp.concatenate([raw["w_note"].T, raw["w_dur"].T], axis=1)
    whead = jnp.pad(whead, ((0, 0), (0, pad_cols)))               # (H, 4H)
    w_slab = jnp.concatenate([whh0, wih1, whh1, whead],
                             axis=0).astype(jnp.bfloat16)         # (4H, 4H)

    b0 = (raw["b_ih0"] + raw["b_hh0"])[perm]                      # (4H,)
    b1 = (raw["b_ih1"] + raw["b_hh1"])[perm]                      # (4H,)
    bhead = jnp.pad(jnp.concatenate([raw["b_note"], raw["b_dur"]]),
                    (0, pad_cols))                                # (4H,)
    wih0 = raw["w_ih0"][perm].T                                   # (IN, 4H) f32

    s_slab = jnp.zeros((8, 4 * H), jnp.float32)
    s_slab = s_slab.at[0].set(b0).at[1].set(b1).at[2].set(bhead)
    s_slab = s_slab.at[3:3 + input_size].set(wih0)

    kernel_params = {
        "w_slab": w_slab, "s_slab": s_slab,
        "note_vocab": note_vocab, "dur_vocab": dur_vocab,
    }
    return kernel_params, raw


def dual_lstm_ref(x, raw):
    """Pure-JAX reference in original PyTorch layout / gate order.
    Recurrent / layer-1 / head matmul operands are rounded to bf16 to mirror
    the kernel's MXU operand precision (accumulation stays f32); the layer-0
    input projection stays f32, exactly as in the kernel."""
    def q(a):
        return a.astype(jnp.bfloat16).astype(jnp.float32)

    B, T, _ = x.shape
    H = raw["w_hh0"].shape[1]

    def gates_to_hc(g, c):
        i = jax.nn.sigmoid(g[:, 0 * H:1 * H])
        f = jax.nn.sigmoid(g[:, 1 * H:2 * H])
        gg = jnp.tanh(g[:, 2 * H:3 * H])
        o = jax.nn.sigmoid(g[:, 3 * H:4 * H])
        c = f * c + i * gg
        h = o * jnp.tanh(c)
        return h, c

    h0 = c0 = h1 = c1 = jnp.zeros((B, H), jnp.float32)
    for t in range(T):
        g0 = (x[:, t, :] @ raw["w_ih0"].T
              + q(h0) @ q(raw["w_hh0"]).T
              + raw["b_ih0"] + raw["b_hh0"])
        h0, c0 = gates_to_hc(g0, c0)
        g1 = (q(h0) @ q(raw["w_ih1"]).T
              + q(h1) @ q(raw["w_hh1"]).T
              + raw["b_ih1"] + raw["b_hh1"])
        h1, c1 = gates_to_hc(g1, c1)

    note = q(h1) @ q(raw["w_note"]).T + raw["b_note"]
    dur = q(h1) @ q(raw["w_dur"]).T + raw["b_dur"]
    return note, dur


if __name__ == "__main__":
    B, T = 2, 8
    INPUT_SIZE, HIDDEN = 2, 128
    NOTE_VOCAB, DUR_VOCAB = 128, 256

    key = jax.random.PRNGKey(0)
    k_x, k_p = jax.random.split(key)
    x = jax.random.normal(k_x, (B, T, INPUT_SIZE), jnp.float32)
    params, raw = make_params(k_p, INPUT_SIZE, HIDDEN, NOTE_VOCAB, DUR_VOCAB)

    note_out, dur_out = jax.block_until_ready(dual_lstm_forward(x, params))

    note_ref, dur_ref = dual_lstm_ref(x, raw)
    assert note_out.shape == (B, NOTE_VOCAB) and dur_out.shape == (B, DUR_VOCAB)
    np.testing.assert_allclose(np.asarray(note_out), np.asarray(note_ref),
                               rtol=2e-3, atol=2e-3)
    np.testing.assert_allclose(np.asarray(dur_out), np.asarray(dur_ref),
                               rtol=2e-3, atol=2e-3)
    print("KERNEL_OK")
</pallas_src>

<mosaic_0001>
module attributes {stable_mosaic.version = 11 : i64} {
  func.func @dual_lstm_kernel(%arg0: memref<64x2xf32, #tpu.memory_space<vmem>>, %arg1: memref<512x512xbf16, #tpu.memory_space<vmem>>, %arg2: memref<8x512xf32, #tpu.memory_space<vmem>>, %arg3: memref<8x128xf32, #tpu.memory_space<vmem>>, %arg4: memref<8x256xf32, #tpu.memory_space<vmem>>, %arg5: memref<64x512xf32, #tpu.memory_space<vmem>>) attributes {dimension_semantics = [], scalar_prefetch = 0 : i64, scratch_operands = 1 : i64, tpu.core_type = #tpu.core_type<tc>} {
    %c0 = arith.constant 0 : index
    %c0_0 = arith.constant 0 : index
    %0 = vector.load %arg2[%c0, %c0_0] : memref<8x512xf32, #tpu.memory_space<vmem>>, vector<8x512xf32>
    %1 = vector.extract_strided_slice %0 {offsets = [0, 0], sizes = [1, 512], strides = [1, 1]} : vector<8x512xf32> to vector<1x512xf32>
    %2 = vector.extract_strided_slice %0 {offsets = [1, 0], sizes = [1, 512], strides = [1, 1]} : vector<8x512xf32> to vector<1x512xf32>
    %3 = vector.extract_strided_slice %0 {offsets = [2, 0], sizes = [1, 512], strides = [1, 1]} : vector<8x512xf32> to vector<1x512xf32>
    %c0_1 = arith.constant 0 : index
    %c0_2 = arith.constant 0 : index
    %4 = vector.load %arg0[%c0_1, %c0_2] : memref<64x2xf32, #tpu.memory_space<vmem>>, vector<64x2xf32>
    %5 = vector.shape_cast %1 : vector<1x512xf32> to vector<1x512xf32>
    %6 = vector.broadcast %5 : vector<1x512xf32> to vector<64x512xf32>
    %7 = vector.extract_strided_slice %4 {offsets = [0, 0], sizes = [64, 1], strides = [1, 1]} : vector<64x2xf32> to vector<64x1xf32>
    %8 = vector.extract_strided_slice %0 {offsets = [3, 0], sizes = [1, 512], strides = [1, 1]} : vector<8x512xf32> to vector<1x512xf32>
    %9 = vector.broadcast %7 : vector<64x1xf32> to vector<64x512xf32>
    %10 = vector.broadcast %8 : vector<1x512xf32> to vector<64x512xf32>
    %11 = arith.mulf %9, %10 : vector<64x512xf32>
    %12 = arith.addf %6, %11 : vector<64x512xf32>
    %13 = vector.extract_strided_slice %4 {offsets = [0, 1], sizes = [64, 1], strides = [1, 1]} : vector<64x2xf32> to vector<64x1xf32>
    %14 = vector.extract_strided_slice %0 {offsets = [4, 0], sizes = [1, 512], strides = [1, 1]} : vector<8x512xf32> to vector<1x512xf32>
    %15 = vector.broadcast %13 : vector<64x1xf32> to vector<64x512xf32>
    %16 = vector.broadcast %14 : vector<1x512xf32> to vector<64x512xf32>
    %17 = arith.mulf %15, %16 : vector<64x512xf32>
    %18 = arith.addf %12, %17 : vector<64x512xf32>
    %c0_3 = arith.constant 0 : index
    %c0_4 = arith.constant 0 : index
    %19 = vector.load %arg5[%c0_3, %c0_4] : memref<64x512xf32, #tpu.memory_space<vmem>>, vector<64x512xf32>
    tpu.vector_store %arg5[%c0_3, %c0_4], %18 {strides = array<i32>} : memref<64x512xf32, #tpu.memory_space<vmem>>, vector<64x512xf32>,
    %20 = vector.shape_cast %2 : vector<1x512xf32> to vector<1x512xf32>
    %21 = vector.broadcast %20 : vector<1x512xf32> to vector<8x512xf32>
    %cst = arith.constant 0.000000e+00 : f32
    %22 = vector.broadcast %cst : f32 to vector<8x128xf32>
    %cst_5 = arith.constant 0.000000e+00 : f32
    %23 = vector.broadcast %cst_5 : f32 to vector<8x128xf32>
    %cst_6 = arith.constant 0.000000e+00 : f32
    %24 = vector.broadcast %cst_6 : f32 to vector<8x128xf32>
    %cst_7 = arith.constant 0.000000e+00 : f32
    %25 = vector.broadcast %cst_7 : f32 to vector<8x128xf32>
    %c0_8 = arith.constant 0 : index
    %c0_9 = arith.constant 0 : index
    %26 = vector.load %arg5[%c0_8, %c0_9] : memref<64x512xf32, #tpu.memory_space<vmem>>, vector<8x512xf32>
    %27 = arith.truncf %22 : vector<8x128xf32> to vector<8x128xbf16>
    %c0_10 = arith.constant 0 : index
    %c0_11 = arith.constant 0 : index
    %28 = vector.load %arg1[%c0_10, %c0_11] : memref<512x512xbf16, #tpu.memory_space<vmem>>, vector<128x512xbf16>
    %cst_12 = arith.constant dense<0.000000e+00> : vector<8x512xf32>
    %29 = tpu.matmul %27, %28, %cst_12 {dimension_numbers = #tpu.dot_dimension_numbers<[1], [0], [0], [1], [0, 0, 1, 1], [], []>} : vector<8x128xbf16>, vector<128x512xbf16>, vector<8x512xf32> -> vector<8x512xf32>
    %30 = arith.addf %26, %29 : vector<8x512xf32>
    %31 = vector.extract_strided_slice %30 {offsets = [0, 0], sizes = [8, 384], strides = [1, 1]} : vector<8x512xf32> to vector<8x384xf32>
    %cst_13 = arith.constant 5.000000e-01 : f32
    %32 = vector.broadcast %cst_13 : f32 to vector<8x384xf32>
    %33 = arith.mulf %32, %31 : vector<8x384xf32>
    %34 = math.tanh %33 : vector<8x384xf32>
    %cst_14 = arith.constant 5.000000e-01 : f32
    %35 = vector.broadcast %cst_14 : f32 to vector<8x384xf32>
    %36 = arith.mulf %35, %34 : vector<8x384xf32>
    %cst_15 = arith.constant 5.000000e-01 : f32
    %37 = vector.broadcast %cst_15 : f32 to vector<8x384xf32>
    %38 = arith.addf %36, %37 : vector<8x384xf32>
    %39 = vector.extract_strided_slice %30 {offsets = [0, 384], sizes = [8, 128], strides = [1, 1]} : vector<8x512xf32> to vector<8x128xf32>
    %40 = math.tanh %39 : vector<8x128xf32>
    %41 = vector.extract_strided_slice %38 {offsets = [0, 0], sizes = [8, 128], strides = [1, 1]} : vector<8x384xf32> to vector<8x128xf32>
    %42 = vector.extract_strided_slice %38 {offsets = [0, 128], sizes = [8, 128], strides = [1, 1]} : vector<8x384xf32> to vector<8x128xf32>
    %43 = vector.extract_strided_slice %38 {offsets = [0, 256], sizes = [8, 128], strides = [1, 1]} : vector<8x384xf32> to vector<8x128xf32>
    %44 = arith.mulf %42, %23 : vector<8x128xf32>
    %45 = arith.mulf %41, %40 : vector<8x128xf32>
    %46 = arith.addf %44, %45 : vector<8x128xf32>
    %47 = math.tanh %46 : vector<8x128xf32>
    %48 = arith.mulf %43, %47 : vector<8x128xf32>
    %49 = arith.truncf %48 : vector<8x128xf32> to vector<8x128xbf16>
    %c128 = arith.constant 128 : index
    %c0_16 = arith.constant 0 : index
    %50 = vector.load %arg1[%c128, %c0_16] : memref<512x512xbf16, #tpu.memory_space<vmem>>, vector<128x512xbf16>
    %cst_17 = arith.constant dense<0.000000e+00> : vector<8x512xf32>
    %51 = tpu.matmul %49, %50, %cst_17 {dimension_numbers = #tpu.dot_dimension_numbers<[1], [0], [0], [1], [0, 0, 1, 1], [], []>} : vector<8x128xbf16>, vector<128x512xbf16>, vector<8x512xf32> -> vector<8x512xf32>
    %52 = arith.truncf %24 : vector<8x128xf32> to vector<8x128xbf16>
    %c256 = arith.constant 256 : index
    %c0_18 = arith.constant 0 : index
    %53 = vector.load %arg1[%c256, %c0_18] : memref<512x512xbf16, #tpu.memory_space<vmem>>, vector<128x512xbf16>
    %cst_19 = arith.constant dense<0.000000e+00> : vector<8x512xf32>
    %54 = tpu.matmul %52, %53, %cst_19 {dimension_numbers = #tpu.dot_dimension_numbers<[1], [0], [0], [1], [0, 0, 1, 1], [], []>} : vector<8x128xbf16>, vector<128x512xbf16>, vector<8x512xf32> -> vector<8x512xf32>
    %55 = arith.addf %51, %54 : vector<8x512xf32>
    %56 = arith.addf %55, %21 : vector<8x512xf32>
    %57 = vector.extract_strided_slice %56 {offsets = [0, 0], sizes = [8, 384], strides = [1, 1]} : vector<8x512xf32> to vector<8x384xf32>
    %cst_20 = arith.constant 5.000000e-01 : f32
    %58 = vector.broadcast %cst_20 : f32 to vector<8x384xf32>
    %59 = arith.mulf %58, %57 : vector<8x384xf32>
    %60 = math.tanh %59 : vector<8x384xf32>
    %cst_21 = arith.constant 5.000000e-01 : f32
    %61 = vector.broadcast %cst_21 : f32 to vector<8x384xf32>
    %62 = arith.mulf %61, %60 : vector<8x384xf32>
    %cst_22 = arith.constant 5.000000e-01 : f32
    %63 = vector.broadcast %cst_22 : f32 to vector<8x384xf32>
    %64 = arith.addf %62, %63 : vector<8x384xf32>
    %65 = vector.extract_strided_slice %56 {offsets = [0, 384], sizes = [8, 128], strides = [1, 1]} : vector<8x512xf32> to vector<8x128xf32>
    %66 = math.tanh %65 : vector<8x128xf32>
    %67 = vector.extract_strided_slice %64 {offsets = [0, 0], sizes = [8, 128], strides = [1, 1]} : vector<8x384xf32> to vector<8x128xf32>
    %68 = vector.extract_strided_slice %64 {offsets = [0, 128], sizes = [8, 128], strides = [1, 1]} : vector<8x384xf32> to vector<8x128xf32>
    %69 = vector.extract_strided_slice %64 {offsets = [0, 256], sizes = [8, 128], strides = [1, 1]} : vector<8x384xf32> to vector<8x128xf32>
    %70 = arith.mulf %68, %25 : vector<8x128xf32>
    %71 = arith.mulf %67, %66 : vector<8x128xf32>
    %72 = arith.addf %70, %71 : vector<8x128xf32>
    %73 = math.tanh %72 : vector<8x128xf32>
    %74 = arith.mulf %69, %73 : vector<8x128xf32>
    %c8 = arith.constant 8 : index
    %c0_23 = arith.constant 0 : index
    %75 = vector.load %arg5[%c8, %c0_23] : memref<64x512xf32, #tpu.memory_space<vmem>>, vector<8x512xf32>
    %76 = arith.truncf %48 : vector<8x128xf32> to vector<8x128xbf16>
    %c0_24 = arith.constant 0 : index
    %c0_25 = arith.constant 0 : index
    %77 = vector.load %arg1[%c0_24, %c0_25] : memref<512x512xbf16, #tpu.memory_space<vmem>>, vector<128x512xbf16>
    %cst_26 = arith.constant dense<0.000000e+00> : vector<8x512xf32>
    %78 = tpu.matmul %76, %77, %cst_26 {dimension_numbers = #tpu.dot_dimension_numbers<[1], [0], [0], [1], [0, 0, 1, 1], [], []>} : vector<8x128xbf16>, vector<128x512xbf16>, vector<8x512xf32> -> vector<8x512xf32>
    %79 = arith.addf %75, %78 : vector<8x512xf32>
    %80 = vector.extract_strided_slice %79 {offsets = [0, 0], sizes = [8, 384], strides = [1, 1]} : vector<8x512xf32> to vector<8x384xf32>
    %cst_27 = arith.constant 5.000000e-01 : f32
    %81 = vector.broadcast %cst_27 : f32 to vector<8x384xf32>
    %82 = arith.mulf %81, %80 : vector<8x384xf32>
    %83 = math.tanh %82 : vector<8x384xf32>
    %cst_28 = arith.constant 5.000000e-01 : f32
    %84 = vector.broadcast %cst_28 : f32 to vector<8x384xf32>
    %85 = arith.mulf %84, %83 : vector<8x384xf32>
    %cst_29 = arith.constant 5.000000e-01 : f32
    %86 = vector.broadcast %cst_29 : f32 to vector<8x384xf32>
    %87 = arith.addf %85, %86 : vector<8x384xf32>
    %88 = vector.extract_strided_slice %79 {offsets = [0, 384], sizes = [8, 128], strides = [1, 1]} : vector<8x512xf32> to vector<8x128xf32>
    %89 = math.tanh %88 : vector<8x128xf32>
    %90 = vector.extract_strided_slice %87 {offsets = [0, 0], sizes = [8, 128], strides = [1, 1]} : vector<8x384xf32> to vector<8x128xf32>
    %91 = vector.extract_strided_slice %87 {offsets = [0, 128], sizes = [8, 128], strides = [1, 1]} : vector<8x384xf32> to vector<8x128xf32>
    %92 = vector.extract_strided_slice %87 {offsets = [0, 256], sizes = [8, 128], strides = [1, 1]} : vector<8x384xf32> to vector<8x128xf32>
    %93 = arith.mulf %91, %46 : vector<8x128xf32>
    %94 = arith.mulf %90, %89 : vector<8x128xf32>
    %95 = arith.addf %93, %94 : vector<8x128xf32>
    %96 = math.tanh %95 : vector<8x128xf32>
    %97 = arith.mulf %92, %96 : vector<8x128xf32>
    %98 = arith.truncf %97 : vector<8x128xf32> to vector<8x128xbf16>
    %c128_30 = arith.constant 128 : index
    %c0_31 = arith.constant 0 : index
    %99 = vector.load %arg1[%c128_30, %c0_31] : memref<512x512xbf16, #tpu.memory_space<vmem>>, vector<128x512xbf16>
    %cst_32 = arith.constant dense<0.000000e+00> : vector<8x512xf32>
    %100 = tpu.matmul %98, %99, %cst_32 {dimension_numbers = #tpu.dot_dimension_numbers<[1], [0], [0], [1], [0, 0, 1, 1], [], []>} : vector<8x128xbf16>, vector<128x512xbf16>, vector<8x512xf32> -> vector<8x512xf32>
    %101 = arith.truncf %74 : vector<8x128xf32> to vector<8x128xbf16>
    %c256_33 = arith.constant 256 : index
    %c0_34 = arith.constant 0 : index
    %102 = vector.load %arg1[%c256_33, %c0_34] : memref<512x512xbf16, #tpu.memory_space<vmem>>, vector<128x512xbf16>
    %cst_35 = arith.constant dense<0.000000e+00> : vector<8x512xf32>
    %103 = tpu.matmul %101, %102, %cst_35 {dimension_numbers = #tpu.dot_dimension_numbers<[1], [0], [0], [1], [0, 0, 1, 1], [], []>} : vector<8x128xbf16>, vector<128x512xbf16>, vector<8x512xf32> -> vector<8x512xf32>
    %104 = arith.addf %100, %103 : vector<8x512xf32>
    %105 = arith.addf %104, %21 : vector<8x512xf32>
    %106 = vector.extract_strided_slice %105 {offsets = [0, 0], sizes = [8, 384], strides = [1, 1]} : vector<8x512xf32> to vector<8x384xf32>
    %cst_36 = arith.constant 5.000000e-01 : f32
    %107 = vector.broadcast %cst_36 : f32 to vector<8x384xf32>
    %108 = arith.mulf %107, %106 : vector<8x384xf32>
    %109 = math.tanh %108 : vector<8x384xf32>
    %cst_37 = arith.constant 5.000000e-01 : f32
    %110 = vector.broadcast %cst_37 : f32 to vector<8x384xf32>
    %111 = arith.mulf %110, %109 : vector<8x384xf32>
    %cst_38 = arith.constant 5.000000e-01 : f32
    %112 = vector.broadcast %cst_38 : f32 to vector<8x384xf32>
    %113 = arith.addf %111, %112 : vector<8x384xf32>
    %114 = vector.extract_strided_slice %105 {offsets = [0, 384], sizes = [8, 128], strides = [1, 1]} : vector<8x512xf32> to vector<8x128xf32>
    %115 = math.tanh %114 : vector<8x128xf32>
    %116 = vector.extract_strided_slice %113 {offsets = [0, 0], sizes = [8, 128], strides = [1, 1]} : vector<8x384xf32> to vector<8x128xf32>
    %117 = vector.extract_strided_slice %113 {offsets = [0, 128], sizes = [8, 128], strides = [1, 1]} : vector<8x384xf32> to vector<8x128xf32>
    %118 = vector.extract_strided_slice %113 {offsets = [0, 256], sizes = [8, 128], strides = [1, 1]} : vector<8x384xf32> to vector<8x128xf32>
    %119 = arith.mulf %117, %72 : vector<8x128xf32>
    %120 = arith.mulf %116, %115 : vector<8x128xf32>
    %121 = arith.addf %119, %120 : vector<8x128xf32>
    %122 = math.tanh %121 : vector<8x128xf32>
    %123 = arith.mulf %118, %122 : vector<8x128xf32>
    %c16 = arith.constant 16 : index
    %c0_39 = arith.constant 0 : index
    %124 = vector.load %arg5[%c16, %c0_39] : memref<64x512xf32, #tpu.memory_space<vmem>>, vector<8x512xf32>
    %125 = arith.truncf %97 : vector<8x128xf32> to vector<8x128xbf16>
    %c0_40 = arith.constant 0 : index
    %c0_41 = arith.constant 0 : index
    %126 = vector.load %arg1[%c0_40, %c0_41] : memref<512x512xbf16, #tpu.memory_space<vmem>>, vector<128x512xbf16>
    %cst_42 = arith.constant dense<0.000000e+00> : vector<8x512xf32>
    %127 = tpu.matmul %125, %126, %cst_42 {dimension_numbers = #tpu.dot_dimension_numbers<[1], [0], [0], [1], [0, 0, 1, 1], [], []>} : vector<8x128xbf16>, vector<128x512xbf16>, vector<8x512xf32> -> vector<8x512xf32>
    %128 = arith.addf %124, %127 : vector<8x512xf32>
    %129 = vector.extract_strided_slice %128 {offsets = [0, 0], sizes = [8, 384], strides = [1, 1]} : vector<8x512xf32> to vector<8x384xf32>
    %cst_43 = arith.constant 5.000000e-01 : f32
    %130 = vector.broadcast %cst_43 : f32 to vector<8x384xf32>
    %131 = arith.mulf %130, %129 : vector<8x384xf32>
    %132 = math.tanh %131 : vector<8x384xf32>
    %cst_44 = arith.constant 5.000000e-01 : f32
    %133 = vector.broadcast %cst_44 : f32 to vector<8x384xf32>
    %134 = arith.mulf %133, %132 : vector<8x384xf32>
    %cst_45 = arith.constant 5.000000e-01 : f32
    %135 = vector.broadcast %cst_45 : f32 to vector<8x384xf32>
    %136 = arith.addf %134, %135 : vector<8x384xf32>
    %137 = vector.extract_strided_slice %128 {offsets = [0, 384], sizes = [8, 128], strides = [1, 1]} : vector<8x512xf32> to vector<8x128xf32>
    %138 = math.tanh %137 : vector<8x128xf32>
    %139 = vector.extract_strided_slice %136 {offsets = [0, 0], sizes = [8, 128], strides = [1, 1]} : vector<8x384xf32> to vector<8x128xf32>
    %140 = vector.extract_strided_slice %136 {offsets = [0, 128], sizes = [8, 128], strides = [1, 1]} : vector<8x384xf32> to vector<8x128xf32>
    %141 = vector.extract_strided_slice %136 {offsets = [0, 256], sizes = [8, 128], strides = [1, 1]} : vector<8x384xf32> to vector<8x128xf32>
    %142 = arith.mulf %140, %95 : vector<8x128xf32>
    %143 = arith.mulf %139, %138 : vector<8x128xf32>
    %144 = arith.addf %142, %143 : vector<8x128xf32>
    %145 = math.tanh %144 : vector<8x128xf32>
    %146 = arith.mulf %141, %145 : vector<8x128xf32>
    %147 = arith.truncf %146 : vector<8x128xf32> to vector<8x128xbf16>
    %c128_46 = arith.constant 128 : index
    %c0_47 = arith.constant 0 : index
    %148 = vector.load %arg1[%c128_46, %c0_47] : memref<512x512xbf16, #tpu.memory_space<vmem>>, vector<128x512xbf16>
    %cst_48 = arith.constant dense<0.000000e+00> : vector<8x512xf32>
    %149 = tpu.matmul %147, %148, %cst_48 {dimension_numbers = #tpu.dot_dimension_numbers<[1], [0], [0], [1], [0, 0, 1, 1], [], []>} : vector<8x128xbf16>, vector<128x512xbf16>, vector<8x512xf32> -> vector<8x512xf32>
    %150 = arith.truncf %123 : vector<8x128xf32> to vector<8x128xbf16>
    %c256_49 = arith.constant 256 : index
    %c0_50 = arith.constant 0 : index
    %151 = vector.load %arg1[%c256_49, %c0_50] : memref<512x512xbf16, #tpu.memory_space<vmem>>, vector<128x512xbf16>
    %cst_51 = arith.constant dense<0.000000e+00> : vector<8x512xf32>
    %152 = tpu.matmul %150, %151, %cst_51 {dimension_numbers = #tpu.dot_dimension_numbers<[1], [0], [0], [1], [0, 0, 1, 1], [], []>} : vector<8x128xbf16>, vector<128x512xbf16>, vector<8x512xf32> -> vector<8x512xf32>
    %153 = arith.addf %149, %152 : vector<8x512xf32>
    %154 = arith.addf %153, %21 : vector<8x512xf32>
    %155 = vector.extract_strided_slice %154 {offsets = [0, 0], sizes = [8, 384], strides = [1, 1]} : vector<8x512xf32> to vector<8x384xf32>
    %cst_52 = arith.constant 5.000000e-01 : f32
    %156 = vector.broadcast %cst_52 : f32 to vector<8x384xf32>
    %157 = arith.mulf %156, %155 : vector<8x384xf32>
    %158 = math.tanh %157 : vector<8x384xf32>
    %cst_53 = arith.constant 5.000000e-01 : f32
    %159 = vector.broadcast %cst_53 : f32 to vector<8x384xf32>
    %160 = arith.mulf %159, %158 : vector<8x384xf32>
    %cst_54 = arith.constant 5.000000e-01 : f32
    %161 = vector.broadcast %cst_54 : f32 to vector<8x384xf32>
    %162 = arith.addf %160, %161 : vector<8x384xf32>
    %163 = vector.extract_strided_slice %154 {offsets = [0, 384], sizes = [8, 128], strides = [1, 1]} : vector<8x512xf32> to vector<8x128xf32>
    %164 = math.tanh %163 : vector<8x128xf32>
    %165 = vector.extract_strided_slice %162 {offsets = [0, 0], sizes = [8, 128], strides = [1, 1]} : vector<8x384xf32> to vector<8x128xf32>
    %166 = vector.extract_strided_slice %162 {offsets = [0, 128], sizes = [8, 128], strides = [1, 1]} : vector<8x384xf32> to vector<8x128xf32>
    %167 = vector.extract_strided_slice %162 {offsets = [0, 256], sizes = [8, 128], strides = [1, 1]} : vector<8x384xf32> to vector<8x128xf32>
    %168 = arith.mulf %166, %121 : vector<8x128xf32>
    %169 = arith.mulf %165, %164 : vector<8x128xf32>
    %170 = arith.addf %168, %169 : vector<8x128xf32>
    %171 = math.tanh %170 : vector<8x128xf32>
    %172 = arith.mulf %167, %171 : vector<8x128xf32>
    %c24 = arith.constant 24 : index
    %c0_55 = arith.constant 0 : index
    %173 = vector.load %arg5[%c24, %c0_55] : memref<64x512xf32, #tpu.memory_space<vmem>>, vector<8x512xf32>
    %174 = arith.truncf %146 : vector<8x128xf32> to vector<8x128xbf16>
    %c0_56 = arith.constant 0 : index
    %c0_57 = arith.constant 0 : index
    %175 = vector.load %arg1[%c0_56, %c0_57] : memref<512x512xbf16, #tpu.memory_space<vmem>>, vector<128x512xbf16>
    %cst_58 = arith.constant dense<0.000000e+00> : vector<8x512xf32>
    %176 = tpu.matmul %174, %175, %cst_58 {dimension_numbers = #tpu.dot_dimension_numbers<[1], [0], [0], [1], [0, 0, 1, 1], [], []>} : vector<8x128xbf16>, vector<128x512xbf16>, vector<8x512xf32> -> vector<8x512xf32>
    %177 = arith.addf %173, %176 : vector<8x512xf32>
    %178 = vector.extract_strided_slice %177 {offsets = [0, 0], sizes = [8, 384], strides = [1, 1]} : vector<8x512xf32> to vector<8x384xf32>
    %cst_59 = arith.constant 5.000000e-01 : f32
    %179 = vector.broadcast %cst_59 : f32 to vector<8x384xf32>
    %180 = arith.mulf %179, %178 : vector<8x384xf32>
    %181 = math.tanh %180 : vector<8x384xf32>
    %cst_60 = arith.constant 5.000000e-01 : f32
    %182 = vector.broadcast %cst_60 : f32 to vector<8x384xf32>
    %183 = arith.mulf %182, %181 : vector<8x384xf32>
    %cst_61 = arith.constant 5.000000e-01 : f32
    %184 = vector.broadcast %cst_61 : f32 to vector<8x384xf32>
    %185 = arith.addf %183, %184 : vector<8x384xf32>
    %186 = vector.extract_strided_slice %177 {offsets = [0, 384], sizes = [8, 128], strides = [1, 1]} : vector<8x512xf32> to vector<8x128xf32>
    %187 = math.tanh %186 : vector<8x128xf32>
    %188 = vector.extract_strided_slice %185 {offsets = [0, 0], sizes = [8, 128], strides = [1, 1]} : vector<8x384xf32> to vector<8x128xf32>
    %189 = vector.extract_strided_slice %185 {offsets = [0, 128], sizes = [8, 128], strides = [1, 1]} : vector<8x384xf32> to vector<8x128xf32>
    %190 = vector.extract_strided_slice %185 {offsets = [0, 256], sizes = [8, 128], strides = [1, 1]} : vector<8x384xf32> to vector<8x128xf32>
    %191 = arith.mulf %189, %144 : vector<8x128xf32>
    %192 = arith.mulf %188, %187 : vector<8x128xf32>
    %193 = arith.addf %191, %192 : vector<8x128xf32>
    %194 = math.tanh %193 : vector<8x128xf32>
    %195 = arith.mulf %190, %194 : vector<8x128xf32>
    %196 = arith.truncf %195 : vector<8x128xf32> to vector<8x128xbf16>
    %c128_62 = arith.constant 128 : index
    %c0_63 = arith.constant 0 : index
    %197 = vector.load %arg1[%c128_62, %c0_63] : memref<512x512xbf16, #tpu.memory_space<vmem>>, vector<128x512xbf16>
    %cst_64 = arith.constant dense<0.000000e+00> : vector<8x512xf32>
    %198 = tpu.matmul %196, %197, %cst_64 {dimension_numbers = #tpu.dot_dimension_numbers<[1], [0], [0], [1], [0, 0, 1, 1], [], []>} : vector<8x128xbf16>, vector<128x512xbf16>, vector<8x512xf32> -> vector<8x512xf32>
    %199 = arith.truncf %172 : vector<8x128xf32> to vector<8x128xbf16>
    %c256_65 = arith.constant 256 : index
    %c0_66 = arith.constant 0 : index
    %200 = vector.load %arg1[%c256_65, %c0_66] : memref<512x512xbf16, #tpu.memory_space<vmem>>, vector<128x512xbf16>
    %cst_67 = arith.constant dense<0.000000e+00> : vector<8x512xf32>
    %201 = tpu.matmul %199, %200, %cst_67 {dimension_numbers = #tpu.dot_dimension_numbers<[1], [0], [0], [1], [0, 0, 1, 1], [], []>} : vector<8x128xbf16>, vector<128x512xbf16>, vector<8x512xf32> -> vector<8x512xf32>
    %202 = arith.addf %198, %201 : vector<8x512xf32>
    %203 = arith.addf %202, %21 : vector<8x512xf32>
    %204 = vector.extract_strided_slice %203 {offsets = [0, 0], sizes = [8, 384], strides = [1, 1]} : vector<8x512xf32> to vector<8x384xf32>
    %cst_68 = arith.constant 5.000000e-01 : f32
    %205 = vector.broadcast %cst_68 : f32 to vector<8x384xf32>
    %206 = arith.mulf %205, %204 : vector<8x384xf32>
    %207 = math.tanh %206 : vector<8x384xf32>
    %cst_69 = arith.constant 5.000000e-01 : f32
    %208 = vector.broadcast %cst_69 : f32 to vector<8x384xf32>
    %209 = arith.mulf %208, %207 : vector<8x384xf32>
    %cst_70 = arith.constant 5.000000e-01 : f32
    %210 = vector.broadcast %cst_70 : f32 to vector<8x384xf32>
    %211 = arith.addf %209, %210 : vector<8x384xf32>
    %212 = vector.extract_strided_slice %203 {offsets = [0, 384], sizes = [8, 128], strides = [1, 1]} : vector<8x512xf32> to vector<8x128xf32>
    %213 = math.tanh %212 : vector<8x128xf32>
    %214 = vector.extract_strided_slice %211 {offsets = [0, 0], sizes = [8, 128], strides = [1, 1]} : vector<8x384xf32> to vector<8x128xf32>
    %215 = vector.extract_strided_slice %211 {offsets = [0, 128], sizes = [8, 128], strides = [1, 1]} : vector<8x384xf32> to vector<8x128xf32>
    %216 = vector.extract_strided_slice %211 {offsets = [0, 256], sizes = [8, 128], strides = [1, 1]} : vector<8x384xf32> to vector<8x128xf32>
    %217 = arith.mulf %215, %170 : vector<8x128xf32>
    %218 = arith.mulf %214, %213 : vector<8x128xf32>
    %219 = arith.addf %217, %218 : vector<8x128xf32>
    %220 = math.tanh %219 : vector<8x128xf32>
    %221 = arith.mulf %216, %220 : vector<8x128xf32>
    %c32 = arith.constant 32 : index
    %c0_71 = arith.constant 0 : index
    %222 = vector.load %arg5[%c32, %c0_71] : memref<64x512xf32, #tpu.memory_space<vmem>>, vector<8x512xf32>
    %223 = arith.truncf %195 : vector<8x128xf32> to vector<8x128xbf16>
    %c0_72 = arith.constant 0 : index
    %c0_73 = arith.constant 0 : index
    %224 = vector.load %arg1[%c0_72, %c0_73] : memref<512x512xbf16, #tpu.memory_space<vmem>>, vector<128x512xbf16>
    %cst_74 = arith.constant dense<0.000000e+00> : vector<8x512xf32>
    %225 = tpu.matmul %223, %224, %cst_74 {dimension_numbers = #tpu.dot_dimension_numbers<[1], [0], [0], [1], [0, 0, 1, 1], [], []>} : vector<8x128xbf16>, vector<128x512xbf16>, vector<8x512xf32> -> vector<8x512xf32>
    %226 = arith.addf %222, %225 : vector<8x512xf32>
    %227 = vector.extract_strided_slice %226 {offsets = [0, 0], sizes = [8, 384], strides = [1, 1]} : vector<8x512xf32> to vector<8x384xf32>
    %cst_75 = arith.constant 5.000000e-01 : f32
    %228 = vector.broadcast %cst_75 : f32 to vector<8x384xf32>
    %229 = arith.mulf %228, %227 : vector<8x384xf32>
    %230 = math.tanh %229 : vector<8x384xf32>
    %cst_76 = arith.constant 5.000000e-01 : f32
    %231 = vector.broadcast %cst_76 : f32 to vector<8x384xf32>
    %232 = arith.mulf %231, %230 : vector<8x384xf32>
    %cst_77 = arith.constant 5.000000e-01 : f32
    %233 = vector.broadcast %cst_77 : f32 to vector<8x384xf32>
    %234 = arith.addf %232, %233 : vector<8x384xf32>
    %235 = vector.extract_strided_slice %226 {offsets = [0, 384], sizes = [8, 128], strides = [1, 1]} : vector<8x512xf32> to vector<8x128xf32>
    %236 = math.tanh %235 : vector<8x128xf32>
    %237 = vector.extract_strided_slice %234 {offsets = [0, 0], sizes = [8, 128], strides = [1, 1]} : vector<8x384xf32> to vector<8x128xf32>
    %238 = vector.extract_strided_slice %234 {offsets = [0, 128], sizes = [8, 128], strides = [1, 1]} : vector<8x384xf32> to vector<8x128xf32>
    %239 = vector.extract_strided_slice %234 {offsets = [0, 256], sizes = [8, 128], strides = [1, 1]} : vector<8x384xf32> to vector<8x128xf32>
    %240 = arith.mulf %238, %193 : vector<8x128xf32>
    %241 = arith.mulf %237, %236 : vector<8x128xf32>
    %242 = arith.addf %240, %241 : vector<8x128xf32>
    %243 = math.tanh %242 : vector<8x128xf32>
    %244 = arith.mulf %239, %243 : vector<8x128xf32>
    %245 = arith.truncf %244 : vector<8x128xf32> to vector<8x128xbf16>
    %c128_78 = arith.constant 128 : index
    %c0_79 = arith.constant 0 : index
    %246 = vector.load %arg1[%c128_78, %c0_79] : memref<512x512xbf16, #tpu.memory_space<vmem>>, vector<128x512xbf16>
    %cst_80 = arith.constant dense<0.000000e+00> : vector<8x512xf32>
    %247 = tpu.matmul %245, %246, %cst_80 {dimension_numbers = #tpu.dot_dimension_numbers<[1], [0], [0], [1], [0, 0, 1, 1], [], []>} : vector<8x128xbf16>, vector<128x512xbf16>, vector<8x512xf32> -> vector<8x512xf32>
    %248 = arith.truncf %221 : vector<8x128xf32> to vector<8x128xbf16>
    %c256_81 = arith.constant 256 : index
    %c0_82 = arith.constant 0 : index
    %249 = vector.load %arg1[%c256_81, %c0_82] : memref<512x512xbf16, #tpu.memory_space<vmem>>, vector<128x512xbf16>
    %cst_83 = arith.constant dense<0.000000e+00> : vector<8x512xf32>
    %250 = tpu.matmul %248, %249, %cst_83 {dimension_numbers = #tpu.dot_dimension_numbers<[1], [0], [0], [1], [0, 0, 1, 1], [], []>} : vector<8x128xbf16>, vector<128x512xbf16>, vector<8x512xf32> -> vector<8x512xf32>
    %251 = arith.addf %247, %250 : vector<8x512xf32>
    %252 = arith.addf %251, %21 : vector<8x512xf32>
    %253 = vector.extract_strided_slice %252 {offsets = [0, 0], sizes = [8, 384], strides = [1, 1]} : vector<8x512xf32> to vector<8x384xf32>
    %cst_84 = arith.constant 5.000000e-01 : f32
    %254 = vector.broadcast %cst_84 : f32 to vector<8x384xf32>
    %255 = arith.mulf %254, %253 : vector<8x384xf32>
    %256 = math.tanh %255 : vector<8x384xf32>
    %cst_85 = arith.constant 5.000000e-01 : f32
    %257 = vector.broadcast %cst_85 : f32 to vector<8x384xf32>
    %258 = arith.mulf %257, %256 : vector<8x384xf32>
    %cst_86 = arith.constant 5.000000e-01 : f32
    %259 = vector.broadcast %cst_86 : f32 to vector<8x384xf32>
    %260 = arith.addf %258, %259 : vector<8x384xf32>
    %261 = vector.extract_strided_slice %252 {offsets = [0, 384], sizes = [8, 128], strides = [1, 1]} : vector<8x512xf32> to vector<8x128xf32>
    %262 = math.tanh %261 : vector<8x128xf32>
    %263 = vector.extract_strided_slice %260 {offsets = [0, 0], sizes = [8, 128], strides = [1, 1]} : vector<8x384xf32> to vector<8x128xf32>
    %264 = vector.extract_strided_slice %260 {offsets = [0, 128], sizes = [8, 128], strides = [1, 1]} : vector<8x384xf32> to vector<8x128xf32>
    %265 = vector.extract_strided_slice %260 {offsets = [0, 256], sizes = [8, 128], strides = [1, 1]} : vector<8x384xf32> to vector<8x128xf32>
    %266 = arith.mulf %264, %219 : vector<8x128xf32>
    %267 = arith.mulf %263, %262 : vector<8x128xf32>
    %268 = arith.addf %266, %267 : vector<8x128xf32>
    %269 = math.tanh %268 : vector<8x128xf32>
    %270 = arith.mulf %265, %269 : vector<8x128xf32>
    %c40 = arith.constant 40 : index
    %c0_87 = arith.constant 0 : index
    %271 = vector.load %arg5[%c40, %c0_87] : memref<64x512xf32, #tpu.memory_space<vmem>>, vector<8x512xf32>
    %272 = arith.truncf %244 : vector<8x128xf32> to vector<8x128xbf16>
    %c0_88 = arith.constant 0 : index
    %c0_89 = arith.constant 0 : index
    %273 = vector.load %arg1[%c0_88, %c0_89] : memref<512x512xbf16, #tpu.memory_space<vmem>>, vector<128x512xbf16>
    %cst_90 = arith.constant dense<0.000000e+00> : vector<8x512xf32>
    %274 = tpu.matmul %272, %273, %cst_90 {dimension_numbers = #tpu.dot_dimension_numbers<[1], [0], [0], [1], [0, 0, 1, 1], [], []>} : vector<8x128xbf16>, vector<128x512xbf16>, vector<8x512xf32> -> vector<8x512xf32>
    %275 = arith.addf %271, %274 : vector<8x512xf32>
    %276 = vector.extract_strided_slice %275 {offsets = [0, 0], sizes = [8, 384], strides = [1, 1]} : vector<8x512xf32> to vector<8x384xf32>
    %cst_91 = arith.constant 5.000000e-01 : f32
    %277 = vector.broadcast %cst_91 : f32 to vector<8x384xf32>
    %278 = arith.mulf %277, %276 : vector<8x384xf32>
    %279 = math.tanh %278 : vector<8x384xf32>
    %cst_92 = arith.constant 5.000000e-01 : f32
    %280 = vector.broadcast %cst_92 : f32 to vector<8x384xf32>
    %281 = arith.mulf %280, %279 : vector<8x384xf32>
    %cst_93 = arith.constant 5.000000e-01 : f32
    %282 = vector.broadcast %cst_93 : f32 to vector<8x384xf32>
    %283 = arith.addf %281, %282 : vector<8x384xf32>
    %284 = vector.extract_strided_slice %275 {offsets = [0, 384], sizes = [8, 128], strides = [1, 1]} : vector<8x512xf32> to vector<8x128xf32>
    %285 = math.tanh %284 : vector<8x128xf32>
    %286 = vector.extract_strided_slice %283 {offsets = [0, 0], sizes = [8, 128], strides = [1, 1]} : vector<8x384xf32> to vector<8x128xf32>
    %287 = vector.extract_strided_slice %283 {offsets = [0, 128], sizes = [8, 128], strides = [1, 1]} : vector<8x384xf32> to vector<8x128xf32>
    %288 = vector.extract_strided_slice %283 {offsets = [0, 256], sizes = [8, 128], strides = [1, 1]} : vector<8x384xf32> to vector<8x128xf32>
    %289 = arith.mulf %287, %242 : vector<8x128xf32>
    %290 = arith.mulf %286, %285 : vector<8x128xf32>
    %291 = arith.addf %289, %290 : vector<8x128xf32>
    %292 = math.tanh %291 : vector<8x128xf32>
    %293 = arith.mulf %288, %292 : vector<8x128xf32>
    %294 = arith.truncf %293 : vector<8x128xf32> to vector<8x128xbf16>
    %c128_94 = arith.constant 128 : index
    %c0_95 = arith.constant 0 : index
    %295 = vector.load %arg1[%c128_94, %c0_95] : memref<512x512xbf16, #tpu.memory_space<vmem>>, vector<128x512xbf16>
    %cst_96 = arith.constant dense<0.000000e+00> : vector<8x512xf32>
    %296 = tpu.matmul %294, %295, %cst_96 {dimension_numbers = #tpu.dot_dimension_numbers<[1], [0], [0], [1], [0, 0, 1, 1], [], []>} : vector<8x128xbf16>, vector<128x512xbf16>, vector<8x512xf32> -> vector<8x512xf32>
    %297 = arith.truncf %270 : vector<8x128xf32> to vector<8x128xbf16>
    %c256_97 = arith.constant 256 : index
    %c0_98 = arith.constant 0 : index
    %298 = vector.load %arg1[%c256_97, %c0_98] : memref<512x512xbf16, #tpu.memory_space<vmem>>, vector<128x512xbf16>
    %cst_99 = arith.constant dense<0.000000e+00> : vector<8x512xf32>
    %299 = tpu.matmul %297, %298, %cst_99 {dimension_numbers = #tpu.dot_dimension_numbers<[1], [0], [0], [1], [0, 0, 1, 1], [], []>} : vector<8x128xbf16>, vector<128x512xbf16>, vector<8x512xf32> -> vector<8x512xf32>
    %300 = arith.addf %296, %299 : vector<8x512xf32>
    %301 = arith.addf %300, %21 : vector<8x512xf32>
    %302 = vector.extract_strided_slice %301 {offsets = [0, 0], sizes = [8, 384], strides = [1, 1]} : vector<8x512xf32> to vector<8x384xf32>
    %cst_100 = arith.constant 5.000000e-01 : f32
    %303 = vector.broadcast %cst_100 : f32 to vector<8x384xf32>
    %304 = arith.mulf %303, %302 : vector<8x384xf32>
    %305 = math.tanh %304 : vector<8x384xf32>
    %cst_101 = arith.constant 5.000000e-01 : f32
    %306 = vector.broadcast %cst_101 : f32 to vector<8x384xf32>
    %307 = arith.mulf %306, %305 : vector<8x384xf32>
    %cst_102 = arith.constant 5.000000e-01 : f32
    %308 = vector.broadcast %cst_102 : f32 to vector<8x384xf32>
    %309 = arith.addf %307, %308 : vector<8x384xf32>
    %310 = vector.extract_strided_slice %301 {offsets = [0, 384], sizes = [8, 128], strides = [1, 1]} : vector<8x512xf32> to vector<8x128xf32>
    %311 = math.tanh %310 : vector<8x128xf32>
    %312 = vector.extract_strided_slice %309 {offsets = [0, 0], sizes = [8, 128], strides = [1, 1]} : vector<8x384xf32> to vector<8x128xf32>
    %313 = vector.extract_strided_slice %309 {offsets = [0, 128], sizes = [8, 128], strides = [1, 1]} : vector<8x384xf32> to vector<8x128xf32>
    %314 = vector.extract_strided_slice %309 {offsets = [0, 256], sizes = [8, 128], strides = [1, 1]} : vector<8x384xf32> to vector<8x128xf32>
    %315 = arith.mulf %313, %268 : vector<8x128xf32>
    %316 = arith.mulf %312, %311 : vector<8x128xf32>
    %317 = arith.addf %315, %316 : vector<8x128xf32>
    %318 = math.tanh %317 : vector<8x128xf32>
    %319 = arith.mulf %314, %318 : vector<8x128xf32>
    %c48 = arith.constant 48 : index
    %c0_103 = arith.constant 0 : index
    %320 = vector.load %arg5[%c48, %c0_103] : memref<64x512xf32, #tpu.memory_space<vmem>>, vector<8x512xf32>
    %321 = arith.truncf %293 : vector<8x128xf32> to vector<8x128xbf16>
    %c0_104 = arith.constant 0 : index
    %c0_105 = arith.constant 0 : index
    %322 = vector.load %arg1[%c0_104, %c0_105] : memref<512x512xbf16, #tpu.memory_space<vmem>>, vector<128x512xbf16>
    %cst_106 = arith.constant dense<0.000000e+00> : vector<8x512xf32>
    %323 = tpu.matmul %321, %322, %cst_106 {dimension_numbers = #tpu.dot_dimension_numbers<[1], [0], [0], [1], [0, 0, 1, 1], [], []>} : vector<8x128xbf16>, vector<128x512xbf16>, vector<8x512xf32> -> vector<8x512xf32>
    %324 = arith.addf %320, %323 : vector<8x512xf32>
    %325 = vector.extract_strided_slice %324 {offsets = [0, 0], sizes = [8, 384], strides = [1, 1]} : vector<8x512xf32> to vector<8x384xf32>
    %cst_107 = arith.constant 5.000000e-01 : f32
    %326 = vector.broadcast %cst_107 : f32 to vector<8x384xf32>
    %327 = arith.mulf %326, %325 : vector<8x384xf32>
    %328 = math.tanh %327 : vector<8x384xf32>
    %cst_108 = arith.constant 5.000000e-01 : f32
    %329 = vector.broadcast %cst_108 : f32 to vector<8x384xf32>
    %330 = arith.mulf %329, %328 : vector<8x384xf32>
    %cst_109 = arith.constant 5.000000e-01 : f32
    %331 = vector.broadcast %cst_109 : f32 to vector<8x384xf32>
    %332 = arith.addf %330, %331 : vector<8x384xf32>
    %333 = vector.extract_strided_slice %324 {offsets = [0, 384], sizes = [8, 128], strides = [1, 1]} : vector<8x512xf32> to vector<8x128xf32>
    %334 = math.tanh %333 : vector<8x128xf32>
    %335 = vector.extract_strided_slice %332 {offsets = [0, 0], sizes = [8, 128], strides = [1, 1]} : vector<8x384xf32> to vector<8x128xf32>
    %336 = vector.extract_strided_slice %332 {offsets = [0, 128], sizes = [8, 128], strides = [1, 1]} : vector<8x384xf32> to vector<8x128xf32>
    %337 = vector.extract_strided_slice %332 {offsets = [0, 256], sizes = [8, 128], strides = [1, 1]} : vector<8x384xf32> to vector<8x128xf32>
    %338 = arith.mulf %336, %291 : vector<8x128xf32>
    %339 = arith.mulf %335, %334 : vector<8x128xf32>
    %340 = arith.addf %338, %339 : vector<8x128xf32>
    %341 = math.tanh %340 : vector<8x128xf32>
    %342 = arith.mulf %337, %341 : vector<8x128xf32>
    %343 = arith.truncf %342 : vector<8x128xf32> to vector<8x128xbf16>
    %c128_110 = arith.constant 128 : index
    %c0_111 = arith.constant 0 : index
    %344 = vector.load %arg1[%c128_110, %c0_111] : memref<512x512xbf16, #tpu.memory_space<vmem>>, vector<128x512xbf16>
    %cst_112 = arith.constant dense<0.000000e+00> : vector<8x512xf32>
    %345 = tpu.matmul %343, %344, %cst_112 {dimension_numbers = #tpu.dot_dimension_numbers<[1], [0], [0], [1], [0, 0, 1, 1], [], []>} : vector<8x128xbf16>, vector<128x512xbf16>, vector<8x512xf32> -> vector<8x512xf32>
    %346 = arith.truncf %319 : vector<8x128xf32> to vector<8x128xbf16>
    %c256_113 = arith.constant 256 : index
    %c0_114 = arith.constant 0 : index
    %347 = vector.load %arg1[%c256_113, %c0_114] : memref<512x512xbf16, #tpu.memory_space<vmem>>, vector<128x512xbf16>
    %cst_115 = arith.constant dense<0.000000e+00> : vector<8x512xf32>
    %348 = tpu.matmul %346, %347, %cst_115 {dimension_numbers = #tpu.dot_dimension_numbers<[1], [0], [0], [1], [0, 0, 1, 1], [], []>} : vector<8x128xbf16>, vector<128x512xbf16>, vector<8x512xf32> -> vector<8x512xf32>
    %349 = arith.addf %345, %348 : vector<8x512xf32>
    %350 = arith.addf %349, %21 : vector<8x512xf32>
    %351 = vector.extract_strided_slice %350 {offsets = [0, 0], sizes = [8, 384], strides = [1, 1]} : vector<8x512xf32> to vector<8x384xf32>
    %cst_116 = arith.constant 5.000000e-01 : f32
    %352 = vector.broadcast %cst_116 : f32 to vector<8x384xf32>
    %353 = arith.mulf %352, %351 : vector<8x384xf32>
    %354 = math.tanh %353 : vector<8x384xf32>
    %cst_117 = arith.constant 5.000000e-01 : f32
    %355 = vector.broadcast %cst_117 : f32 to vector<8x384xf32>
    %356 = arith.mulf %355, %354 : vector<8x384xf32>
    %cst_118 = arith.constant 5.000000e-01 : f32
    %357 = vector.broadcast %cst_118 : f32 to vector<8x384xf32>
    %358 = arith.addf %356, %357 : vector<8x384xf32>
    %359 = vector.extract_strided_slice %350 {offsets = [0, 384], sizes = [8, 128], strides = [1, 1]} : vector<8x512xf32> to vector<8x128xf32>
    %360 = math.tanh %359 : vector<8x128xf32>
    %361 = vector.extract_strided_slice %358 {offsets = [0, 0], sizes = [8, 128], strides = [1, 1]} : vector<8x384xf32> to vector<8x128xf32>
    %362 = vector.extract_strided_slice %358 {offsets = [0, 128], sizes = [8, 128], strides = [1, 1]} : vector<8x384xf32> to vector<8x128xf32>
    %363 = vector.extract_strided_slice %358 {offsets = [0, 256], sizes = [8, 128], strides = [1, 1]} : vector<8x384xf32> to vector<8x128xf32>
    %364 = arith.mulf %362, %317 : vector<8x128xf32>
    %365 = arith.mulf %361, %360 : vector<8x128xf32>
    %366 = arith.addf %364, %365 : vector<8x128xf32>
    %367 = math.tanh %366 : vector<8x128xf32>
    %368 = arith.mulf %363, %367 : vector<8x128xf32>
    %c56 = arith.constant 56 : index
    %c0_119 = arith.constant 0 : index
    %369 = vector.load %arg5[%c56, %c0_119] : memref<64x512xf32, #tpu.memory_space<vmem>>, vector<8x512xf32>
    %370 = arith.truncf %342 : vector<8x128xf32> to vector<8x128xbf16>
    %c0_120 = arith.constant 0 : index
    %c0_121 = arith.constant 0 : index
    %371 = vector.load %arg1[%c0_120, %c0_121] : memref<512x512xbf16, #tpu.memory_space<vmem>>, vector<128x512xbf16>
    %cst_122 = arith.constant dense<0.000000e+00> : vector<8x512xf32>
    %372 = tpu.matmul %370, %371, %cst_122 {dimension_numbers = #tpu.dot_dimension_numbers<[1], [0], [0], [1], [0, 0, 1, 1], [], []>} : vector<8x128xbf16>, vector<128x512xbf16>, vector<8x512xf32> -> vector<8x512xf32>
    %373 = arith.addf %369, %372 : vector<8x512xf32>
    %374 = vector.extract_strided_slice %373 {offsets = [0, 0], sizes = [8, 384], strides = [1, 1]} : vector<8x512xf32> to vector<8x384xf32>
    %cst_123 = arith.constant 5.000000e-01 : f32
    %375 = vector.broadcast %cst_123 : f32 to vector<8x384xf32>
    %376 = arith.mulf %375, %374 : vector<8x384xf32>
    %377 = math.tanh %376 : vector<8x384xf32>
    %cst_124 = arith.constant 5.000000e-01 : f32
    %378 = vector.broadcast %cst_124 : f32 to vector<8x384xf32>
    %379 = arith.mulf %378, %377 : vector<8x384xf32>
    %cst_125 = arith.constant 5.000000e-01 : f32
    %380 = vector.broadcast %cst_125 : f32 to vector<8x384xf32>
    %381 = arith.addf %379, %380 : vector<8x384xf32>
    %382 = vector.extract_strided_slice %373 {offsets = [0, 384], sizes = [8, 128], strides = [1, 1]} : vector<8x512xf32> to vector<8x128xf32>
    %383 = math.tanh %382 : vector<8x128xf32>
    %384 = vector.extract_strided_slice %381 {offsets = [0, 0], sizes = [8, 128], strides = [1, 1]} : vector<8x384xf32> to vector<8x128xf32>
    %385 = vector.extract_strided_slice %381 {offsets = [0, 128], sizes = [8, 128], strides = [1, 1]} : vector<8x384xf32> to vector<8x128xf32>
    %386 = vector.extract_strided_slice %381 {offsets = [0, 256], sizes = [8, 128], strides = [1, 1]} : vector<8x384xf32> to vector<8x128xf32>
    %387 = arith.mulf %385, %340 : vector<8x128xf32>
    %388 = arith.mulf %384, %383 : vector<8x128xf32>
    %389 = arith.addf %387, %388 : vector<8x128xf32>
    %390 = math.tanh %389 : vector<8x128xf32>
    %391 = arith.mulf %386, %390 : vector<8x128xf32>
    %392 = arith.truncf %391 : vector<8x128xf32> to vector<8x128xbf16>
    %c128_126 = arith.constant 128 : index
    %c0_127 = arith.constant 0 : index
    %393 = vector.load %arg1[%c128_126, %c0_127] : memref<512x512xbf16, #tpu.memory_space<vmem>>, vector<128x512xbf16>
    %cst_128 = arith.constant dense<0.000000e+00> : vector<8x512xf32>
    %394 = tpu.matmul %392, %393, %cst_128 {dimension_numbers = #tpu.dot_dimension_numbers<[1], [0], [0], [1], [0, 0, 1, 1], [], []>} : vector<8x128xbf16>, vector<128x512xbf16>, vector<8x512xf32> -> vector<8x512xf32>
    %395 = arith.truncf %368 : vector<8x128xf32> to vector<8x128xbf16>
    %c256_129 = arith.constant 256 : index
    %c0_130 = arith.constant 0 : index
    %396 = vector.load %arg1[%c256_129, %c0_130] : memref<512x512xbf16, #tpu.memory_space<vmem>>, vector<128x512xbf16>
    %cst_131 = arith.constant dense<0.000000e+00> : vector<8x512xf32>
    %397 = tpu.matmul %395, %396, %cst_131 {dimension_numbers = #tpu.dot_dimension_numbers<[1], [0], [0], [1], [0, 0, 1, 1], [], []>} : vector<8x128xbf16>, vector<128x512xbf16>, vector<8x512xf32> -> vector<8x512xf32>
    %398 = arith.addf %394, %397 : vector<8x512xf32>
    %399 = arith.addf %398, %21 : vector<8x512xf32>
    %400 = vector.extract_strided_slice %399 {offsets = [0, 0], sizes = [8, 384], strides = [1, 1]} : vector<8x512xf32> to vector<8x384xf32>
    %cst_132 = arith.constant 5.000000e-01 : f32
    %401 = vector.broadcast %cst_132 : f32 to vector<8x384xf32>
    %402 = arith.mulf %401, %400 : vector<8x384xf32>
    %403 = math.tanh %402 : vector<8x384xf32>
    %cst_133 = arith.constant 5.000000e-01 : f32
    %404 = vector.broadcast %cst_133 : f32 to vector<8x384xf32>
    %405 = arith.mulf %404, %403 : vector<8x384xf32>
    %cst_134 = arith.constant 5.000000e-01 : f32
    %406 = vector.broadcast %cst_134 : f32 to vector<8x384xf32>
    %407 = arith.addf %405, %406 : vector<8x384xf32>
    %408 = vector.extract_strided_slice %399 {offsets = [0, 384], sizes = [8, 128], strides = [1, 1]} : vector<8x512xf32> to vector<8x128xf32>
    %409 = math.tanh %408 : vector<8x128xf32>
    %410 = vector.extract_strided_slice %407 {offsets = [0, 0], sizes = [8, 128], strides = [1, 1]} : vector<8x384xf32> to vector<8x128xf32>
    %411 = vector.extract_strided_slice %407 {offsets = [0, 128], sizes = [8, 128], strides = [1, 1]} : vector<8x384xf32> to vector<8x128xf32>
    %412 = vector.extract_strided_slice %407 {offsets = [0, 256], sizes = [8, 128], strides = [1, 1]} : vector<8x384xf32> to vector<8x128xf32>
    %413 = arith.mulf %411, %366 : vector<8x128xf32>
    %414 = arith.mulf %410, %409 : vector<8x128xf32>
    %415 = arith.addf %413, %414 : vector<8x128xf32>
    %416 = math.tanh %415 : vector<8x128xf32>
    %417 = arith.mulf %412, %416 : vector<8x128xf32>
    %418 = arith.truncf %417 : vector<8x128xf32> to vector<8x128xbf16>
    %c384 = arith.constant 384 : index
    %c0_135 = arith.constant 0 : index
    %419 = vector.load %arg1[%c384, %c0_135] : memref<512x512xbf16, #tpu.memory_space<vmem>>, vector<128x512xbf16>
    %cst_136 = arith.constant dense<0.000000e+00> : vector<8x512xf32>
    %420 = tpu.matmul %418, %419, %cst_136 {dimension_numbers = #tpu.dot_dimension_numbers<[1], [0], [0], [1], [0, 0, 1, 1], [], []>} : vector<8x128xbf16>, vector<128x512xbf16>, vector<8x512xf32> -> vector<8x512xf32>
    %421 = vector.shape_cast %3 : vector<1x512xf32> to vector<1x512xf32>
    %422 = vector.broadcast %421 : vector<1x512xf32> to vector<8x512xf32>
    %423 = arith.addf %420, %422 : vector<8x512xf32>
    %424 = vector.extract_strided_slice %423 {offsets = [0, 0], sizes = [8, 128], strides = [1, 1]} : vector<8x512xf32> to vector<8x128xf32>
    %c0_137 = arith.constant 0 : index
    %c0_138 = arith.constant 0 : index
    %425 = vector.load %arg3[%c0_137, %c0_138] : memref<8x128xf32, #tpu.memory_space<vmem>>, vector<8x128xf32>
    tpu.vector_store %arg3[%c0_137, %c0_138], %424 {strides = array<i32>} : memref<8x128xf32, #tpu.memory_space<vmem>>, vector<8x128xf32>,
    %426 = vector.extract_strided_slice %423 {offsets = [0, 128], sizes = [8, 256], strides = [1, 1]} : vector<8x512xf32> to vector<8x256xf32>
    %c0_139 = arith.constant 0 : index
    %c0_140 = arith.constant 0 : index
    %427 = vector.load %arg4[%c0_139, %c0_140] : memref<8x256xf32, #tpu.memory_space<vmem>>, vector<8x256xf32>
    tpu.vector_store %arg4[%c0_139, %c0_140], %426 {strides = array<i32>} : memref<8x256xf32, #tpu.memory_space<vmem>>, vector<8x256xf32>,
    return
  }
}

</mosaic_0001>

<bundles_post_ra>
// kernel: tpu_custom_call.1
= control target key start
LH: loop header
LB: loop body
LE: loop exit
PB: predicated region body
PF: predicated region fallthrough
CT: control target
= control target key end

     0   :  { %10 = vsyncpa [#allocation4], 0  ;;  %s6141_s0 = inlined_call_operand.vmem [shape: f32[64,2], index: 0, kind: input, shape index: {}]   ;;  %s6142_s1 = inlined_call_operand.hbm [shape: bf16[512,512], index: 1, kind: input, shape index: {}]   ;;  %s6143_s2 = inlined_call_operand.vmem [shape: f32[8,512], index: 2, kind: input, shape index: {}]   ;;  %s6144_s3 = inlined_call_operand.hbm [shape: f32[8,128], index: 3, kind: output, shape index: {0}]   ;;  %s6145_s4 = inlined_call_operand.hbm [shape: f32[8,256], index: 4, kind: output, shape index: {1}]  }
   0x1   :  { %11 = vsyncpa [#allocation5], 0 }
   0x2   :  { %12 = vsyncpa [#allocation8], 0  ;;  %s4361_s15 = smov [#allocation3]   ;;  %s4289_s19 = scalar_lea.hbm %s6142_s1, 16384 }
   0x3   :  { %s20_s16 = sshll.u32 %s4361_s15, 4  ;;  %p4290_p0 = scmp.ne.s32.totalorder %s6142_s1, %s4289_s19  ;;  %s21_s16 = int_to_ptr.vmem [resolvable:$true] %s20_s16 }
   0x4   :  { %p4293_p1 = scmp.lt.u32.totalorder %s4289_s19, %s6142_s1 }
   0x6   :  { %p4295_p2 = pnand %p4293_p1, %p4290_p0 }
   0x8   :  { %4298 = shalt.err (!%p4295_p2)
}
   0x9   :  { %s4299_s24 = scalar_lea.vmem %s21_s16, 16384  ;;  %p4304_p4 = scmp.lt.s32.totalorder %s21_s16, %s21_s16 }
   0xa   :  { %p4300_p3 = scmp.ne.s32.totalorder %s21_s16, %s4299_s24  ;;  %p4305_p5 = scmp.lt.s32.totalorder %s4299_s24, %s4299_s24 }
   0xc   :  { %p4306_p6 = por %p4305_p5, %p4304_p4 }
   0xe   :  { %p4307_p7 = pnand %p4306_p6, %p4300_p3 }
  0x10   :  { %4310 = shalt.err (!%p4307_p7)
}
  0x11   :  { %s4362_s25 = smov 256   ;;  %s4363_s26 = smov 16  }
  0x12   :  { %26 = dma.hbm_to_vmem [thread:$0]  %s6142_s1, 16384, %s21_s16, [#allocation4], %s4362_s25, %s4362_s25, %s4363_s26  }
  0x13   :  { %4355 = dma.done.wait [#allocation4], 16384  }
  0x14   :  { %4356 = vsyncadd [#allocation4], 4294950912  ;;  %v6146_v0 = vmov 0   ;;  %v4409_v1 = vld [vmem:[#allocation3 + $0x4] ss:$16 sps:$4 sm:$0xff]   ;;  %v38_v27 = vld [vmem:[%s6141_s0 + $0x8] sm:$0xff] }
  0x15   :  { %569 = vmatprep.mubr.bf16.mxu0 %v6146_v0  ;;  %610 = vmatprep.mubr.bf16.mxu1 %v6146_v0  ;;  %v4411_v2 = vld [vmem:[#allocation3 + $0xc] ss:$16 sps:$4 sm:$0xff]   ;;  %v4414_v3 = vld [vmem:[#allocation3] ss:$16 sps:$4 sm:$0xff]   ;;  %v4416_v4 = vld [vmem:[#allocation3 + $0x8] ss:$16 sps:$4 sm:$0xff]  }
  0x16   :  { %3739 = vset.pattern.permute.xlu1 %v6146_v0  ;;  %3737 = vset.pattern.permute.xlu0 %v6146_v0  ;;  %v4419_v5 = vld [vmem:[#allocation3 + $0x24] ss:$16 sps:$4 sm:$0xff]   ;;  %v4423_v6 = vld [vmem:[#allocation3 + $0x2c] ss:$16 sps:$4 sm:$0xff]   ;;  %v4425_v7 = vld [vmem:[#allocation3 + $0x20] ss:$16 sps:$4 sm:$0xff]  }
  0x17   :  { %537 = vmatprep.subr.bf16.mxu0 %v4409_v1  ;;  %578 = vmatprep.subr.bf16.mxu1 %v4411_v2  ;;  %v4428_v8 = vld [vmem:[#allocation3 + $0x28] ss:$16 sps:$4 sm:$0xff]   ;;  %v4431_v9 = vld [vmem:[#allocation3 + $0x44] ss:$16 sps:$4 sm:$0xff]   ;;  %v4433_v10 = vld [vmem:[#allocation3 + $0x4c] ss:$16 sps:$4 sm:$0xff]  }
  0x18   :  { %538 = vmatpush1.bf16.msra.mxu0 %v4414_v3  ;;  %579 = vmatpush1.bf16.msra.mxu1 %v4416_v4  ;;  %v4435_v11 = vld [vmem:[#allocation3 + $0x40] ss:$16 sps:$4 sm:$0xff]   ;;  %v4437_v12 = vld [vmem:[#allocation3 + $0x48] ss:$16 sps:$4 sm:$0xff]   ;;  %v4441_v13 = vld [vmem:[#allocation3 + $0x64] ss:$16 sps:$4 sm:$0xff]  }
  0x19   :  { %539 = vmatprep.subr.bf16.mxu0 %v4419_v5  ;;  %580 = vmatprep.subr.bf16.mxu1 %v4423_v6  ;;  %v4445_v14 = vld [vmem:[#allocation3 + $0x6c] ss:$16 sps:$4 sm:$0xff]   ;;  %v4447_v15 = vld [vmem:[#allocation3 + $0x60] ss:$16 sps:$4 sm:$0xff]   ;;  %v4451_v16 = vld [vmem:[#allocation3 + $0x68] ss:$16 sps:$4 sm:$0xff]  }
  0x1a   :  { %v4453_v17 = vld [vmem:[#allocation3 + $0x84] ss:$16 sps:$4 sm:$0xff]   ;;  %v4457_v18 = vld [vmem:[#allocation3 + $0x8c] ss:$16 sps:$4 sm:$0xff]   ;;  %v4459_v19 = vld [vmem:[#allocation3 + $0x80] ss:$16 sps:$4 sm:$0xff]   ;;  %68 = vperm.xlu1 %3739, %v38_v27  }
  0x1b   :  { %v4461_v20 = vld [vmem:[#allocation3 + $0x88] ss:$16 sps:$4 sm:$0xff]   ;;  %v4465_v21 = vld [vmem:[#allocation3 + $0xa4] ss:$16 sps:$4 sm:$0xff]   ;;  %v4469_v22 = vld [vmem:[#allocation3 + $0xac] ss:$16 sps:$4 sm:$0xff]  }
  0x1c   :  { %540 = vmatpush1.bf16.msra.mxu0 %v4425_v7  ;;  %581 = vmatpush1.bf16.msra.mxu1 %v4428_v8  ;;  %v4471_v23 = vld [vmem:[#allocation3 + $0xa0] ss:$16 sps:$4 sm:$0xff]   ;;  %v4475_v24 = vld [vmem:[#allocation3 + $0xa8] ss:$16 sps:$4 sm:$0xff]   ;;  %v4477_v25 = vld [vmem:[#allocation3 + $0xc4] ss:$16 sps:$4 sm:$0xff]  }
  0x1d   :  { %541 = vmatprep.subr.bf16.mxu0 %v4431_v9  ;;  %582 = vmatprep.subr.bf16.mxu1 %v4433_v10  ;;  %v4481_v26 = vld [vmem:[#allocation3 + $0xcc] ss:$16 sps:$4 sm:$0xff]   ;;  %v37_v28 = vld [vmem:[%s6141_s0] sm:$0xff]  ;;  %v4493_v30 = vld [vmem:[#allocation3 + $0xc8] ss:$16 sps:$4 sm:$0xff]   ;;  %v4365_v35 = vmov 1  }
  0x1e   :  { %63 = vperm.xlu0 %3737, %v37_v28   ;;  %v4491_v29 = vld [vmem:[#allocation3 + $0xc0] ss:$16 sps:$4 sm:$0xff]   ;;  %v4495_v31 = vld [vmem:[#allocation3 + $0xe4] ss:$16 sps:$4 sm:$0xff]   ;;  %v4499_v32 = vld [vmem:[#allocation3 + $0xec] ss:$16 sps:$4 sm:$0xff]   ;;  %3740 = vset.pattern.permute.xlu1 %v4365_v35 }
  0x1f   :  { %v4501_v33 = vld [vmem:[#allocation3 + $0xe0] ss:$16 sps:$4 sm:$0xff]   ;;  %v4503_v34 = vld [vmem:[#allocation3 + $0xe8] ss:$16 sps:$4 sm:$0xff]   ;;  %186 = vperm.xlu1 %3740, %v38_v27   ;;  %v4505_v36 = vld [vmem:[#allocation3 + $0x204] ss:$16 sps:$4 sm:$0xff]  }
  0x20   :  { %542 = vmatpush1.bf16.msra.mxu0 %v4435_v11  ;;  %583 = vmatpush1.bf16.msra.mxu1 %v4437_v12  ;;  %v39_v37 = vld [vmem:[%s6141_s0 + $0x10] sm:$0xff]  ;;  %v4512_v38 = vld [vmem:[#allocation3 + $0x20c] ss:$16 sps:$4 sm:$0xff]   ;;  %v4525_v41 = vld [vmem:[#allocation3 + $0x208] ss:$16 sps:$4 sm:$0xff]   ;;  %s4366_s30 = smov [#allocation6]  }
  0x21   :  { %543 = vmatprep.subr.bf16.mxu0 %v4441_v13  ;;  %584 = vmatprep.subr.bf16.mxu1 %v4445_v14  ;;  %v4516_v39 = vld [vmem:[#allocation3 + $0x200] ss:$16 sps:$4 sm:$0xff]   ;;  %v40_v40 = vld [vmem:[%s6141_s0 + $0x18] sm:$0xff]  ;;  %v4527_v42 = vld [vmem:[#allocation3 + $0x224] ss:$16 sps:$4 sm:$0xff]   ;;  %s3579_s5 = sshll.u32 %s4366_s30, 4  ;;  %s3580_s5 = int_to_ptr.vmem [resolvable:$true] %s3579_s5 }
  0x22   :  { %3738 = vset.pattern.permute.xlu0 %v4365_v35  ;;  %v4530_v43 = vld [vmem:[#allocation3 + $0x220] ss:$16 sps:$4 sm:$0xff]   ;;  %v4532_v44 = vld [vmem:[#allocation3 + $0x22c] ss:$16 sps:$4 sm:$0xff]   ;;  %v4541_v46 = vld [vmem:[#allocation3 + $0x228] ss:$16 sps:$4 sm:$0xff]   ;;  %p4316_p9 = scmp.lt.s32.totalorder %s3580_s5, %s3580_s5 }
  0x23   :  { %182 = vperm.xlu0 %3738, %v37_v28   ;;  %3741 = vset.pattern.permute.xlu1 %v6146_v0  ;;  %6518 = vst [vmem:[#allocation12_spill] sm:$0xff] %v4530_v43  ;;  %v41_v45 = vld [vmem:[%s6141_s0 + $0x20] sm:$0xff]  ;;  %6519 = vst [vmem:[#allocation13_spill] sm:$0xff] %v4541_v46  ;;  %v4549_v49 = vld [vmem:[#allocation3 + $0x24c] ss:$16 sps:$4 sm:$0xff]   ;;  %s4367_s6 = smov [#allocation7]  }
  0x24   :  { %544 = vmatpush1.bf16.msra.mxu0 %v4447_v15  ;;  %585 = vmatpush1.bf16.msra.mxu1 %v4451_v16  ;;  %v4543_v47 = vld [vmem:[#allocation3 + $0x244] ss:$16 sps:$4 sm:$0xff]   ;;  %v4547_v48 = vld [vmem:[#allocation3 + $0x240] ss:$16 sps:$4 sm:$0xff]   ;;  %6522 = vst [vmem:[#allocation16_spill] sm:$0xff] %v4549_v49  ;;  %v42_v50 = vld [vmem:[%s6141_s0 + $0x28] sm:$0xff] }
  0x25   :  { %545 = vmatprep.subr.bf16.mxu0 %v4453_v17  ;;  %586 = vmatprep.subr.bf16.mxu1 %v4457_v18  ;;  %6520 = vst [vmem:[#allocation14_spill] sm:$0xff] %v4543_v47  ;;  %6521 = vst [vmem:[#allocation15_spill] sm:$0xff] %v4547_v48  ;;  %v4558_v51 = vld [vmem:[#allocation3 + $0x248] ss:$16 sps:$4 sm:$0xff]   ;;  %v4560_v52 = vld [vmem:[#allocation3 + $0x264] ss:$16 sps:$4 sm:$0xff]  }
  0x26   :  { %73 = vperm.xlu1 %3741, %v39_v37   ;;  %6523 = vst [vmem:[#allocation17_spill] sm:$0xff] %v4558_v51  ;;  %6524 = vst [vmem:[#allocation18_spill] sm:$0xff] %v4560_v52  ;;  %v4564_v53 = vld [vmem:[#allocation3 + $0x260] ss:$16 sps:$4 sm:$0xff]   ;;  %v4566_v54 = vld [vmem:[#allocation3 + $0x26c] ss:$16 sps:$4 sm:$0xff]  }
  0x27   :  { %190 = vperm.xlu0 %3738, %v39_v37   ;;  %6525 = vst [vmem:[#allocation19_spill] sm:$0xff] %v4564_v53  ;;  %6526 = vst [vmem:[#allocation20_spill] sm:$0xff] %v4566_v54  ;;  %v43_v55 = vld [vmem:[%s6141_s0 + $0x30] sm:$0xff]  ;;  %v4573_v56 = vld [vmem:[#allocation3 + $0x268] ss:$16 sps:$4 sm:$0xff]   ;;  %s3589_s7 = sshll.u32 %s4367_s6, 4  ;;  %s6110_s7 = int_to_ptr.vmem [resolvable:$true] %s3589_s7 }
  0x28   :  { %546 = vmatpush1.bf16.msra.mxu0 %v4459_v19  ;;  %587 = vmatpush1.bf16.msra.mxu1 %v4461_v20  ;;  %6527 = vst [vmem:[#allocation21_spill] sm:$0xff] %v4573_v56  ;;  %v4575_v57 = vld [vmem:[#allocation3 + $0x284] ss:$16 sps:$4 sm:$0xff]   ;;  %v4579_v58 = vld [vmem:[#allocation3 + $0x280] ss:$16 sps:$4 sm:$0xff]   ;;  %v44_v60 = vld [vmem:[%s6141_s0 + $0x38] sm:$0xff] }
  0x29   :  { %547 = vmatprep.subr.bf16.mxu0 %v4465_v21  ;;  %588 = vmatprep.subr.bf16.mxu1 %v4469_v22  ;;  %6528 = vst [vmem:[#allocation22_spill] sm:$0xff] %v4575_v57  ;;  %6529 = vst [vmem:[#allocation23_spill] sm:$0xff] %v4579_v58  ;;  %v4581_v59 = vld [vmem:[#allocation3 + $0x28c] ss:$16 sps:$4 sm:$0xff]   ;;  %v4588_v61 = vld [vmem:[#allocation3 + $0x288] ss:$16 sps:$4 sm:$0xff]  }
  0x2a   :  { %78 = vperm.xlu1 %3741, %v40_v40   ;;  %6530 = vst [vmem:[#allocation24_spill] sm:$0xff] %v4581_v59  ;;  %6531 = vst [vmem:[#allocation25_spill] sm:$0xff] %v4588_v61  ;;  %v4590_v62 = vld [vmem:[#allocation3 + $0x2a4] ss:$16 sps:$4 sm:$0xff]   ;;  %v4594_v63 = vld [vmem:[#allocation3 + $0x2a0] ss:$16 sps:$4 sm:$0xff]  }
  0x2b   :  { %194 = vperm.xlu0 %3738, %v40_v40   ;;  %6532 = vst [vmem:[#allocation26_spill] sm:$0xff] %v4590_v62  ;;  %6533 = vst [vmem:[#allocation27_spill] sm:$0xff] %v4594_v63  ;;  %v4596_v27 = vld [vmem:[#allocation3 + $0x2ac] ss:$16 sps:$4 sm:$0xff]   ;;  %v4600_v28 = vld [vmem:[#allocation3 + $0x2a8] ss:$16 sps:$4 sm:$0xff]  }
  0x2c   :  { %548 = vmatpush1.bf16.msra.mxu0 %v4471_v23  ;;  %589 = vmatpush1.bf16.msra.mxu1 %v4475_v24  ;;  %6534 = vst [vmem:[#allocation28_spill] sm:$0xff] %v4596_v27  ;;  %6535 = vst [vmem:[#allocation29_spill] sm:$0xff] %v4600_v28  ;;  %v4602_v35 = vld [vmem:[#allocation3 + $0x2c4] ss:$16 sps:$4 sm:$0xff]   ;;  %v4606_v37 = vld [vmem:[#allocation3 + $0x2c0] ss:$16 sps:$4 sm:$0xff]  }
  0x2d   :  { %549 = vmatprep.subr.bf16.mxu0 %v4477_v25  ;;  %590 = vmatprep.subr.bf16.mxu1 %v4481_v26  ;;  %6536 = vst [vmem:[#allocation30_spill] sm:$0xff] %v4602_v35  ;;  %6537 = vst [vmem:[#allocation31_spill] sm:$0xff] %v4606_v37  ;;  %v4608_v40 = vld [vmem:[#allocation3 + $0x2cc] ss:$16 sps:$4 sm:$0xff]  }
  0x2e   :  { %83 = vperm.xlu1 %3741, %v41_v45   ;;  %6538 = vst [vmem:[#allocation32_spill] sm:$0xff] %v4608_v40 }
  0x2f   :  { %198 = vperm.xlu0 %3738, %v41_v45   ;;  %v4615_v45 = vld [vmem:[#allocation3 + $0x2c8] ss:$16 sps:$4 sm:$0xff]  }
  0x30   :  { %550 = vmatpush1.bf16.msra.mxu0 %v4491_v29  ;;  %591 = vmatpush1.bf16.msra.mxu1 %v4493_v30  ;;  %6539 = vst [vmem:[#allocation33_spill] sm:$0xff] %v4615_v45 }
  0x31   :  { %551 = vmatprep.subr.bf16.mxu0 %v4495_v31  ;;  %592 = vmatprep.subr.bf16.mxu1 %v4499_v32 }
  0x32   :  { %88 = vperm.xlu1 %3741, %v42_v50  }
  0x33   :  { %202 = vperm.xlu0 %3738, %v42_v50   ;;  %v4618_v50 = vld [vmem:[#allocation3 + $0x2e4] ss:$16 sps:$4 sm:$0xff]  }
  0x34   :  { %552 = vmatpush1.bf16.msra.mxu0 %v4501_v33  ;;  %593 = vmatpush1.bf16.msra.mxu1 %v4503_v34  ;;  %6540 = vst [vmem:[#allocation34_spill] sm:$0xff] %v4618_v50 }
  0x35   :  { %866 = vmatprep.subr.bf16.mxu0 %v4505_v36  ;;  %907 = vmatprep.subr.bf16.mxu1 %v4512_v38 }
  0x36   :  { %93 = vperm.xlu1 %3741, %v43_v55  }
  0x37   :  { %570 = vmatmul.mubr.bf16.vlgmr.msra.gmra.mrb[0].mxu0 %v6146_v0  ;;  %611 = vmatmul.mubr.bf16.vlgmr.msra.gmra.mrb[0].mxu1 %v6146_v0 }
  0x38   :  { %867 = vmatpush1.bf16.msra.mxu0 %v4516_v39  ;;  %908 = vmatpush1.bf16.msra.mxu1 %v4525_v41 }
  0x39   :  { %868 = vmatprep.subr.bf16.mxu0 %v4527_v42  ;;  %909 = vmatprep.subr.bf16.mxu1 %v4532_v44 }
  0x3a   :  { %898 = vmatprep.mubr.bf16.mxu0 %v6146_v0  ;;  %939 = vmatprep.mubr.bf16.mxu1 %v6146_v0  ;;  %v4625_v0 = vld [vmem:[#allocation3 + $0x2e8] ss:$16 sps:$4 sm:$0xff]  }
  0x3b   :  { %206 = vperm.xlu0 %3738, %v43_v55   ;;  %98 = vperm.xlu1 %3741, %v44_v60   ;;  %v4620_v55 = vld [vmem:[#allocation3 + $0x2e0] ss:$16 sps:$4 sm:$0xff]   ;;  %6543 = vst [vmem:[#allocation37_spill] sm:$0xff] %v4625_v0 }
  0x3c   :  { %869 = vmatpush1.bf16.msra.mxu0 %v4530_v43  ;;  %910 = vmatpush1.bf16.msra.mxu1 %v4541_v46  ;;  %6541 = vst [vmem:[#allocation35_spill] sm:$0xff] %v4620_v55 }
  0x3d   :  { %870 = vmatprep.subr.bf16.mxu0 %v4543_v47  ;;  %911 = vmatprep.subr.bf16.mxu1 %v4549_v49 }
  0x3f   :  { %210 = vperm.xlu0 %3738, %v44_v60   ;;  %v4622_v60 = vld [vmem:[#allocation3 + $0x2ec] ss:$16 sps:$4 sm:$0xff]  }
  0x40   :  { %871 = vmatpush1.bf16.msra.mxu0 %v4547_v48  ;;  %912 = vmatpush1.bf16.msra.mxu1 %v4558_v51  ;;  %6542 = vst [vmem:[#allocation36_spill] sm:$0xff] %v4622_v60 }
  0x41   :  { %872 = vmatprep.subr.bf16.mxu0 %v4560_v52  ;;  %913 = vmatprep.subr.bf16.mxu1 %v4566_v54 }
  0x44   :  { %873 = vmatpush1.bf16.msra.mxu0 %v4564_v53  ;;  %914 = vmatpush1.bf16.msra.mxu1 %v4573_v56 }
  0x45   :  { %874 = vmatprep.subr.bf16.mxu0 %v4575_v57  ;;  %915 = vmatprep.subr.bf16.mxu1 %v4581_v59  ;;  %v4778_v57 = vld [vmem:[%s6143_s2 + $0x10] sm:$0xff] }
  0x46   :  { %6588 = vst [vmem:[#allocation81_spill] sm:$0xff] %v4778_v57 }
  0x48   :  { %875 = vmatpush1.bf16.msra.mxu0 %v4579_v58  ;;  %916 = vmatpush1.bf16.msra.mxu1 %v4588_v61 }
  0x49   :  { %876 = vmatprep.subr.bf16.mxu0 %v4590_v62  ;;  %917 = vmatprep.subr.bf16.mxu1 %v4596_v27  ;;  %v4704_v27 = vld [vmem:[#allocation3 + $0x1cc] ss:$16 sps:$4 sm:$0xff]  }
  0x4a   :  { %6570 = vst [vmem:[#allocation63_spill] sm:$0xff] %v4704_v27 }
  0x4c   :  { %877 = vmatpush1.bf16.msra.mxu0 %v4594_v63  ;;  %918 = vmatpush1.bf16.msra.mxu1 %v4600_v28  ;;  %v4637_v28 = vld [vmem:[#allocation3 + $0x108] ss:$16 sps:$4 sm:$0xff]   ;;  %v4702_v63 = vld [vmem:[#allocation3 + $0x1c4] ss:$16 sps:$4 sm:$0xff]  }
  0x4d   :  { %878 = vmatprep.subr.bf16.mxu0 %v4602_v35  ;;  %919 = vmatprep.subr.bf16.mxu1 %v4608_v40  ;;  %v4632_v40 = vld [vmem:[#allocation3 + $0x10c] ss:$16 sps:$4 sm:$0xff]   ;;  %v4635_v35 = vld [vmem:[#allocation3 + $0x100] ss:$16 sps:$4 sm:$0xff]   ;;  %6548 = vst [vmem:[#allocation41_spill] sm:$0xff] %v4637_v28  ;;  %6569 = vst [vmem:[#allocation62_spill] sm:$0xff] %v4702_v63 }
  0x4e   :  { %6545 = vst [vmem:[#allocation39_spill] sm:$0xff] %v4632_v40  ;;  %6547 = vst [vmem:[#allocation40_spill] sm:$0xff] %v4635_v35 }
  0x50   :  { %879 = vmatpush1.bf16.msra.mxu0 %v4606_v37  ;;  %920 = vmatpush1.bf16.msra.mxu1 %v4615_v45  ;;  %v4630_v37 = vld [vmem:[#allocation3 + $0x104] ss:$16 sps:$4 sm:$0xff]   ;;  %v6546_v45 = vmov 0  }
  0x51   :  { %880 = vmatprep.subr.bf16.mxu0 %v4618_v50  ;;  %921 = vmatprep.subr.bf16.mxu1 %v4622_v60  ;;  %6544 = vst [vmem:[#allocation38_spill] sm:$0xff] %v4630_v37  ;;  %v4649_v60 = vld [vmem:[#allocation3 + $0x120] ss:$16 sps:$4 sm:$0xff]   ;;  %v4651_v50 = vld [vmem:[#allocation3 + $0x128] ss:$16 sps:$4 sm:$0xff]  }
  0x52   :  { %6551 = vst [vmem:[#allocation44_spill] sm:$0xff] %v4649_v60  ;;  %6552 = vst [vmem:[#allocation45_spill] sm:$0xff] %v4651_v50 }
  0x54   :  { %881 = vmatpush1.bf16.msra.mxu0 %v4620_v55  ;;  %922 = vmatpush1.bf16.msra.mxu1 %v4625_v0  ;;  %v4644_v0 = vld [vmem:[#allocation3 + $0x124] ss:$16 sps:$4 sm:$0xff]   ;;  %v4646_v55 = vld [vmem:[#allocation3 + $0x12c] ss:$16 sps:$4 sm:$0xff]  }
  0x55   :  { %1108 = vmatprep.subr.bf16.mxu0 %v4630_v37  ;;  %1149 = vmatprep.subr.bf16.mxu1 %v4632_v40  ;;  %6549 = vst [vmem:[#allocation42_spill] sm:$0xff] %v4644_v0  ;;  %6550 = vst [vmem:[#allocation43_spill] sm:$0xff] %v4646_v55  ;;  %v4662_v40 = vld [vmem:[#allocation3 + $0x140] ss:$16 sps:$4 sm:$0xff]   ;;  %v4664_v37 = vld [vmem:[#allocation3 + $0x148] ss:$16 sps:$4 sm:$0xff]  }
  0x56   :  { %6555 = vst [vmem:[#allocation48_spill] sm:$0xff] %v4662_v40  ;;  %6556 = vst [vmem:[#allocation49_spill] sm:$0xff] %v4664_v37 }
  0x57   :  { %899 = vmatmul.mubr.bf16.vlgmr.msra.gmra.mrb[4].mxu0 %v6546_v45  ;;  %940 = vmatmul.mubr.bf16.vlgmr.msra.gmra.mrb[4].mxu1 %v6546_v45 }
  0x58   :  { %1109 = vmatpush1.bf16.msra.mxu0 %v4635_v35  ;;  %1150 = vmatpush1.bf16.msra.mxu1 %v4637_v28  ;;  %v4658_v28 = vld [vmem:[#allocation3 + $0x144] ss:$16 sps:$4 sm:$0xff]   ;;  %v4660_v35 = vld [vmem:[#allocation3 + $0x14c] ss:$16 sps:$4 sm:$0xff]  }
  0x59   :  { %1140 = vmatprep.mubr.bf16.mxu0 %v6546_v45  ;;  %1181 = vmatprep.mubr.bf16.mxu1 %v6546_v45  ;;  %6553 = vst [vmem:[#allocation46_spill] sm:$0xff] %v4658_v28  ;;  %6554 = vst [vmem:[#allocation47_spill] sm:$0xff] %v4660_v35 }
  0x5a   :  { %1110 = vmatprep.subr.bf16.mxu0 %v4644_v0  ;;  %1151 = vmatprep.subr.bf16.mxu1 %v4646_v55  ;;  %v4670_v55 = vld [vmem:[#allocation3 + $0x164] ss:$16 sps:$4 sm:$0xff]   ;;  %v4676_v0 = vld [vmem:[#allocation3 + $0x168] ss:$16 sps:$4 sm:$0xff]  }
  0x5b   :  { %6557 = vst [vmem:[#allocation50_spill] sm:$0xff] %v4670_v55  ;;  %6560 = vst [vmem:[#allocation53_spill] sm:$0xff] %v4676_v0 }
  0x5c   :  { %1111 = vmatpush1.bf16.msra.mxu0 %v4649_v60  ;;  %1152 = vmatpush1.bf16.msra.mxu1 %v4651_v50  ;;  %v4672_v60 = vld [vmem:[#allocation3 + $0x16c] ss:$16 sps:$4 sm:$0xff]   ;;  %v4674_v50 = vld [vmem:[#allocation3 + $0x160] ss:$16 sps:$4 sm:$0xff]  }
  0x5d   :  { %1112 = vmatprep.subr.bf16.mxu0 %v4658_v28  ;;  %1153 = vmatprep.subr.bf16.mxu1 %v4660_v35  ;;  %6558 = vst [vmem:[#allocation51_spill] sm:$0xff] %v4672_v60  ;;  %6559 = vst [vmem:[#allocation52_spill] sm:$0xff] %v4674_v50  ;;  %v4682_v35 = vld [vmem:[#allocation3 + $0x184] ss:$16 sps:$4 sm:$0xff]   ;;  %v4688_v28 = vld [vmem:[#allocation3 + $0x188] ss:$16 sps:$4 sm:$0xff]  }
  0x5e   :  { %6561 = vst [vmem:[#allocation54_spill] sm:$0xff] %v4682_v35  ;;  %6564 = vst [vmem:[#allocation57_spill] sm:$0xff] %v4688_v28 }
  0x60   :  { %1113 = vmatpush1.bf16.msra.mxu0 %v4662_v40  ;;  %1154 = vmatpush1.bf16.msra.mxu1 %v4664_v37  ;;  %v4684_v40 = vld [vmem:[#allocation3 + $0x18c] ss:$16 sps:$4 sm:$0xff]   ;;  %v4686_v37 = vld [vmem:[#allocation3 + $0x180] ss:$16 sps:$4 sm:$0xff]  }
  0x61   :  { %1114 = vmatprep.subr.bf16.mxu0 %v4670_v55  ;;  %1155 = vmatprep.subr.bf16.mxu1 %v4672_v60  ;;  %6562 = vst [vmem:[#allocation55_spill] sm:$0xff] %v4684_v40  ;;  %6563 = vst [vmem:[#allocation56_spill] sm:$0xff] %v4686_v37  ;;  %v4694_v60 = vld [vmem:[#allocation3 + $0x1a4] ss:$16 sps:$4 sm:$0xff]   ;;  %v4700_v55 = vld [vmem:[#allocation3 + $0x1a8] ss:$16 sps:$4 sm:$0xff]  }
  0x62   :  { %6565 = vst [vmem:[#allocation58_spill] sm:$0xff] %v4694_v60  ;;  %6568 = vst [vmem:[#allocation61_spill] sm:$0xff] %v4700_v55 }
  0x64   :  { %1115 = vmatpush1.bf16.msra.mxu0 %v4674_v50  ;;  %1156 = vmatpush1.bf16.msra.mxu1 %v4676_v0  ;;  %v4696_v50 = vld [vmem:[#allocation3 + $0x1ac] ss:$16 sps:$4 sm:$0xff]   ;;  %v4698_v0 = vld [vmem:[#allocation3 + $0x1a0] ss:$16 sps:$4 sm:$0xff]  }
  0x65   :  { %1116 = vmatprep.subr.bf16.mxu0 %v4682_v35  ;;  %1157 = vmatprep.subr.bf16.mxu1 %v4684_v40  ;;  %6566 = vst [vmem:[#allocation59_spill] sm:$0xff] %v4696_v50  ;;  %6567 = vst [vmem:[#allocation60_spill] sm:$0xff] %v4698_v0  ;;  %v4715_v40 = vld [vmem:[#allocation3 + $0x1e4] ss:$16 sps:$4 sm:$0xff]   ;;  %v4718_v35 = vld [vmem:[#allocation3 + $0x1ec] ss:$16 sps:$4 sm:$0xff]  }
  0x66   :  { %6573 = vst [vmem:[#allocation66_spill] sm:$0xff] %v4715_v40  ;;  %6574 = vst [vmem:[#allocation67_spill] sm:$0xff] %v4718_v35 }
  0x68   :  { %1117 = vmatpush1.bf16.msra.mxu0 %v4686_v37  ;;  %1158 = vmatpush1.bf16.msra.mxu1 %v4688_v28  ;;  %v4709_v37 = vld [vmem:[#allocation3 + $0x1c0] ss:$16 sps:$4 sm:$0xff]   ;;  %v4713_v28 = vld [vmem:[#allocation3 + $0x1c8] ss:$16 sps:$4 sm:$0xff]  }
  0x69   :  { %1118 = vmatprep.subr.bf16.mxu0 %v4694_v60  ;;  %1159 = vmatprep.subr.bf16.mxu1 %v4696_v50  ;;  %6571 = vst [vmem:[#allocation64_spill] sm:$0xff] %v4709_v37  ;;  %6572 = vst [vmem:[#allocation65_spill] sm:$0xff] %v4713_v28  ;;  %v4721_v60 = vld [vmem:[#allocation3 + $0x1e0] ss:$16 sps:$4 sm:$0xff]  }
  0x6a   :  { %6575 = vst [vmem:[#allocation68_spill] sm:$0xff] %v4721_v60 }
  0x6c   :  { %1119 = vmatpush1.bf16.msra.mxu0 %v4698_v0  ;;  %1160 = vmatpush1.bf16.msra.mxu1 %v4700_v55  ;;  %v4725_v0 = vld [vmem:[#allocation3 + $0x1e8] ss:$16 sps:$4 sm:$0xff]  }
  0x6d   :  { %1120 = vmatprep.subr.bf16.mxu0 %v4702_v63  ;;  %1161 = vmatprep.subr.bf16.mxu1 %v4704_v27  ;;  %6576 = vst [vmem:[#allocation69_spill] sm:$0xff] %v4725_v0  ;;  %v45_v27 = vlaneseq }
  0x70   :  { %1121 = vmatpush1.bf16.msra.mxu0 %v4709_v37  ;;  %1162 = vmatpush1.bf16.msra.mxu1 %v4713_v28  ;;  %v4732_v37 = vshrl.u32 %v45_v27, 7  ;;  %v4753_v27 = vld [vmem:[%s6143_s2 + $0x18] sm:$0xff] }
  0x71   :  { %1122 = vmatprep.subr.bf16.mxu0 %v4715_v40  ;;  %1163 = vmatprep.subr.bf16.mxu1 %v4718_v35  ;;  %v4738_v40 = vld [vmem:[%s6143_s2] sm:$0xff]  ;;  %6581 = vst [vmem:[#allocation74_spill] sm:$0xff] %v4753_v27 }
  0x72   :  { %6577 = vst [vmem:[#allocation70_spill] sm:$0xff] %v4732_v37  ;;  %v103_v63 = vsub.s32 3, %v4732_v37  ;;  %6578 = vst [vmem:[#allocation71_spill] sm:$0xff] %v4738_v40 }
  0x74   :  { %1123 = vmatpush1.bf16.msra.mxu0 %v4721_v60  ;;  %1164 = vmatpush1.bf16.msra.mxu1 %v4725_v0  ;;  %v4743_v60 = vld [vmem:[%s6143_s2 + $0x8] sm:$0xff]  ;;  %v4746_v0 = vrot.slane %v4738_v40, %v103_v63  ;;  %v4759_v55 = vrot.slane %v4753_v27, %v103_v63 }
  0x75   :  { %1216 = vmatprep.subr.bf16.mxu0 %v4409_v1  ;;  %1257 = vmatprep.subr.bf16.mxu1 %v4411_v2  ;;  %6579 = vst [vmem:[#allocation72_spill] sm:$0xff] %v4743_v60  ;;  %v215_v1 = vsub.s32 4, %v4732_v37  ;;  %v47_v2 = vsub.s32 0, %v4732_v37  ;;  %v4756_v35 = vrot.slane %v4743_v60, %v103_v63 }
  0x76   :  { %6580 = vst [vmem:[#allocation73_spill] sm:$0xff] %v4746_v0  ;;  %6583 = vst [vmem:[#allocation76_spill] sm:$0xff] %v4759_v55 }
  0x77   :  { %6582 = vst [vmem:[#allocation75_spill] sm:$0xff] %v4756_v35  ;;  %v4763_v62 = vrot.slane %v4738_v40, %v215_v1  ;;  %v4766_v61 = vrot.slane %v4738_v40, %v47_v2  ;;  %v4770_v58 = vrot.slane %v4743_v60, %v215_v1  ;;  %v4773_v59 = vrot.slane %v4743_v60, %v47_v2 }
  0x78   :  { %v4781_v56 = vrot.slane %v4753_v27, %v215_v1  ;;  %v4787_v54 = vrot.slane %v4753_v27, %v47_v2  ;;  %v4790_v60 = vrot.slane %v4778_v57, %v103_v63 }
  0x79   :  { %6584 = vst [vmem:[#allocation77_spill] sm:$0xff] %v4763_v62  ;;  %6585 = vst [vmem:[#allocation78_spill] sm:$0xff] %v4766_v61 }
  0x7a   :  { %6586 = vst [vmem:[#allocation79_spill] sm:$0xff] %v4770_v58  ;;  %6587 = vst [vmem:[#allocation80_spill] sm:$0xff] %v4773_v59 }
  0x7b   :  { %6589 = vst [vmem:[#allocation82_spill] sm:$0xff] %v4781_v56  ;;  %6590 = vst [vmem:[#allocation83_spill] sm:$0xff] %v4787_v54 }
  0x7c   :  { %6591 = vst [vmem:[#allocation84_spill] sm:$0xff] %v4790_v60 }
  0x9d   :  { %v64_v28 = vpop.permute.xlu0 %63 }
  0x9e   :  { %v117_v50 = vmul.f32 %v4746_v0, %v64_v28  ;;  %v118_v37 = vmul.f32 %v4756_v35, %v64_v28  ;;  %v120_v40 = vmul.f32 %v4759_v55, %v64_v28  ;;  %v119_v55 = vmul.f32 %v4790_v60, %v64_v28 }
  0xa0   :  { %v149_v53 = vadd.f32 %v117_v50, %v4766_v61  ;;  %v150_v52 = vadd.f32 %v118_v37, %v4773_v59  ;;  %v152_v49 = vadd.f32 %v120_v40, %v4787_v54  ;;  %v4798_v50 = vrot.slane %v4778_v57, %v215_v1 }
  0xa1   :  { %v4801_v61 = vrot.slane %v4778_v57, %v47_v2 }
  0xa2   :  { %v183_v0 = vpop.permute.xlu0 %182  ;;  %6592 = vst [vmem:[#allocation85_spill] sm:$0xff] %v4798_v50 }
  0xa3   :  { %v229_v35 = vmul.f32 %v4763_v62, %v183_v0  ;;  %v230_v51 = vmul.f32 %v4770_v58, %v183_v0  ;;  %v232_v47 = vmul.f32 %v4781_v56, %v183_v0  ;;  %6593 = vst [vmem:[#allocation86_spill] sm:$0xff] %v4801_v61  ;;  %v151_v28 = vadd.f32 %v119_v55, %v4801_v61 }
  0xa4   :  { %v231_v1 = vmul.f32 %v4798_v50, %v183_v0 }
  0xa5   :  { %v261_v48 = vadd.f32 %v229_v35, %v149_v53  ;;  %v262_v27 = vadd.f32 %v230_v51, %v150_v52  ;;  %v264_v54 = vadd.f32 %v232_v47, %v152_v49 }
  0xa6   :  { %v263_v57 = vadd.f32 %v231_v1, %v151_v28 }
 0x10a   :  { %v571_v62 = vpop.f32.mrb[0].mxu0  ;;  %v612_v63 = vpop.f32.mrb[0].mxu1 }
 0x10b   :  { %v619_v46 = vadd.f32 %v571_v62, %v261_v48  ;;  %v573_v37 = vpop.f32.mrb[1].mxu0  ;;  %v614_v59 = vpop.f32.mrb[1].mxu1  ;;  %v621_v48 = vadd.f32 %v612_v63, %v263_v57  ;;  %v6622_v63 = vld [vmem:[#allocation70_spill] sm:$0xff] }
 0x10c   :  { %v620_v58 = vadd.f32 %v573_v37, %v262_v27  ;;  %v575_v53 = vpop.f32.mrb[2].mxu0  ;;  %v616_v35 = vpop.f32.mrb[2].mxu1  ;;  %v622_v2 = vadd.f32 %v614_v59, %v264_v54 }
 0x10d   :  { %v623_v40 = vmul.f32 0.5, %v619_v46  ;;  %v576_v56 = vpop.f32.mrb[3].mxu0  ;;  %v617_v43 = vpop.f32.mrb[3].mxu1  ;;  %v625_v51 = vmul.f32 0.5, %v621_v48  ;;  %v327_v53 = vsub.s32 1, %v6622_v63  ;;  %v6623_v35 = vld [vmem:[#allocation71_spill] sm:$0xff] }
 0x10e   :  { %v624_v60 = vmul.f32 0.5, %v620_v58 }
 0x10f   :  { %3934 = vtanh.f32 %v623_v40  ;;  %v4878_v40 = vrot.slane %v6623_v35, %v327_v53  ;;  %v6634_v35 = vld [vmem:[#allocation76_spill] sm:$0xff] }
 0x110   :  { %3936 = vtanh.f32 %v624_v60 }
 0x111   :  { %3938 = vtanh.f32 %v622_v2  ;;  %v6625_v2 = vld [vmem:[#allocation72_spill] sm:$0xff] }
 0x112   :  { %3940 = vtanh.f32 %v625_v51  ;;  %v4881_v48 = vrot.slane %v6625_v2, %v327_v53 }
 0x119   :  { %v3935_v52 = vpop.eup %3934 }
 0x11a   :  { %v629_v62 = vmul.f32 0.5, %v3935_v52  ;;  %v3937_v27 = vpop.eup %3936 }
 0x11b   :  { %v630_v46 = vmul.f32 0.5, %v3937_v27  ;;  %v3939_v47 = vpop.eup %3938 }
 0x11c   :  { %v632_v37 = vadd.f32 0.5, %v629_v62  ;;  %v3941_v0 = vpop.eup %3940 }
 0x11d   :  { %v633_v43 = vadd.f32 0.5, %v630_v46  ;;  %v631_v54 = vmul.f32 0.5, %v3941_v0 }
 0x11e   :  { %v637_v49 = vmul.f32 %v3939_v47, %v632_v37 }
 0x11f   :  { %v636_v56 = vmul.f32 0.0, %v633_v43  ;;  %v634_v58 = vadd.f32 0.5, %v631_v54 }
 0x121   :  { %v4805_v55 = vadd.f32 %v637_v49, %v636_v56  ;;  %v6627_v56 = vld [vmem:[#allocation74_spill] sm:$0xff] }
 0x122   :  { %v4885_v0 = vrot.slane %v6627_v56, %v327_v53 }
 0x123   :  { %3942 = vtanh.f32 %v4805_v55 }
 0x12d   :  { %v3943_v59 = vpop.eup %3942 }
 0x12e   :  { %v640_v57 = vmul.f32 %v3943_v59, %v634_v58 }
 0x130   :  { %v641_v60 = vpack.c.bf16 %v640_v57, %v640_v57 }
 0x132   :  { %1141 = vmatmul.mubr.bf16.vlgmr.msra.gmra.mrb[8].mxu0 %v641_v60  ;;  %1182 = vmatmul.mubr.bf16.vlgmr.msra.gmra.mrb[8].mxu1 %v641_v60 }
 0x133   :  { %1217 = vmatpush1.bf16.msra.mxu0 %v4414_v3  ;;  %1258 = vmatpush1.bf16.msra.mxu1 %v4416_v4  ;;  %v6594_v3 = vld [vmem:[#allocation12_spill] sm:$0xff]  ;;  %v6595_v4 = vld [vmem:[#allocation13_spill] sm:$0xff] }
 0x134   :  { %1218 = vmatprep.subr.bf16.mxu0 %v4419_v5  ;;  %1259 = vmatprep.subr.bf16.mxu1 %v4423_v6  ;;  %v6596_v5 = vld [vmem:[#allocation14_spill] sm:$0xff]  ;;  %v6597_v6 = vld [vmem:[#allocation16_spill] sm:$0xff]  ;;  %6624 = vst [vmem:[#allocation12_spill] sm:$0xff] %v4878_v40  ;;  %6626 = vst [vmem:[#allocation13_spill] sm:$0xff] %v4881_v48 }
 0x135   :  { %1248 = vmatprep.mubr.bf16.mxu0 %v6546_v45  ;;  %1289 = vmatprep.mubr.bf16.mxu1 %v6546_v45  ;;  %6628 = vst [vmem:[#allocation14_spill] sm:$0xff] %v4885_v0 }
 0x137   :  { %1219 = vmatpush1.bf16.msra.mxu0 %v4425_v7  ;;  %1260 = vmatpush1.bf16.msra.mxu1 %v4428_v8  ;;  %v6598_v7 = vld [vmem:[#allocation15_spill] sm:$0xff]  ;;  %v6599_v8 = vld [vmem:[#allocation17_spill] sm:$0xff] }
 0x138   :  { %1220 = vmatprep.subr.bf16.mxu0 %v4431_v9  ;;  %1261 = vmatprep.subr.bf16.mxu1 %v4433_v10  ;;  %v6600_v9 = vld [vmem:[#allocation18_spill] sm:$0xff]  ;;  %v6601_v10 = vld [vmem:[#allocation20_spill] sm:$0xff] }
 0x13b   :  { %1221 = vmatpush1.bf16.msra.mxu0 %v4435_v11  ;;  %1262 = vmatpush1.bf16.msra.mxu1 %v4437_v12  ;;  %v6602_v11 = vld [vmem:[#allocation19_spill] sm:$0xff]  ;;  %v6603_v12 = vld [vmem:[#allocation21_spill] sm:$0xff] }
 0x13c   :  { %1222 = vmatprep.subr.bf16.mxu0 %v4441_v13  ;;  %1263 = vmatprep.subr.bf16.mxu1 %v4445_v14  ;;  %v6604_v13 = vld [vmem:[#allocation22_spill] sm:$0xff]  ;;  %v6605_v14 = vld [vmem:[#allocation24_spill] sm:$0xff] }
 0x13f   :  { %1223 = vmatpush1.bf16.msra.mxu0 %v4447_v15  ;;  %1264 = vmatpush1.bf16.msra.mxu1 %v4451_v16  ;;  %v900_v15 = vpop.f32.mrb[4].mxu0  ;;  %v6606_v16 = vld [vmem:[#allocation23_spill] sm:$0xff] }
 0x140   :  { %1224 = vmatprep.subr.bf16.mxu0 %v4453_v17  ;;  %1265 = vmatprep.subr.bf16.mxu1 %v4457_v18  ;;  %v6607_v17 = vld [vmem:[#allocation25_spill] sm:$0xff]  ;;  %v902_v18 = vpop.f32.mrb[5].mxu0 }
 0x143   :  { %1225 = vmatpush1.bf16.msra.mxu0 %v4459_v19  ;;  %1266 = vmatpush1.bf16.msra.mxu1 %v4461_v20  ;;  %v6608_v19 = vld [vmem:[#allocation26_spill] sm:$0xff]  ;;  %v6609_v20 = vld [vmem:[#allocation28_spill] sm:$0xff] }
 0x144   :  { %1226 = vmatprep.subr.bf16.mxu0 %v4465_v21  ;;  %1267 = vmatprep.subr.bf16.mxu1 %v4469_v22  ;;  %v904_v21 = vpop.f32.mrb[6].mxu0  ;;  %v941_v22 = vpop.f32.mrb[4].mxu1 }
 0x147   :  { %1227 = vmatpush1.bf16.msra.mxu0 %v4471_v23  ;;  %1268 = vmatpush1.bf16.msra.mxu1 %v4475_v24  ;;  %v905_v23 = vpop.f32.mrb[7].mxu0  ;;  %v943_v24 = vpop.f32.mrb[5].mxu1 }
 0x148   :  { %1228 = vmatprep.subr.bf16.mxu0 %v4477_v25  ;;  %1269 = vmatprep.subr.bf16.mxu1 %v4481_v26  ;;  %v945_v25 = vpop.f32.mrb[6].mxu1  ;;  %v6610_v26 = vld [vmem:[#allocation27_spill] sm:$0xff] }
 0x14b   :  { %1229 = vmatpush1.bf16.msra.mxu0 %v4491_v29  ;;  %1270 = vmatpush1.bf16.msra.mxu1 %v4493_v30  ;;  %v6611_v29 = vld [vmem:[#allocation29_spill] sm:$0xff]  ;;  %v946_v30 = vpop.f32.mrb[7].mxu1 }
 0x14c   :  { %1230 = vmatprep.subr.bf16.mxu0 %v4495_v31  ;;  %1271 = vmatprep.subr.bf16.mxu1 %v4499_v32  ;;  %v6612_v31 = vld [vmem:[#allocation30_spill] sm:$0xff]  ;;  %v6613_v32 = vld [vmem:[#allocation32_spill] sm:$0xff] }
 0x14d   :  { %v6633_v30 = vld [vmem:[#allocation84_spill] sm:$0xff] }
 0x14f   :  { %1231 = vmatpush1.bf16.msra.mxu0 %v4501_v33  ;;  %1272 = vmatpush1.bf16.msra.mxu1 %v4503_v34  ;;  %v6614_v33 = vld [vmem:[#allocation31_spill] sm:$0xff]  ;;  %v6615_v34 = vld [vmem:[#allocation33_spill] sm:$0xff] }
 0x150   :  { %1322 = vmatprep.subr.bf16.mxu0 %v4505_v36  ;;  %1363 = vmatprep.subr.bf16.mxu1 %v4512_v38  ;;  %v6616_v36 = vld [vmem:[#allocation34_spill] sm:$0xff]  ;;  %v6617_v38 = vld [vmem:[#allocation36_spill] sm:$0xff] }
 0x152   :  { %1249 = vmatmul.mubr.bf16.vlgmr.msra.gmra.mrb[12].mxu0 %v641_v60  ;;  %1290 = vmatmul.mubr.bf16.vlgmr.msra.gmra.mrb[12].mxu1 %v641_v60 }
 0x153   :  { %1323 = vmatpush1.bf16.msra.mxu0 %v4516_v39  ;;  %1364 = vmatpush1.bf16.msra.mxu1 %v4525_v41  ;;  %v6618_v39 = vld [vmem:[#allocation35_spill] sm:$0xff]  ;;  %v6619_v41 = vld [vmem:[#allocation37_spill] sm:$0xff] }
 0x154   :  { %1324 = vmatprep.subr.bf16.mxu0 %v4527_v42  ;;  %1365 = vmatprep.subr.bf16.mxu1 %v4532_v44  ;;  %v6620_v42 = vld [vmem:[#allocation38_spill] sm:$0xff]  ;;  %v6621_v44 = vld [vmem:[#allocation39_spill] sm:$0xff] }
 0x155   :  { %1354 = vmatprep.mubr.bf16.mxu0 %v6546_v45  ;;  %1395 = vmatprep.mubr.bf16.mxu1 %v6546_v45 }
 0x157   :  { %1325 = vmatpush1.bf16.msra.mxu0 %v6594_v3  ;;  %1366 = vmatpush1.bf16.msra.mxu1 %v6595_v4  ;;  %v6629_v4 = vld [vmem:[#allocation81_spill] sm:$0xff] }
 0x158   :  { %1326 = vmatprep.subr.bf16.mxu0 %v6596_v5  ;;  %1367 = vmatprep.subr.bf16.mxu1 %v6597_v6  ;;  %v4890_v5 = vrot.slane %v6629_v4, %v327_v53 }
 0x15a   :  { %6630 = vst [vmem:[#allocation16_spill] sm:$0xff] %v4890_v5 }
 0x15b   :  { %1327 = vmatpush1.bf16.msra.mxu0 %v6598_v7  ;;  %1368 = vmatpush1.bf16.msra.mxu1 %v6599_v8 }
 0x15c   :  { %1328 = vmatprep.subr.bf16.mxu0 %v6600_v9  ;;  %1369 = vmatprep.subr.bf16.mxu1 %v6601_v10  ;;  %v69_v9 = vpop.permute.xlu1 %68 }
 0x15d   :  { %v123_v53 = vmul.f32 %v6633_v30, %v69_v9 }
 0x15f   :  { %1329 = vmatpush1.bf16.msra.mxu0 %v6602_v11  ;;  %1370 = vmatpush1.bf16.msra.mxu1 %v6603_v12 }
 0x160   :  { %1330 = vmatprep.subr.bf16.mxu0 %v6604_v13  ;;  %1371 = vmatprep.subr.bf16.mxu1 %v6605_v14 }
 0x163   :  { %1331 = vmatpush1.bf16.msra.mxu0 %v6606_v16  ;;  %1372 = vmatpush1.bf16.msra.mxu1 %v6607_v17 }
 0x164   :  { %1332 = vmatprep.subr.bf16.mxu0 %v6608_v19  ;;  %1373 = vmatprep.subr.bf16.mxu1 %v6609_v20 }
 0x167   :  { %1333 = vmatpush1.bf16.msra.mxu0 %v6610_v26  ;;  %1374 = vmatpush1.bf16.msra.mxu1 %v6611_v29 }
 0x168   :  { %1334 = vmatprep.subr.bf16.mxu0 %v6612_v31  ;;  %1375 = vmatprep.subr.bf16.mxu1 %v6613_v32 }
 0x16b   :  { %1335 = vmatpush1.bf16.msra.mxu0 %v6614_v33  ;;  %1376 = vmatpush1.bf16.msra.mxu1 %v6615_v34 }
 0x16c   :  { %1336 = vmatprep.subr.bf16.mxu0 %v6616_v36  ;;  %1377 = vmatprep.subr.bf16.mxu1 %v6617_v38 }
 0x16f   :  { %1337 = vmatpush1.bf16.msra.mxu0 %v6618_v39  ;;  %1378 = vmatpush1.bf16.msra.mxu1 %v6619_v41 }
 0x170   :  { %1404 = vmatprep.subr.bf16.mxu0 %v6620_v42  ;;  %1445 = vmatprep.subr.bf16.mxu1 %v6621_v44 }
 0x205   :  { %v1142_v28 = vpop.f32.mrb[8].mxu0  ;;  %v1183_v1 = vpop.f32.mrb[8].mxu1 }
 0x206   :  { %v1143_v51 = vadd.f32 %v1142_v28, %v900_v15  ;;  %v1184_v52 = vadd.f32 %v1183_v1, %v941_v22  ;;  %v1144_v62 = vpop.f32.mrb[9].mxu0  ;;  %v1185_v27 = vpop.f32.mrb[9].mxu1  ;;  %v6631_v15 = vld [vmem:[#allocation73_spill] sm:$0xff]  ;;  %v124_v28 = vmul.f32 %v6634_v35, %v69_v9 }
 0x207   :  { %v1145_v37 = vadd.f32 %v1144_v62, %v902_v18  ;;  %v1186_v46 = vadd.f32 %v1185_v27, %v943_v24  ;;  %v1146_v47 = vpop.f32.mrb[10].mxu0  ;;  %v1187_v43 = vpop.f32.mrb[10].mxu1  ;;  %v121_v18 = vmul.f32 %v6631_v15, %v69_v9  ;;  %v6632_v24 = vld [vmem:[#allocation75_spill] sm:$0xff]  ;;  %v6635_v62 = vld [vmem:[#allocation78_spill] sm:$0xff] }
 0x208   :  { %v1190_v49 = vadd.f32 %v1143_v51, %v4878_v40  ;;  %v1147_v54 = vpop.f32.mrb[11].mxu0  ;;  %v1188_v58 = vpop.f32.mrb[11].mxu1  ;;  %v1192_v6 = vadd.f32 %v1184_v52, %v4890_v5  ;;  %v122_v25 = vmul.f32 %v6632_v24, %v69_v9  ;;  %v155_v47 = vadd.f32 %v123_v53, %v4801_v61 }
 0x209   :  { %v1191_v59 = vadd.f32 %v1145_v37, %v4881_v48  ;;  %v1193_v3 = vadd.f32 %v1186_v46, %v4885_v0  ;;  %v187_v51 = vpop.permute.xlu1 %186  ;;  %v153_v27 = vadd.f32 %v121_v18, %v6635_v62  ;;  %v6636_v37 = vld [vmem:[#allocation77_spill] sm:$0xff]  ;;  %v6638_v58 = vld [vmem:[#allocation79_spill] sm:$0xff] }
 0x20a   :  { %v1194_v57 = vmul.f32 0.5, %v1190_v49  ;;  %v1196_v7 = vmul.f32 0.5, %v1192_v6  ;;  %v233_v46 = vmul.f32 %v6636_v37, %v187_v51  ;;  %v235_v43 = vmul.f32 %v4798_v50, %v187_v51  ;;  %v6637_v49 = vld [vmem:[#allocation80_spill] sm:$0xff] }
 0x20b   :  { %v1195_v60 = vmul.f32 0.5, %v1191_v59  ;;  %v154_v56 = vadd.f32 %v122_v25, %v6637_v49  ;;  %v234_v59 = vmul.f32 %v6638_v58, %v187_v51 }
 0x20c   :  { %3944 = vtanh.f32 %v1194_v57  ;;  %v6639_v57 = vld [vmem:[#allocation83_spill] sm:$0xff]  ;;  %v265_v6 = vadd.f32 %v233_v46, %v153_v27 }
 0x20d   :  { %3946 = vtanh.f32 %v1195_v60  ;;  %v156_v60 = vadd.f32 %v124_v28, %v6639_v57  ;;  %v266_v9 = vadd.f32 %v234_v59, %v154_v56  ;;  %v6641_v56 = vld [vmem:[#allocation40_spill] sm:$0xff]  ;;  %v6642_v59 = vld [vmem:[#allocation41_spill] sm:$0xff] }
 0x20e   :  { %3948 = vtanh.f32 %v1193_v3  ;;  %v6640_v3 = vld [vmem:[#allocation82_spill] sm:$0xff] }
 0x20f   :  { %3950 = vtanh.f32 %v1196_v7  ;;  %v236_v4 = vmul.f32 %v6640_v3, %v187_v51  ;;  %v267_v7 = vadd.f32 %v235_v43, %v155_v47 }
 0x216   :  { %v3945_v8 = vpop.eup %3944 }
 0x217   :  { %v1200_v10 = vmul.f32 0.5, %v3945_v8  ;;  %v3947_v11 = vpop.eup %3946 }
 0x218   :  { %v1201_v22 = vmul.f32 0.5, %v3947_v11  ;;  %v3949_v23 = vpop.eup %3948 }
 0x219   :  { %v1203_v21 = vadd.f32 0.5, %v1200_v10  ;;  %v3951_v8 = vpop.eup %3950  ;;  %v268_v10 = vadd.f32 %v236_v4, %v156_v60  ;;  %v6643_v60 = vld [vmem:[#allocation42_spill] sm:$0xff]  ;;  %v6644_v4 = vld [vmem:[#allocation43_spill] sm:$0xff] }
 0x21a   :  { %v1204_v1 = vadd.f32 0.5, %v1201_v22 }
 0x21b   :  { %v1208_v2 = vmul.f32 %v3949_v23, %v1203_v21  ;;  %v1202_v21 = vmul.f32 0.5, %v3951_v8 }
 0x21c   :  { %v1207_v52 = vmul.f32 0.0, %v1204_v1 }
 0x21d   :  { %v1205_v27 = vadd.f32 0.5, %v1202_v21 }
 0x21e   :  { %v4902_v54 = vadd.f32 %v1208_v2, %v1207_v52 }
 0x220   :  { %3952 = vtanh.f32 %v4902_v54 }
 0x225   :  { %v1250_v11 = vpop.f32.mrb[12].mxu0  ;;  %v1291_v18 = vpop.f32.mrb[12].mxu1 }
 0x226   :  { %v1298_v22 = vadd.f32 %v1250_v11, %v265_v6  ;;  %v1300_v23 = vadd.f32 %v1291_v18, %v267_v7  ;;  %v1252_v25 = vpop.f32.mrb[13].mxu0  ;;  %v1293_v53 = vpop.f32.mrb[13].mxu1  ;;  %v6646_v7 = vld [vmem:[#allocation45_spill] sm:$0xff] }
 0x227   :  { %v1299_v1 = vadd.f32 %v1252_v25, %v266_v9  ;;  %v1301_v2 = vadd.f32 %v1293_v53, %v268_v10  ;;  %v1254_v52 = vpop.f32.mrb[14].mxu0  ;;  %v1295_v28 = vpop.f32.mrb[14].mxu1  ;;  %v6647_v9 = vld [vmem:[#allocation46_spill] sm:$0xff]  ;;  %v6648_v10 = vld [vmem:[#allocation47_spill] sm:$0xff]  ;;  %v6649_v25 = vld [vmem:[#allocation48_spill] sm:$0xff] }
 0x228   :  { %v1302_v63 = vmul.f32 0.5, %v1298_v22  ;;  %v1255_v51 = vpop.f32.mrb[15].mxu0  ;;  %v1296_v3 = vpop.f32.mrb[15].mxu1  ;;  %v1304_v6 = vmul.f32 0.5, %v1300_v23  ;;  %v6650_v53 = vld [vmem:[#allocation49_spill] sm:$0xff] }
 0x229   :  { %v1303_v57 = vmul.f32 0.5, %v1299_v1  ;;  %v6645_v3 = vld [vmem:[#allocation44_spill] sm:$0xff]  ;;  %v6651_v1 = vld [vmem:[#allocation50_spill] sm:$0xff] }
 0x22a   :  { %3954 = vtanh.f32 %v1302_v63  ;;  %v3953_v46 = vpop.eup %3952  ;;  %v6653_v51 = vld [vmem:[#allocation52_spill] sm:$0xff] }
 0x22b   :  { %3956 = vtanh.f32 %v1303_v57  ;;  %v1211_v47 = vmul.f32 %v3953_v46, %v1205_v27  ;;  %v6654_v27 = vld [vmem:[#allocation53_spill] sm:$0xff]  ;;  %v6655_v46 = vld [vmem:[#allocation54_spill] sm:$0xff] }
 0x22c   :  { %3958 = vtanh.f32 %v1301_v2  ;;  %v6652_v2 = vld [vmem:[#allocation51_spill] sm:$0xff] }
 0x22d   :  { %v1321_v43 = vpack.c.bf16 %v1211_v47, %v1211_v47  ;;  %3960 = vtanh.f32 %v1304_v6  ;;  %v6656_v47 = vld [vmem:[#allocation55_spill] sm:$0xff]  ;;  %v6659_v6 = vld [vmem:[#allocation58_spill] sm:$0xff] }
 0x22f   :  { %1355 = vmatmul.mubr.bf16.vlgmr.msra.gmra.mrb[16].mxu0 %v1321_v43  ;;  %1396 = vmatmul.mubr.bf16.vlgmr.msra.gmra.mrb[16].mxu1 %v1321_v43 }
 0x230   :  { %1405 = vmatpush1.bf16.msra.mxu0 %v6641_v56  ;;  %1446 = vmatpush1.bf16.msra.mxu1 %v6642_v59  ;;  %v6657_v56 = vld [vmem:[#allocation56_spill] sm:$0xff]  ;;  %v6658_v59 = vld [vmem:[#allocation57_spill] sm:$0xff] }
 0x231   :  { %1406 = vmatprep.subr.bf16.mxu0 %v6643_v60  ;;  %1447 = vmatprep.subr.bf16.mxu1 %v6644_v4 }
 0x232   :  { %1436 = vmatprep.mubr.bf16.mxu0 %v6546_v45  ;;  %1477 = vmatprep.mubr.bf16.mxu1 %v6546_v45 }
 0x234   :  { %v3955_v63 = vpop.eup %3954  ;;  %1407 = vmatpush1.bf16.msra.mxu0 %v6645_v3  ;;  %1448 = vmatpush1.bf16.msra.mxu1 %v6646_v7  ;;  %v6662_v3 = vld [vmem:[#allocation61_spill] sm:$0xff]  ;;  %v6663_v7 = vld [vmem:[#allocation62_spill] sm:$0xff] }
 0x235   :  { %v1308_v57 = vmul.f32 0.5, %v3955_v63  ;;  %v3957_v8 = vpop.eup %3956  ;;  %1408 = vmatprep.subr.bf16.mxu0 %v6647_v9  ;;  %1449 = vmatprep.subr.bf16.mxu1 %v6648_v10 }
 0x236   :  { %v1309_v18 = vmul.f32 0.5, %v3957_v8  ;;  %v3959_v21 = vpop.eup %3958  ;;  %v6664_v8 = vld [vmem:[#allocation63_spill] sm:$0xff] }
 0x237   :  { %v1311_v11 = vadd.f32 0.5, %v1308_v57  ;;  %v3961_v43 = vpop.eup %3960  ;;  %v6661_v57 = vld [vmem:[#allocation60_spill] sm:$0xff] }
 0x238   :  { %v1312_v22 = vadd.f32 0.5, %v1309_v18  ;;  %1409 = vmatpush1.bf16.msra.mxu0 %v6649_v25  ;;  %1450 = vmatpush1.bf16.msra.mxu1 %v6650_v53  ;;  %v1310_v63 = vmul.f32 0.5, %v3961_v43  ;;  %v6668_v25 = vld [vmem:[#allocation67_spill] sm:$0xff] }
 0x239   :  { %v1316_v23 = vmul.f32 %v3959_v21, %v1311_v11  ;;  %1410 = vmatprep.subr.bf16.mxu0 %v6651_v1  ;;  %1451 = vmatprep.subr.bf16.mxu1 %v6652_v2  ;;  %v6665_v21 = vld [vmem:[#allocation64_spill] sm:$0xff]  ;;  %v4946_v43 = vld [vmem:[#allocation3 + $0x4] ss:$16 sps:$4 sm:$0xff]  }
 0x23a   :  { %v1315_v52 = vmul.f32 %v1312_v22, %v4805_v55  ;;  %v6660_v55 = vld [vmem:[#allocation59_spill] sm:$0xff]  ;;  %v1313_v11 = vadd.f32 0.5, %v1310_v63  ;;  %v6666_v22 = vld [vmem:[#allocation65_spill] sm:$0xff]  ;;  %6671 = vst [vmem:[#allocation15_spill] sm:$0xff] %v4946_v43  ;;  %v4949_v63 = vld [vmem:[#allocation3 + $0xc] ss:$16 sps:$4 sm:$0xff]  }
 0x23b   :  { %6672 = vst [vmem:[#allocation17_spill] sm:$0xff] %v4949_v63 }
 0x23c   :  { %v4923_v28 = vadd.f32 %v1316_v23, %v1315_v52  ;;  %1411 = vmatpush1.bf16.msra.mxu0 %v6653_v51  ;;  %1452 = vmatpush1.bf16.msra.mxu1 %v6654_v27  ;;  %v6667_v23 = vld [vmem:[#allocation66_spill] sm:$0xff]  ;;  %v6669_v52 = vld [vmem:[#allocation68_spill] sm:$0xff]  ;;  %v6670_v51 = vld [vmem:[#allocation69_spill] sm:$0xff] }
 0x23d   :  { %1412 = vmatprep.subr.bf16.mxu0 %v6655_v46  ;;  %1453 = vmatprep.subr.bf16.mxu1 %v6656_v47 }
 0x23e   :  { %3962 = vtanh.f32 %v4923_v28 }
 0x240   :  { %1413 = vmatpush1.bf16.msra.mxu0 %v6657_v56  ;;  %1454 = vmatpush1.bf16.msra.mxu1 %v6658_v59 }
 0x241   :  { %1414 = vmatprep.subr.bf16.mxu0 %v6659_v6  ;;  %1455 = vmatprep.subr.bf16.mxu1 %v6660_v55 }
 0x244   :  { %1415 = vmatpush1.bf16.msra.mxu0 %v6661_v57  ;;  %1456 = vmatpush1.bf16.msra.mxu1 %v6662_v3 }
 0x245   :  { %1416 = vmatprep.subr.bf16.mxu0 %v6663_v7  ;;  %1457 = vmatprep.subr.bf16.mxu1 %v6664_v8 }
 0x248   :  { %v3963_v18 = vpop.eup %3962  ;;  %1417 = vmatpush1.bf16.msra.mxu0 %v6665_v21  ;;  %1458 = vmatpush1.bf16.msra.mxu1 %v6666_v22 }
 0x249   :  { %1418 = vmatprep.subr.bf16.mxu0 %v6667_v23  ;;  %1459 = vmatprep.subr.bf16.mxu1 %v6668_v25  ;;  %v1319_v53 = vmul.f32 %v3963_v18, %v1313_v11  ;;  %v4954_v25 = vld [vmem:[#allocation3] ss:$16 sps:$4 sm:$0xff]   ;;  %v4957_v11 = vld [vmem:[#allocation3 + $0x8] ss:$16 sps:$4 sm:$0xff]   ;;  %v4960_v18 = vld [vmem:[#allocation3 + $0x24] ss:$16 sps:$4 sm:$0xff]  }
 0x24a   :  { %6673 = vst [vmem:[#allocation18_spill] sm:$0xff] %v4954_v25  ;;  %6674 = vst [vmem:[#allocation20_spill] sm:$0xff] %v4957_v11 }
 0x24b   :  { %v4944_v27 = vpack.c.bf16 %v1319_v53, %v1319_v53  ;;  %6675 = vst [vmem:[#allocation19_spill] sm:$0xff] %v4960_v18  ;;  %v4963_v53 = vld [vmem:[#allocation3 + $0x2c] ss:$16 sps:$4 sm:$0xff]  }
 0x24c   :  { %1419 = vmatpush1.bf16.msra.mxu0 %v6669_v52  ;;  %1460 = vmatpush1.bf16.msra.mxu1 %v6670_v51  ;;  %6676 = vst [vmem:[#allocation21_spill] sm:$0xff] %v4963_v53 }
 0x24d   :  { %1512 = vmatprep.subr.bf16.mxu0 %v4946_v43  ;;  %1553 = vmatprep.subr.bf16.mxu1 %v4949_v63  ;;  %v4968_v63 = vld [vmem:[#allocation3 + $0x20] ss:$16 sps:$4 sm:$0xff]   ;;  %v4983_v43 = vld [vmem:[#allocation3 + $0x48] ss:$16 sps:$4 sm:$0xff]  }
 0x24e   :  { %6677 = vst [vmem:[#allocation22_spill] sm:$0xff] %v4968_v63  ;;  %6682 = vst [vmem:[#allocation28_spill] sm:$0xff] %v4983_v43 }
 0x24f   :  { %1437 = vmatmul.mubr.bf16.vlgmr.msra.gmra.mrb[20].mxu0 %v4944_v27  ;;  %1478 = vmatmul.mubr.bf16.vlgmr.msra.gmra.mrb[20].mxu1 %v4944_v27 }
 0x250   :  { %1513 = vmatpush1.bf16.msra.mxu0 %v4954_v25  ;;  %1554 = vmatpush1.bf16.msra.mxu1 %v4957_v11  ;;  %v4971_v25 = vld [vmem:[#allocation3 + $0x28] ss:$16 sps:$4 sm:$0xff]   ;;  %v4974_v11 = vld [vmem:[#allocation3 + $0x44] ss:$16 sps:$4 sm:$0xff]  }
 0x251   :  { %1514 = vmatprep.subr.bf16.mxu0 %v4960_v18  ;;  %1555 = vmatprep.subr.bf16.mxu1 %v4963_v53  ;;  %6678 = vst [vmem:[#allocation24_spill] sm:$0xff] %v4971_v25  ;;  %6679 = vst [vmem:[#allocation23_spill] sm:$0xff] %v4974_v11  ;;  %v4977_v18 = vld [vmem:[#allocation3 + $0x4c] ss:$16 sps:$4 sm:$0xff]   ;;  %v4980_v53 = vld [vmem:[#allocation3 + $0x40] ss:$16 sps:$4 sm:$0xff]  }
 0x252   :  { %1544 = vmatprep.mubr.bf16.mxu0 %v6546_v45  ;;  %1585 = vmatprep.mubr.bf16.mxu1 %v6546_v45  ;;  %6680 = vst [vmem:[#allocation25_spill] sm:$0xff] %v4977_v18  ;;  %6681 = vst [vmem:[#allocation26_spill] sm:$0xff] %v4980_v53 }
 0x254   :  { %1515 = vmatpush1.bf16.msra.mxu0 %v4968_v63  ;;  %1556 = vmatpush1.bf16.msra.mxu1 %v4971_v25  ;;  %v4986_v63 = vld [vmem:[#allocation3 + $0x64] ss:$16 sps:$4 sm:$0xff]   ;;  %v4989_v25 = vld [vmem:[#allocation3 + $0x6c] ss:$16 sps:$4 sm:$0xff]  }
 0x255   :  { %1516 = vmatprep.subr.bf16.mxu0 %v4974_v11  ;;  %1557 = vmatprep.subr.bf16.mxu1 %v4977_v18  ;;  %6683 = vst [vmem:[#allocation27_spill] sm:$0xff] %v4986_v63  ;;  %6684 = vst [vmem:[#allocation29_spill] sm:$0xff] %v4989_v25  ;;  %v4992_v11 = vld [vmem:[#allocation3 + $0x60] ss:$16 sps:$4 sm:$0xff]   ;;  %v4995_v18 = vld [vmem:[#allocation3 + $0x68] ss:$16 sps:$4 sm:$0xff]  }
 0x256   :  { %6685 = vst [vmem:[#allocation30_spill] sm:$0xff] %v4992_v11  ;;  %6686 = vst [vmem:[#allocation32_spill] sm:$0xff] %v4995_v18 }
 0x258   :  { %1517 = vmatpush1.bf16.msra.mxu0 %v4980_v53  ;;  %1558 = vmatpush1.bf16.msra.mxu1 %v4983_v43  ;;  %v4998_v53 = vld [vmem:[#allocation3 + $0x84] ss:$16 sps:$4 sm:$0xff]   ;;  %v5001_v43 = vld [vmem:[#allocation3 + $0x8c] ss:$16 sps:$4 sm:$0xff]  }
 0x259   :  { %1518 = vmatprep.subr.bf16.mxu0 %v4986_v63  ;;  %1559 = vmatprep.subr.bf16.mxu1 %v4989_v25  ;;  %6687 = vst [vmem:[#allocation31_spill] sm:$0xff] %v4998_v53  ;;  %6688 = vst [vmem:[#allocation33_spill] sm:$0xff] %v5001_v43  ;;  %v5004_v63 = vld [vmem:[#allocation3 + $0x80] ss:$16 sps:$4 sm:$0xff]   ;;  %v5007_v25 = vld [vmem:[#allocation3 + $0x88] ss:$16 sps:$4 sm:$0xff]  }
 0x25a   :  { %6689 = vst [vmem:[#allocation34_spill] sm:$0xff] %v5004_v63  ;;  %6690 = vst [vmem:[#allocation36_spill] sm:$0xff] %v5007_v25 }
 0x25c   :  { %1519 = vmatpush1.bf16.msra.mxu0 %v4992_v11  ;;  %1560 = vmatpush1.bf16.msra.mxu1 %v4995_v18  ;;  %v5010_v11 = vld [vmem:[#allocation3 + $0xa4] ss:$16 sps:$4 sm:$0xff]   ;;  %v5013_v18 = vld [vmem:[#allocation3 + $0xac] ss:$16 sps:$4 sm:$0xff]  }
 0x25d   :  { %1520 = vmatprep.subr.bf16.mxu0 %v4998_v53  ;;  %1561 = vmatprep.subr.bf16.mxu1 %v5001_v43  ;;  %6691 = vst [vmem:[#allocation35_spill] sm:$0xff] %v5010_v11  ;;  %6692 = vst [vmem:[#allocation37_spill] sm:$0xff] %v5013_v18  ;;  %v5016_v53 = vld [vmem:[#allocation3 + $0xa0] ss:$16 sps:$4 sm:$0xff]   ;;  %v5019_v43 = vld [vmem:[#allocation3 + $0xa8] ss:$16 sps:$4 sm:$0xff]  }
 0x25e   :  { %6693 = vst [vmem:[#allocation38_spill] sm:$0xff] %v5016_v53  ;;  %6694 = vst [vmem:[#allocation39_spill] sm:$0xff] %v5019_v43 }
 0x260   :  { %1521 = vmatpush1.bf16.msra.mxu0 %v5004_v63  ;;  %1562 = vmatpush1.bf16.msra.mxu1 %v5007_v25  ;;  %v5022_v63 = vld [vmem:[#allocation3 + $0xc4] ss:$16 sps:$4 sm:$0xff]   ;;  %v5025_v25 = vld [vmem:[#allocation3 + $0xcc] ss:$16 sps:$4 sm:$0xff]  }
 0x261   :  { %1522 = vmatprep.subr.bf16.mxu0 %v5010_v11  ;;  %1563 = vmatprep.subr.bf16.mxu1 %v5013_v18  ;;  %6695 = vst [vmem:[#allocation71_spill] sm:$0xff] %v5022_v63  ;;  %6696 = vst [vmem:[#allocation72_spill] sm:$0xff] %v5025_v25  ;;  %v5028_v11 = vld [vmem:[#allocation3 + $0xc0] ss:$16 sps:$4 sm:$0xff]   ;;  %v5031_v18 = vld [vmem:[#allocation3 + $0xc8] ss:$16 sps:$4 sm:$0xff]  }
 0x262   :  { %6697 = vst [vmem:[#allocation74_spill] sm:$0xff] %v5028_v11  ;;  %6698 = vst [vmem:[#allocation81_spill] sm:$0xff] %v5031_v18 }
 0x264   :  { %1523 = vmatpush1.bf16.msra.mxu0 %v5016_v53  ;;  %1564 = vmatpush1.bf16.msra.mxu1 %v5019_v43  ;;  %v5034_v53 = vld [vmem:[#allocation3 + $0xe4] ss:$16 sps:$4 sm:$0xff]   ;;  %v5037_v43 = vld [vmem:[#allocation3 + $0xec] ss:$16 sps:$4 sm:$0xff]  }
 0x265   :  { %1524 = vmatprep.subr.bf16.mxu0 %v5022_v63  ;;  %1565 = vmatprep.subr.bf16.mxu1 %v5025_v25  ;;  %6699 = vst [vmem:[#allocation40_spill] sm:$0xff] %v5034_v53  ;;  %6700 = vst [vmem:[#allocation41_spill] sm:$0xff] %v5037_v43  ;;  %v5040_v63 = vld [vmem:[#allocation3 + $0xe0] ss:$16 sps:$4 sm:$0xff]   ;;  %v5043_v25 = vld [vmem:[#allocation3 + $0xe8] ss:$16 sps:$4 sm:$0xff]  }
 0x266   :  { %6701 = vst [vmem:[#allocation42_spill] sm:$0xff] %v5040_v63  ;;  %6702 = vst [vmem:[#allocation43_spill] sm:$0xff] %v5043_v25 }
 0x268   :  { %1525 = vmatpush1.bf16.msra.mxu0 %v5028_v11  ;;  %1566 = vmatpush1.bf16.msra.mxu1 %v5031_v18  ;;  %v5046_v11 = vld [vmem:[#allocation3 + $0x204] ss:$16 sps:$4 sm:$0xff]   ;;  %v5049_v18 = vld [vmem:[#allocation3 + $0x20c] ss:$16 sps:$4 sm:$0xff]  }
 0x269   :  { %1526 = vmatprep.subr.bf16.mxu0 %v5034_v53  ;;  %1567 = vmatprep.subr.bf16.mxu1 %v5037_v43  ;;  %6703 = vst [vmem:[#allocation44_spill] sm:$0xff] %v5046_v11  ;;  %6704 = vst [vmem:[#allocation45_spill] sm:$0xff] %v5049_v18  ;;  %v5054_v43 = vld [vmem:[#allocation3 + $0x200] ss:$16 sps:$4 sm:$0xff]  }
 0x26a   :  { %6705 = vst [vmem:[#allocation46_spill] sm:$0xff] %v5054_v43 }
 0x26c   :  { %1527 = vmatpush1.bf16.msra.mxu0 %v5040_v63  ;;  %1568 = vmatpush1.bf16.msra.mxu1 %v5043_v25  ;;  %v5057_v63 = vld [vmem:[#allocation3 + $0x208] ss:$16 sps:$4 sm:$0xff]   ;;  %v5060_v25 = vld [vmem:[#allocation3 + $0x224] ss:$16 sps:$4 sm:$0xff]  }
 0x26d   :  { %1618 = vmatprep.subr.bf16.mxu0 %v5046_v11  ;;  %1659 = vmatprep.subr.bf16.mxu1 %v5049_v18  ;;  %6706 = vst [vmem:[#allocation47_spill] sm:$0xff] %v5057_v63  ;;  %6707 = vst [vmem:[#allocation48_spill] sm:$0xff] %v5060_v25  ;;  %v5063_v11 = vld [vmem:[#allocation3 + $0x22c] ss:$16 sps:$4 sm:$0xff]   ;;  %v5083_v18 = vld [vmem:[#allocation3 + $0x248] ss:$16 sps:$4 sm:$0xff]  }
 0x26e   :  { %6708 = vst [vmem:[#allocation49_spill] sm:$0xff] %v5063_v11  ;;  %6714 = vst [vmem:[#allocation55_spill] sm:$0xff] %v5083_v18 }
 0x26f   :  { %1545 = vmatmul.mubr.bf16.vlgmr.msra.gmra.mrb[24].mxu0 %v4944_v27  ;;  %1586 = vmatmul.mubr.bf16.vlgmr.msra.gmra.mrb[24].mxu1 %v4944_v27  ;;  %v5068_v27 = vld [vmem:[#allocation3 + $0x220] ss:$16 sps:$4 sm:$0xff]  }
 0x270   :  { %1619 = vmatpush1.bf16.msra.mxu0 %v5054_v43  ;;  %1660 = vmatpush1.bf16.msra.mxu1 %v5057_v63  ;;  %6709 = vst [vmem:[#allocation50_spill] sm:$0xff] %v5068_v27  ;;  %v5071_v43 = vld [vmem:[#allocation3 + $0x228] ss:$16 sps:$4 sm:$0xff]   ;;  %v5074_v63 = vld [vmem:[#allocation3 + $0x244] ss:$16 sps:$4 sm:$0xff]  }
 0x271   :  { %1620 = vmatprep.subr.bf16.mxu0 %v5060_v25  ;;  %1661 = vmatprep.subr.bf16.mxu1 %v5063_v11  ;;  %6710 = vst [vmem:[#allocation51_spill] sm:$0xff] %v5071_v43  ;;  %6711 = vst [vmem:[#allocation52_spill] sm:$0xff] %v5074_v63  ;;  %v5077_v25 = vld [vmem:[#allocation3 + $0x24c] ss:$16 sps:$4 sm:$0xff]   ;;  %v5080_v11 = vld [vmem:[#allocation3 + $0x240] ss:$16 sps:$4 sm:$0xff]  }
 0x272   :  { %1650 = vmatprep.mubr.bf16.mxu0 %v6546_v45  ;;  %1691 = vmatprep.mubr.bf16.mxu1 %v6546_v45  ;;  %6712 = vst [vmem:[#allocation53_spill] sm:$0xff] %v5077_v25  ;;  %6713 = vst [vmem:[#allocation54_spill] sm:$0xff] %v5080_v11 }
 0x274   :  { %1621 = vmatpush1.bf16.msra.mxu0 %v5068_v27  ;;  %1662 = vmatpush1.bf16.msra.mxu1 %v5071_v43  ;;  %v5086_v27 = vld [vmem:[#allocation3 + $0x264] ss:$16 sps:$4 sm:$0xff]   ;;  %v5089_v43 = vld [vmem:[#allocation3 + $0x26c] ss:$16 sps:$4 sm:$0xff]  }
 0x275   :  { %1622 = vmatprep.subr.bf16.mxu0 %v5074_v63  ;;  %1663 = vmatprep.subr.bf16.mxu1 %v5077_v25  ;;  %6715 = vst [vmem:[#allocation56_spill] sm:$0xff] %v5086_v27  ;;  %6716 = vst [vmem:[#allocation57_spill] sm:$0xff] %v5089_v43  ;;  %v5092_v63 = vld [vmem:[#allocation3 + $0x260] ss:$16 sps:$4 sm:$0xff]  }
 0x276   :  { %6717 = vst [vmem:[#allocation58_spill] sm:$0xff] %v5092_v63 }
 0x278   :  { %1623 = vmatpush1.bf16.msra.mxu0 %v5080_v11  ;;  %1664 = vmatpush1.bf16.msra.mxu1 %v5083_v18 }
 0x279   :  { %1624 = vmatprep.subr.bf16.mxu0 %v5086_v27  ;;  %1665 = vmatprep.subr.bf16.mxu1 %v5089_v43 }
 0x27c   :  { %1625 = vmatpush1.bf16.msra.mxu0 %v5092_v63  ;;  %1666 = vmatpush1.bf16.msra.mxu1 %v6603_v12 }
 0x27d   :  { %1626 = vmatprep.subr.bf16.mxu0 %v6604_v13  ;;  %1667 = vmatprep.subr.bf16.mxu1 %v6605_v14 }
 0x280   :  { %1627 = vmatpush1.bf16.msra.mxu0 %v6606_v16  ;;  %1668 = vmatpush1.bf16.msra.mxu1 %v6607_v17 }
 0x281   :  { %1628 = vmatprep.subr.bf16.mxu0 %v6608_v19  ;;  %1669 = vmatprep.subr.bf16.mxu1 %v6609_v20 }
 0x284   :  { %1629 = vmatpush1.bf16.msra.mxu0 %v6610_v26  ;;  %1670 = vmatpush1.bf16.msra.mxu1 %v6611_v29 }
 0x285   :  { %1630 = vmatprep.subr.bf16.mxu0 %v6612_v31  ;;  %1671 = vmatprep.subr.bf16.mxu1 %v6613_v32 }
 0x288   :  { %1631 = vmatpush1.bf16.msra.mxu0 %v6614_v33  ;;  %1672 = vmatpush1.bf16.msra.mxu1 %v6615_v34 }
 0x289   :  { %1632 = vmatprep.subr.bf16.mxu0 %v6616_v36  ;;  %1673 = vmatprep.subr.bf16.mxu1 %v6617_v38 }
 0x28c   :  { %1633 = vmatpush1.bf16.msra.mxu0 %v6618_v39  ;;  %1674 = vmatpush1.bf16.msra.mxu1 %v6619_v41 }
 0x28d   :  { %1700 = vmatprep.subr.bf16.mxu0 %v6620_v42  ;;  %1741 = vmatprep.subr.bf16.mxu1 %v6621_v44 }
 0x302   :  { %v1356_v12 = vpop.f32.mrb[16].mxu0  ;;  %v1397_v13 = vpop.f32.mrb[16].mxu1 }
 0x303   :  { %v1358_v14 = vpop.f32.mrb[17].mxu0  ;;  %v1399_v16 = vpop.f32.mrb[17].mxu1 }
 0x304   :  { %v1360_v17 = vpop.f32.mrb[18].mxu0  ;;  %v1401_v19 = vpop.f32.mrb[18].mxu1 }
 0x305   :  { %v1361_v20 = vpop.f32.mrb[19].mxu0  ;;  %v1402_v26 = vpop.f32.mrb[19].mxu1 }
 0x322   :  { %v1438_v29 = vpop.f32.mrb[20].mxu0  ;;  %v1479_v31 = vpop.f32.mrb[20].mxu1 }
 0x323   :  { %v1439_v32 = vadd.f32 %v1438_v29, %v1356_v12  ;;  %v1480_v33 = vadd.f32 %v1479_v31, %v1397_v13  ;;  %v1440_v34 = vpop.f32.mrb[21].mxu0  ;;  %v1481_v36 = vpop.f32.mrb[21].mxu1 }
 0x324   :  { %v1441_v38 = vadd.f32 %v1440_v34, %v1358_v14  ;;  %v1482_v39 = vadd.f32 %v1481_v36, %v1399_v16  ;;  %v1442_v41 = vpop.f32.mrb[22].mxu0  ;;  %v1483_v42 = vpop.f32.mrb[22].mxu1 }
 0x325   :  { %v1486_v44 = vadd.f32 %v1439_v32, %v4878_v40  ;;  %v1443_v63 = vpop.f32.mrb[23].mxu0  ;;  %v1484_v43 = vpop.f32.mrb[23].mxu1  ;;  %v1488_v12 = vadd.f32 %v1480_v33, %v4890_v5 }
 0x326   :  { %v1487_v27 = vadd.f32 %v1441_v38, %v4881_v48  ;;  %v1489_v20 = vadd.f32 %v1482_v39, %v4885_v0  ;;  %v74_v43 = vpop.permute.xlu1 %73  ;;  %v191_v41 = vpop.permute.xlu0 %190 }
 0x327   :  { %v1490_v17 = vmul.f32 0.5, %v1486_v44  ;;  %v1492_v13 = vmul.f32 0.5, %v1488_v12  ;;  %v127_v36 = vmul.f32 %v6633_v30, %v74_v43  ;;  %v126_v38 = vmul.f32 %v6632_v24, %v74_v43 }
 0x328   :  { %v1491_v19 = vmul.f32 0.5, %v1487_v27  ;;  %v125_v27 = vmul.f32 %v6631_v15, %v74_v43  ;;  %v128_v39 = vmul.f32 %v6634_v35, %v74_v43  ;;  %v237_v44 = vmul.f32 %v6636_v37, %v191_v41 }
 0x329   :  { %3964 = vtanh.f32 %v1490_v17  ;;  %v238_v12 = vmul.f32 %v6638_v58, %v191_v41 }
 0x32a   :  { %3966 = vtanh.f32 %v1491_v19  ;;  %v157_v17 = vadd.f32 %v125_v27, %v6635_v62  ;;  %v159_v19 = vadd.f32 %v127_v36, %v4801_v61 }
 0x32b   :  { %3968 = vtanh.f32 %v1489_v20  ;;  %v239_v20 = vmul.f32 %v4798_v50, %v191_v41 }
 0x32c   :  { %3970 = vtanh.f32 %v1492_v13  ;;  %v158_v13 = vadd.f32 %v126_v38, %v6637_v49 }
 0x333   :  { %v3965_v14 = vpop.eup %3964 }
 0x334   :  { %v1496_v16 = vmul.f32 0.5, %v3965_v14  ;;  %v3967_v26 = vpop.eup %3966  ;;  %v6719_v14 = vld [vmem:[#allocation83_spill] sm:$0xff] }
 0x335   :  { %v1497_v31 = vmul.f32 0.5, %v3967_v26  ;;  %v3969_v63 = vpop.eup %3968 }
 0x336   :  { %v1499_v29 = vadd.f32 0.5, %v1496_v16  ;;  %v160_v16 = vadd.f32 %v128_v39, %v6719_v14 }
 0x337   :  { %v1500_v32 = vadd.f32 0.5, %v1497_v31  ;;  %v269_v31 = vadd.f32 %v237_v44, %v157_v17 }
 0x338   :  { %v1504_v34 = vmul.f32 %v3969_v63, %v1499_v29  ;;  %v3971_v29 = vpop.eup %3970  ;;  %v271_v63 = vadd.f32 %v239_v20, %v159_v19  ;;  %v5134_v20 = vld [vmem:[#allocation3 + $0x100] ss:$16 sps:$4 sm:$0xff]  }
 0x339   :  { %v1503_v33 = vmul.f32 %v1500_v32, %v4902_v54  ;;  %v6720_v54 = vld [vmem:[#allocation82_spill] sm:$0xff]  ;;  %v1498_v36 = vmul.f32 0.5, %v3971_v29 }
 0x33a   :  { %v240_v26 = vmul.f32 %v6720_v54, %v191_v41  ;;  %v5166_v29 = vld [vmem:[#allocation3 + $0x168] ss:$16 sps:$4 sm:$0xff]  }
 0x33b   :  { %v5123_v42 = vadd.f32 %v1504_v34, %v1503_v33  ;;  %v270_v34 = vadd.f32 %v238_v12, %v158_v13  ;;  %v1501_v54 = vadd.f32 0.5, %v1498_v36  ;;  %v6739_v36 = vld [vmem:[#allocation33_spill] sm:$0xff] }
 0x33c   :  { %v272_v27 = vadd.f32 %v240_v26, %v160_v16  ;;  %v5152_v16 = vld [vmem:[#allocation3 + $0x140] ss:$16 sps:$4 sm:$0xff]  }
 0x33d   :  { %6718 = vst [vmem:[#allocation59_spill] sm:$0xff] %v5123_v42  ;;  %3972 = vtanh.f32 %v5123_v42  ;;  %v5163_v26 = vld [vmem:[#allocation3 + $0x160] ss:$16 sps:$4 sm:$0xff]  }
 0x342   :  { %v1546_v43 = vpop.f32.mrb[24].mxu0  ;;  %v1587_v32 = vpop.f32.mrb[24].mxu1 }
 0x343   :  { %v1594_v33 = vadd.f32 %v1546_v43, %v269_v31  ;;  %v1596_v50 = vadd.f32 %v1587_v32, %v271_v63  ;;  %v1548_v61 = vpop.f32.mrb[25].mxu0  ;;  %v1589_v58 = vpop.f32.mrb[25].mxu1  ;;  %v6733_v31 = vld [vmem:[#allocation28_spill] sm:$0xff]  ;;  %v6734_v63 = vld [vmem:[#allocation27_spill] sm:$0xff]  ;;  %v6735_v43 = vld [vmem:[#allocation29_spill] sm:$0xff] }
 0x344   :  { %v1595_v62 = vadd.f32 %v1548_v61, %v270_v34  ;;  %v1597_v37 = vadd.f32 %v1589_v58, %v272_v27  ;;  %v1550_v42 = vpop.f32.mrb[26].mxu0  ;;  %v1591_v38 = vpop.f32.mrb[26].mxu1  ;;  %v5137_v61 = vld [vmem:[#allocation3 + $0x108] ss:$16 sps:$4 sm:$0xff]   ;;  %v5144_v58 = vld [vmem:[#allocation3 + $0x120] ss:$16 sps:$4 sm:$0xff]  }
 0x345   :  { %v1598_v49 = vmul.f32 0.5, %v1594_v33  ;;  %v1551_v39 = vpop.f32.mrb[27].mxu0  ;;  %v1592_v14 = vpop.f32.mrb[27].mxu1  ;;  %v5147_v42 = vld [vmem:[#allocation3 + $0x128] ss:$16 sps:$4 sm:$0xff]   ;;  %v6738_v27 = vld [vmem:[#allocation31_spill] sm:$0xff] }
 0x346   :  { %v1599_v41 = vmul.f32 0.5, %v1595_v62  ;;  %v1600_v62 = vmul.f32 0.5, %v1596_v50  ;;  %v6736_v32 = vld [vmem:[#allocation30_spill] sm:$0xff]  ;;  %v6737_v34 = vld [vmem:[#allocation32_spill] sm:$0xff]  ;;  %v6742_v39 = vld [vmem:[#allocation35_spill] sm:$0xff] }
 0x347   :  { %3974 = vtanh.f32 %v1598_v49  ;;  %v3973_v44 = vpop.eup %3972  ;;  %v6740_v33 = vld [vmem:[#allocation34_spill] sm:$0xff]  ;;  %v6741_v38 = vld [vmem:[#allocation36_spill] sm:$0xff] }
 0x348   :  { %3976 = vtanh.f32 %v1599_v41  ;;  %v1507_v17 = vmul.f32 %v3973_v44, %v1501_v54  ;;  %v5155_v54 = vld [vmem:[#allocation3 + $0x148] ss:$16 sps:$4 sm:$0xff]   ;;  %v6743_v41 = vld [vmem:[#allocation37_spill] sm:$0xff] }
 0x349   :  { %3978 = vtanh.f32 %v1597_v37  ;;  %v6744_v44 = vld [vmem:[#allocation38_spill] sm:$0xff] }
 0x34a   :  { %v1617_v19 = vpack.c.bf16 %v1507_v17, %v1507_v17  ;;  %3980 = vtanh.f32 %v1600_v62  ;;  %v6745_v17 = vld [vmem:[#allocation39_spill] sm:$0xff]  ;;  %v6747_v62 = vld [vmem:[#allocation72_spill] sm:$0xff] }
 0x34c   :  { %1651 = vmatmul.mubr.bf16.vlgmr.msra.gmra.mrb[28].mxu0 %v1617_v19  ;;  %1692 = vmatmul.mubr.bf16.vlgmr.msra.gmra.mrb[28].mxu1 %v1617_v19  ;;  %v6746_v19 = vld [vmem:[#allocation71_spill] sm:$0xff] }
 0x34d   :  { %1701 = vmatpush1.bf16.msra.mxu0 %v5134_v20  ;;  %1742 = vmatpush1.bf16.msra.mxu1 %v5137_v61 }
 0x34e   :  { %1702 = vmatprep.subr.bf16.mxu0 %v6643_v60  ;;  %1743 = vmatprep.subr.bf16.mxu1 %v6644_v4 }
 0x34f   :  { %1732 = vmatprep.mubr.bf16.mxu0 %v6546_v45  ;;  %1773 = vmatprep.mubr.bf16.mxu1 %v6546_v45 }
 0x351   :  { %v3975_v37 = vpop.eup %3974  ;;  %1703 = vmatpush1.bf16.msra.mxu0 %v5144_v58  ;;  %1744 = vmatpush1.bf16.msra.mxu1 %v5147_v42 }
 0x352   :  { %v1604_v49 = vmul.f32 0.5, %v3975_v37  ;;  %v3977_v12 = vpop.eup %3976  ;;  %1704 = vmatprep.subr.bf16.mxu0 %v6647_v9  ;;  %1745 = vmatprep.subr.bf16.mxu1 %v6648_v10  ;;  %v6748_v37 = vld [vmem:[#allocation74_spill] sm:$0xff] }
 0x353   :  { %v1605_v60 = vmul.f32 0.5, %v3977_v12  ;;  %v3979_v4 = vpop.eup %3978  ;;  %v6750_v12 = vld [vmem:[#allocation41_spill] sm:$0xff] }
 0x354   :  { %v1607_v50 = vadd.f32 0.5, %v1604_v49  ;;  %v6749_v49 = vld [vmem:[#allocation81_spill] sm:$0xff] }
 0x355   :  { %v1608_v13 = vadd.f32 0.5, %v1605_v60  ;;  %1705 = vmatpush1.bf16.msra.mxu0 %v5152_v16  ;;  %1746 = vmatpush1.bf16.msra.mxu1 %v5155_v54  ;;  %v6752_v60 = vld [vmem:[#allocation43_spill] sm:$0xff] }
 0x356   :  { %v1612_v14 = vmul.f32 %v3979_v4, %v1607_v50  ;;  %1706 = vmatprep.subr.bf16.mxu0 %v6651_v1  ;;  %1747 = vmatprep.subr.bf16.mxu1 %v6652_v2  ;;  %v3981_v1 = vpop.eup %3980  ;;  %v6751_v50 = vld [vmem:[#allocation42_spill] sm:$0xff]  ;;  %v6753_v4 = vld [vmem:[#allocation44_spill] sm:$0xff] }
 0x357   :  { %v1611_v9 = vmul.f32 %v1608_v13, %v4923_v28  ;;  %v1606_v2 = vmul.f32 0.5, %v3981_v1  ;;  %v6754_v13 = vld [vmem:[#allocation45_spill] sm:$0xff]  ;;  %v6757_v1 = vld [vmem:[#allocation48_spill] sm:$0xff] }
 0x359   :  { %v5161_v10 = vadd.f32 %v1612_v14, %v1611_v9  ;;  %1707 = vmatpush1.bf16.msra.mxu0 %v5163_v26  ;;  %1748 = vmatpush1.bf16.msra.mxu1 %v5166_v29  ;;  %v1609_v28 = vadd.f32 0.5, %v1606_v2  ;;  %v6755_v14 = vld [vmem:[#allocation46_spill] sm:$0xff]  ;;  %v6756_v9 = vld [vmem:[#allocation47_spill] sm:$0xff]  ;;  %v6758_v2 = vld [vmem:[#allocation49_spill] sm:$0xff] }
 0x35a   :  { %1708 = vmatprep.subr.bf16.mxu0 %v6655_v46  ;;  %1749 = vmatprep.subr.bf16.mxu1 %v6656_v47  ;;  %v6721_v47 = vld [vmem:[#allocation67_spill] sm:$0xff] }
 0x35b   :  { %3982 = vtanh.f32 %v5161_v10 }
 0x35d   :  { %1709 = vmatpush1.bf16.msra.mxu0 %v6657_v56  ;;  %1750 = vmatpush1.bf16.msra.mxu1 %v6658_v59 }
 0x35e   :  { %1710 = vmatprep.subr.bf16.mxu0 %v6659_v6  ;;  %1751 = vmatprep.subr.bf16.mxu1 %v6660_v55  ;;  %v6722_v6 = vld [vmem:[#allocation15_spill] sm:$0xff]  ;;  %v6723_v55 = vld [vmem:[#allocation17_spill] sm:$0xff] }
 0x361   :  { %1711 = vmatpush1.bf16.msra.mxu0 %v6661_v57  ;;  %1752 = vmatpush1.bf16.msra.mxu1 %v6662_v3  ;;  %v6724_v57 = vld [vmem:[#allocation18_spill] sm:$0xff]  ;;  %v6725_v3 = vld [vmem:[#allocation20_spill] sm:$0xff] }
 0x362   :  { %1712 = vmatprep.subr.bf16.mxu0 %v6663_v7  ;;  %1753 = vmatprep.subr.bf16.mxu1 %v6664_v8  ;;  %v6726_v7 = vld [vmem:[#allocation19_spill] sm:$0xff]  ;;  %v6727_v8 = vld [vmem:[#allocation21_spill] sm:$0xff] }
 0x365   :  { %v3983_v46 = vpop.eup %3982  ;;  %1713 = vmatpush1.bf16.msra.mxu0 %v6665_v21  ;;  %1754 = vmatpush1.bf16.msra.mxu1 %v6666_v22  ;;  %v6728_v21 = vld [vmem:[#allocation22_spill] sm:$0xff]  ;;  %v6729_v22 = vld [vmem:[#allocation24_spill] sm:$0xff] }
 0x366   :  { %1714 = vmatprep.subr.bf16.mxu0 %v6667_v23  ;;  %1755 = vmatprep.subr.bf16.mxu1 %v6721_v47  ;;  %v1615_v56 = vmul.f32 %v3983_v46, %v1609_v28  ;;  %v6730_v23 = vld [vmem:[#allocation23_spill] sm:$0xff]  ;;  %v6759_v28 = vld [vmem:[#allocation50_spill] sm:$0xff]  ;;  %v6761_v47 = vld [vmem:[#allocation52_spill] sm:$0xff] }
 0x367   :  { %v6760_v46 = vld [vmem:[#allocation51_spill] sm:$0xff] }
 0x368   :  { %v1616_v59 = vpack.c.bf16 %v1615_v56, %v1615_v56  ;;  %v6762_v56 = vld [vmem:[#allocation56_spill] sm:$0xff] }
 0x369   :  { %1715 = vmatpush1.bf16.msra.mxu0 %v6669_v52  ;;  %1756 = vmatpush1.bf16.msra.mxu1 %v6670_v51  ;;  %v6731_v52 = vld [vmem:[#allocation25_spill] sm:$0xff]  ;;  %v6732_v51 = vld [vmem:[#allocation26_spill] sm:$0xff] }
 0x36a   :  { %1808 = vmatprep.subr.bf16.mxu0 %v6722_v6  ;;  %1849 = vmatprep.subr.bf16.mxu1 %v6723_v55 }
 0x36c   :  { %1733 = vmatmul.mubr.bf16.vlgmr.msra.gmra.mrb[32].mxu0 %v1616_v59  ;;  %1774 = vmatmul.mubr.bf16.vlgmr.msra.gmra.mrb[32].mxu1 %v1616_v59 }
 0x36d   :  { %1809 = vmatpush1.bf16.msra.mxu0 %v6724_v57  ;;  %1850 = vmatpush1.bf16.msra.mxu1 %v6725_v3 }
 0x36e   :  { %1810 = vmatprep.subr.bf16.mxu0 %v6726_v7  ;;  %1851 = vmatprep.subr.bf16.mxu1 %v6727_v8 }
 0x36f   :  { %1840 = vmatprep.mubr.bf16.mxu0 %v6546_v45  ;;  %1881 = vmatprep.mubr.bf16.mxu1 %v6546_v45 }
 0x371   :  { %1811 = vmatpush1.bf16.msra.mxu0 %v6728_v21  ;;  %1852 = vmatpush1.bf16.msra.mxu1 %v6729_v22 }
 0x372   :  { %1812 = vmatprep.subr.bf16.mxu0 %v6730_v23  ;;  %1853 = vmatprep.subr.bf16.mxu1 %v6731_v52 }
 0x375   :  { %1813 = vmatpush1.bf16.msra.mxu0 %v6732_v51  ;;  %1854 = vmatpush1.bf16.msra.mxu1 %v6733_v31 }
 0x376   :  { %1814 = vmatprep.subr.bf16.mxu0 %v6734_v63  ;;  %1855 = vmatprep.subr.bf16.mxu1 %v6735_v43 }
 0x379   :  { %1815 = vmatpush1.bf16.msra.mxu0 %v6736_v32  ;;  %1856 = vmatpush1.bf16.msra.mxu1 %v6737_v34 }
 0x37a   :  { %1816 = vmatprep.subr.bf16.mxu0 %v6738_v27  ;;  %1857 = vmatprep.subr.bf16.mxu1 %v6739_v36 }
 0x37d   :  { %1817 = vmatpush1.bf16.msra.mxu0 %v6740_v33  ;;  %1858 = vmatpush1.bf16.msra.mxu1 %v6741_v38 }
 0x37e   :  { %1818 = vmatprep.subr.bf16.mxu0 %v6742_v39  ;;  %1859 = vmatprep.subr.bf16.mxu1 %v6743_v41 }
 0x381   :  { %1819 = vmatpush1.bf16.msra.mxu0 %v6744_v44  ;;  %1860 = vmatpush1.bf16.msra.mxu1 %v6745_v17 }
 0x382   :  { %1820 = vmatprep.subr.bf16.mxu0 %v6746_v19  ;;  %1861 = vmatprep.subr.bf16.mxu1 %v6747_v62 }
 0x385   :  { %1821 = vmatpush1.bf16.msra.mxu0 %v6748_v37  ;;  %1862 = vmatpush1.bf16.msra.mxu1 %v6749_v49 }
 0x386   :  { %1822 = vmatprep.subr.bf16.mxu0 %v5034_v53  ;;  %1863 = vmatprep.subr.bf16.mxu1 %v6750_v12 }
 0x389   :  { %1823 = vmatpush1.bf16.msra.mxu0 %v6751_v50  ;;  %1864 = vmatpush1.bf16.msra.mxu1 %v6752_v60 }
 0x38a   :  { %1914 = vmatprep.subr.bf16.mxu0 %v6753_v4  ;;  %1955 = vmatprep.subr.bf16.mxu1 %v6754_v13 }
 0x38c   :  { %1841 = vmatmul.mubr.bf16.vlgmr.msra.gmra.mrb[36].mxu0 %v1616_v59  ;;  %1882 = vmatmul.mubr.bf16.vlgmr.msra.gmra.mrb[36].mxu1 %v1616_v59  ;;  %v6763_v59 = vld [vmem:[#allocation57_spill] sm:$0xff] }
 0x38d   :  { %1915 = vmatpush1.bf16.msra.mxu0 %v6755_v14  ;;  %1956 = vmatpush1.bf16.msra.mxu1 %v6756_v9 }
 0x38e   :  { %1916 = vmatprep.subr.bf16.mxu0 %v6757_v1  ;;  %1957 = vmatprep.subr.bf16.mxu1 %v6758_v2  ;;  %v6764_v2 = vld [vmem:[#allocation58_spill] sm:$0xff] }
 0x38f   :  { %1946 = vmatprep.mubr.bf16.mxu0 %v6546_v45  ;;  %1987 = vmatprep.mubr.bf16.mxu1 %v6546_v45  ;;  %v5237_v1 = vld [vmem:[#allocation3 + $0x268] ss:$16 sps:$4 sm:$0xff]  }
 0x390   :  { %6765 = vst [vmem:[#allocation60_spill] sm:$0xff] %v5237_v1 }
 0x391   :  { %1917 = vmatpush1.bf16.msra.mxu0 %v6759_v28  ;;  %1958 = vmatpush1.bf16.msra.mxu1 %v6760_v46  ;;  %v5240_v28 = vld [vmem:[#allocation3 + $0x284] ss:$16 sps:$4 sm:$0xff]  }
 0x392   :  { %1918 = vmatprep.subr.bf16.mxu0 %v6761_v47  ;;  %1959 = vmatprep.subr.bf16.mxu1 %v5077_v25  ;;  %6766 = vst [vmem:[#allocation61_spill] sm:$0xff] %v5240_v28  ;;  %v5243_v47 = vld [vmem:[#allocation3 + $0x28c] ss:$16 sps:$4 sm:$0xff]  }
 0x393   :  { %6767 = vst [vmem:[#allocation62_spill] sm:$0xff] %v5243_v47 }
 0x395   :  { %1919 = vmatpush1.bf16.msra.mxu0 %v5080_v11  ;;  %1960 = vmatpush1.bf16.msra.mxu1 %v5083_v18  ;;  %v5246_v11 = vld [vmem:[#allocation3 + $0x280] ss:$16 sps:$4 sm:$0xff]  }
 0x396   :  { %1920 = vmatprep.subr.bf16.mxu0 %v6762_v56  ;;  %1961 = vmatprep.subr.bf16.mxu1 %v6763_v59  ;;  %6768 = vst [vmem:[#allocation63_spill] sm:$0xff] %v5246_v11  ;;  %v5249_v56 = vld [vmem:[#allocation3 + $0x288] ss:$16 sps:$4 sm:$0xff]  }
 0x397   :  { %6769 = vst [vmem:[#allocation64_spill] sm:$0xff] %v5249_v56 }
 0x399   :  { %1921 = vmatpush1.bf16.msra.mxu0 %v6764_v2  ;;  %1962 = vmatpush1.bf16.msra.mxu1 %v5237_v1  ;;  %v5252_v2 = vld [vmem:[#allocation3 + $0x2a4] ss:$16 sps:$4 sm:$0xff]   ;;  %v5255_v1 = vld [vmem:[#allocation3 + $0x2ac] ss:$16 sps:$4 sm:$0xff]  }
 0x39a   :  { %1922 = vmatprep.subr.bf16.mxu0 %v5240_v28  ;;  %1963 = vmatprep.subr.bf16.mxu1 %v5243_v47  ;;  %6770 = vst [vmem:[#allocation65_spill] sm:$0xff] %v5252_v2  ;;  %6771 = vst [vmem:[#allocation66_spill] sm:$0xff] %v5255_v1  ;;  %v5258_v28 = vld [vmem:[#allocation3 + $0x2a0] ss:$16 sps:$4 sm:$0xff]   ;;  %v5261_v47 = vld [vmem:[#allocation3 + $0x2a8] ss:$16 sps:$4 sm:$0xff]  }
 0x39b   :  { %6772 = vst [vmem:[#allocation68_spill] sm:$0xff] %v5258_v28  ;;  %6773 = vst [vmem:[#allocation69_spill] sm:$0xff] %v5261_v47 }
 0x39d   :  { %1923 = vmatpush1.bf16.msra.mxu0 %v5246_v11  ;;  %1964 = vmatpush1.bf16.msra.mxu1 %v5249_v56  ;;  %v5264_v11 = vld [vmem:[#allocation3 + $0x2c4] ss:$16 sps:$4 sm:$0xff]   ;;  %v5267_v56 = vld [vmem:[#allocation3 + $0x2cc] ss:$16 sps:$4 sm:$0xff]  }
 0x39e   :  { %1924 = vmatprep.subr.bf16.mxu0 %v5252_v2  ;;  %1965 = vmatprep.subr.bf16.mxu1 %v5255_v1  ;;  %6774 = vst [vmem:[#allocation67_spill] sm:$0xff] %v5264_v11  ;;  %6775 = vst [vmem:[#allocation15_spill] sm:$0xff] %v5267_v56  ;;  %v5270_v2 = vld [vmem:[#allocation3 + $0x2c0] ss:$16 sps:$4 sm:$0xff]   ;;  %v5273_v1 = vld [vmem:[#allocation3 + $0x2c8] ss:$16 sps:$4 sm:$0xff]  }
 0x39f   :  { %6776 = vst [vmem:[#allocation17_spill] sm:$0xff] %v5270_v2  ;;  %6777 = vst [vmem:[#allocation18_spill] sm:$0xff] %v5273_v1 }
 0x3a1   :  { %1925 = vmatpush1.bf16.msra.mxu0 %v5258_v28  ;;  %1966 = vmatpush1.bf16.msra.mxu1 %v5261_v47  ;;  %v5276_v28 = vld [vmem:[#allocation3 + $0x2e4] ss:$16 sps:$4 sm:$0xff]   ;;  %v5279_v47 = vld [vmem:[#allocation3 + $0x2ec] ss:$16 sps:$4 sm:$0xff]  }
 0x3a2   :  { %1926 = vmatprep.subr.bf16.mxu0 %v5264_v11  ;;  %1967 = vmatprep.subr.bf16.mxu1 %v5267_v56  ;;  %6778 = vst [vmem:[#allocation20_spill] sm:$0xff] %v5276_v28  ;;  %6779 = vst [vmem:[#allocation19_spill] sm:$0xff] %v5279_v47  ;;  %v5282_v11 = vld [vmem:[#allocation3 + $0x2e0] ss:$16 sps:$4 sm:$0xff]   ;;  %v5285_v56 = vld [vmem:[#allocation3 + $0x2e8] ss:$16 sps:$4 sm:$0xff]  }
 0x3a3   :  { %6780 = vst [vmem:[#allocation21_spill] sm:$0xff] %v5282_v11  ;;  %6781 = vst [vmem:[#allocation22_spill] sm:$0xff] %v5285_v56 }
 0x3a5   :  { %1927 = vmatpush1.bf16.msra.mxu0 %v5270_v2  ;;  %1968 = vmatpush1.bf16.msra.mxu1 %v5273_v1  ;;  %v5288_v2 = vld [vmem:[#allocation3 + $0x104] ss:$16 sps:$4 sm:$0xff]   ;;  %v5291_v1 = vld [vmem:[#allocation3 + $0x10c] ss:$16 sps:$4 sm:$0xff]  }
 0x3a6   :  { %1928 = vmatprep.subr.bf16.mxu0 %v5276_v28  ;;  %1969 = vmatprep.subr.bf16.mxu1 %v5279_v47  ;;  %6782 = vst [vmem:[#allocation24_spill] sm:$0xff] %v5288_v2  ;;  %6783 = vst [vmem:[#allocation23_spill] sm:$0xff] %v5291_v1 }
 0x3a9   :  { %1929 = vmatpush1.bf16.msra.mxu0 %v5282_v11  ;;  %1970 = vmatpush1.bf16.msra.mxu1 %v5285_v56 }
 0x3aa   :  { %1996 = vmatprep.subr.bf16.mxu0 %v5288_v2  ;;  %2037 = vmatprep.subr.bf16.mxu1 %v5291_v1 }
 0x41f   :  { %v1652_v28 = vpop.f32.mrb[28].mxu0  ;;  %v1693_v59 = vpop.f32.mrb[28].mxu1 }
 0x420   :  { %v1654_v18 = vpop.f32.mrb[29].mxu0  ;;  %v1695_v47 = vpop.f32.mrb[29].mxu1 }
 0x421   :  { %v1656_v25 = vpop.f32.mrb[30].mxu0  ;;  %v1697_v46 = vpop.f32.mrb[30].mxu1 }
 0x422   :  { %v1657_v9 = vpop.f32.mrb[31].mxu0  ;;  %v1698_v11 = vpop.f32.mrb[31].mxu1 }
 0x43f   :  { %v1734_v14 = vpop.f32.mrb[32].mxu0  ;;  %v1775_v13 = vpop.f32.mrb[32].mxu1 }
 0x440   :  { %v1735_v4 = vadd.f32 %v1734_v14, %v1652_v28  ;;  %v1776_v56 = vadd.f32 %v1775_v13, %v1693_v59  ;;  %v1736_v60 = vpop.f32.mrb[33].mxu0  ;;  %v1777_v50 = vpop.f32.mrb[33].mxu1  ;;  %v6784_v28 = vld [vmem:[#allocation59_spill] sm:$0xff] }
 0x441   :  { %v1737_v12 = vadd.f32 %v1736_v60, %v1654_v18  ;;  %v1778_v2 = vadd.f32 %v1777_v50, %v1695_v47  ;;  %v1738_v53 = vpop.f32.mrb[34].mxu0  ;;  %v1779_v49 = vpop.f32.mrb[34].mxu1 }
 0x442   :  { %v1782_v1 = vadd.f32 %v1735_v4, %v4878_v40  ;;  %v1739_v37 = vpop.f32.mrb[35].mxu0  ;;  %v1780_v62 = vpop.f32.mrb[35].mxu1  ;;  %v1784_v13 = vadd.f32 %v1776_v56, %v4890_v5 }
 0x443   :  { %v1783_v19 = vadd.f32 %v1737_v12, %v4881_v48  ;;  %v1785_v11 = vadd.f32 %v1778_v2, %v4885_v0  ;;  %v79_v62 = vpop.permute.xlu1 %78  ;;  %v195_v56 = vpop.permute.xlu0 %194 }
 0x444   :  { %v1786_v25 = vmul.f32 0.5, %v1782_v1  ;;  %v1788_v14 = vmul.f32 0.5, %v1784_v13  ;;  %v131_v9 = vmul.f32 %v6633_v30, %v79_v62  ;;  %v130_v1 = vmul.f32 %v6632_v24, %v79_v62 }
 0x445   :  { %v1787_v46 = vmul.f32 0.5, %v1783_v19  ;;  %v129_v19 = vmul.f32 %v6631_v15, %v79_v62  ;;  %v132_v2 = vmul.f32 %v6634_v35, %v79_v62  ;;  %v6792_v62 = vld [vmem:[#allocation83_spill] sm:$0xff] }
 0x446   :  { %3984 = vtanh.f32 %v1786_v25  ;;  %v6786_v25 = vld [vmem:[#allocation77_spill] sm:$0xff] }
 0x447   :  { %3986 = vtanh.f32 %v1787_v46  ;;  %v241_v46 = vmul.f32 %v6786_v25, %v195_v56  ;;  %v164_v35 = vadd.f32 %v132_v2, %v6792_v62 }
 0x448   :  { %3988 = vtanh.f32 %v1785_v11  ;;  %v6787_v11 = vld [vmem:[#allocation78_spill] sm:$0xff] }
 0x449   :  { %3990 = vtanh.f32 %v1788_v14  ;;  %v161_v13 = vadd.f32 %v129_v19, %v6787_v11  ;;  %v6788_v14 = vld [vmem:[#allocation86_spill] sm:$0xff] }
 0x450   :  { %v3985_v18 = vpop.eup %3984 }
 0x451   :  { %v1792_v50 = vmul.f32 0.5, %v3985_v18  ;;  %v3987_v53 = vpop.eup %3986  ;;  %v163_v18 = vadd.f32 %v131_v9, %v6788_v14 }
 0x452   :  { %v1793_v60 = vmul.f32 0.5, %v3987_v53  ;;  %v3989_v37 = vpop.eup %3988 }
 0x453   :  { %v1795_v49 = vadd.f32 0.5, %v1792_v50  ;;  %v6789_v50 = vld [vmem:[#allocation85_spill] sm:$0xff] }
 0x454   :  { %v1796_v4 = vadd.f32 0.5, %v1793_v60  ;;  %v243_v53 = vmul.f32 %v6789_v50, %v195_v56 }
 0x455   :  { %v1800_v12 = vmul.f32 %v3989_v37, %v1795_v49  ;;  %v6790_v49 = vld [vmem:[#allocation79_spill] sm:$0xff]  ;;  %v6791_v37 = vld [vmem:[#allocation80_spill] sm:$0xff] }
 0x456   :  { %v1799_v47 = vmul.f32 %v1796_v4, %v6784_v28  ;;  %v242_v60 = vmul.f32 %v6790_v49, %v195_v56  ;;  %v162_v24 = vadd.f32 %v130_v1, %v6791_v37  ;;  %v6793_v4 = vld [vmem:[#allocation82_spill] sm:$0xff]  ;;  %v275_v30 = vadd.f32 %v243_v53, %v163_v18 }
 0x457   :  { %v244_v28 = vmul.f32 %v6793_v4, %v195_v56 }
 0x458   :  { %v5303_v59 = vadd.f32 %v1800_v12, %v1799_v47  ;;  %v3991_v12 = vpop.eup %3990  ;;  %v273_v47 = vadd.f32 %v241_v46, %v161_v13  ;;  %v274_v19 = vadd.f32 %v242_v60, %v162_v24  ;;  %v5337_v60 = vld [vmem:[#allocation3 + $0x16c] ss:$16 sps:$4 sm:$0xff]  }
 0x459   :  { %v276_v11 = vadd.f32 %v244_v28, %v164_v35  ;;  %v1794_v9 = vmul.f32 0.5, %v3991_v12  ;;  %v5348_v28 = vld [vmem:[#allocation3 + $0x18c] ss:$16 sps:$4 sm:$0xff]  }
 0x45a   :  { %6785 = vst [vmem:[#allocation25_spill] sm:$0xff] %v5303_v59  ;;  %3992 = vtanh.f32 %v5303_v59 }
 0x45b   :  { %v1797_v4 = vadd.f32 0.5, %v1794_v9  ;;  %v5361_v9 = vld [vmem:[#allocation3 + $0x1ac] ss:$16 sps:$4 sm:$0xff]  }
 0x45f   :  { %v1842_v25 = vpop.f32.mrb[36].mxu0  ;;  %v1883_v15 = vpop.f32.mrb[36].mxu1 }
 0x460   :  { %v1890_v14 = vadd.f32 %v1842_v25, %v273_v47  ;;  %v1892_v50 = vadd.f32 %v1883_v15, %v275_v30  ;;  %v1844_v5 = vpop.f32.mrb[37].mxu0  ;;  %v1885_v49 = vpop.f32.mrb[37].mxu1  ;;  %v5329_v25 = vld [vmem:[#allocation3 + $0x14c] ss:$16 sps:$4 sm:$0xff]   ;;  %v5352_v47 = vld [vmem:[#allocation3 + $0x180] ss:$16 sps:$4 sm:$0xff]  }
 0x461   :  { %v1891_v0 = vadd.f32 %v1844_v5, %v274_v19  ;;  %v1893_v59 = vadd.f32 %v1885_v49, %v276_v11  ;;  %v1846_v48 = vpop.f32.mrb[38].mxu0  ;;  %v1887_v1 = vpop.f32.mrb[38].mxu1  ;;  %v5316_v5 = vld [vmem:[#allocation3 + $0x124] ss:$16 sps:$4 sm:$0xff]  }
 0x462   :  { %v1894_v37 = vmul.f32 0.5, %v1890_v14  ;;  %v1847_v2 = vpop.f32.mrb[39].mxu0  ;;  %v1888_v62 = vpop.f32.mrb[39].mxu1  ;;  %v5319_v48 = vld [vmem:[#allocation3 + $0x12c] ss:$16 sps:$4 sm:$0xff]  }
 0x463   :  { %v1895_v56 = vmul.f32 0.5, %v1891_v0  ;;  %v1896_v0 = vmul.f32 0.5, %v1892_v50  ;;  %v5334_v49 = vld [vmem:[#allocation3 + $0x164] ss:$16 sps:$4 sm:$0xff]   ;;  %v5364_v2 = vld [vmem:[#allocation3 + $0x1a0] ss:$16 sps:$4 sm:$0xff]  }
 0x464   :  { %3994 = vtanh.f32 %v1894_v37  ;;  %v3993_v46 = vpop.eup %3992  ;;  %v5358_v19 = vld [vmem:[#allocation3 + $0x1a4] ss:$16 sps:$4 sm:$0xff]  }
 0x465   :  { %3996 = vtanh.f32 %v1895_v56  ;;  %v1803_v13 = vmul.f32 %v3993_v46, %v1797_v4  ;;  %v5345_v4 = vld [vmem:[#allocation3 + $0x184] ss:$16 sps:$4 sm:$0xff]   ;;  %v5367_v56 = vld [vmem:[#allocation3 + $0x1a8] ss:$16 sps:$4 sm:$0xff]  }
 0x466   :  { %3998 = vtanh.f32 %v1893_v59  ;;  %v5326_v59 = vld [vmem:[#allocation3 + $0x144] ss:$16 sps:$4 sm:$0xff]  }
 0x467   :  { %v1913_v24 = vpack.c.bf16 %v1803_v13, %v1803_v13  ;;  %4000 = vtanh.f32 %v1896_v0  ;;  %v5370_v46 = vld [vmem:[#allocation3 + $0x1c4] ss:$16 sps:$4 sm:$0xff]   ;;  %v5373_v13 = vld [vmem:[#allocation3 + $0x1cc] ss:$16 sps:$4 sm:$0xff]  }
 0x469   :  { %1947 = vmatmul.mubr.bf16.vlgmr.msra.gmra.mrb[40].mxu0 %v1913_v24  ;;  %1988 = vmatmul.mubr.bf16.vlgmr.msra.gmra.mrb[40].mxu1 %v1913_v24 }
 0x46a   :  { %1997 = vmatpush1.bf16.msra.mxu0 %v5134_v20  ;;  %2038 = vmatpush1.bf16.msra.mxu1 %v5137_v61 }
 0x46b   :  { %1998 = vmatprep.subr.bf16.mxu0 %v5316_v5  ;;  %2039 = vmatprep.subr.bf16.mxu1 %v5319_v48 }
 0x46c   :  { %2028 = vmatprep.mubr.bf16.mxu0 %v6546_v45  ;;  %2069 = vmatprep.mubr.bf16.mxu1 %v6546_v45 }
 0x46e   :  { %v3995_v15 = vpop.eup %3994  ;;  %1999 = vmatpush1.bf16.msra.mxu0 %v5144_v58  ;;  %2040 = vmatpush1.bf16.msra.mxu1 %v5147_v42 }
 0x46f   :  { %v1900_v30 = vmul.f32 0.5, %v3995_v15  ;;  %v3997_v35 = vpop.eup %3996  ;;  %2000 = vmatprep.subr.bf16.mxu0 %v5326_v59  ;;  %2041 = vmatprep.subr.bf16.mxu1 %v5329_v25  ;;  %v5376_v15 = vld [vmem:[#allocation3 + $0x1c0] ss:$16 sps:$4 sm:$0xff]  }
 0x470   :  { %v1901_v14 = vmul.f32 0.5, %v3997_v35  ;;  %v3999_v18 = vpop.eup %3998  ;;  %v5382_v35 = vld [vmem:[#allocation3 + $0x1e4] ss:$16 sps:$4 sm:$0xff]  }
 0x471   :  { %v1903_v11 = vadd.f32 0.5, %v1900_v30  ;;  %v4001_v12 = vpop.eup %4000  ;;  %v5379_v30 = vld [vmem:[#allocation3 + $0x1c8] ss:$16 sps:$4 sm:$0xff]  }
 0x472   :  { %v1904_v50 = vadd.f32 0.5, %v1901_v14  ;;  %2001 = vmatpush1.bf16.msra.mxu0 %v5152_v16  ;;  %2042 = vmatpush1.bf16.msra.mxu1 %v5155_v54  ;;  %v1902_v1 = vmul.f32 0.5, %v4001_v12  ;;  %v6819_v12 = vld [vmem:[#allocation62_spill] sm:$0xff] }
 0x473   :  { %v1908_v53 = vmul.f32 %v3999_v18, %v1903_v11  ;;  %2002 = vmatprep.subr.bf16.mxu0 %v5334_v49  ;;  %2043 = vmatprep.subr.bf16.mxu1 %v5337_v60  ;;  %v5385_v11 = vld [vmem:[#allocation3 + $0x1ec] ss:$16 sps:$4 sm:$0xff]  }
 0x474   :  { %v1907_v37 = vmul.f32 %v1904_v50, %v5161_v10  ;;  %v5355_v10 = vld [vmem:[#allocation3 + $0x188] ss:$16 sps:$4 sm:$0xff]   ;;  %v1905_v24 = vadd.f32 0.5, %v1902_v1  ;;  %v5388_v50 = vld [vmem:[#allocation3 + $0x1e0] ss:$16 sps:$4 sm:$0xff]  }
 0x475   :  { %v6820_v1 = vld [vmem:[#allocation63_spill] sm:$0xff] }
 0x476   :  { %v5341_v62 = vadd.f32 %v1908_v53, %v1907_v37  ;;  %2003 = vmatpush1.bf16.msra.mxu0 %v5163_v26  ;;  %2044 = vmatpush1.bf16.msra.mxu1 %v5166_v29  ;;  %v5391_v53 = vld [vmem:[#allocation3 + $0x1e8] ss:$16 sps:$4 sm:$0xff]   ;;  %v6818_v37 = vld [vmem:[#allocation61_spill] sm:$0xff] }
 0x477   :  { %2004 = vmatprep.subr.bf16.mxu0 %v5345_v4  ;;  %2045 = vmatprep.subr.bf16.mxu1 %v5348_v28 }
 0x478   :  { %4002 = vtanh.f32 %v5341_v62 }
 0x47a   :  { %2005 = vmatpush1.bf16.msra.mxu0 %v5352_v47  ;;  %2046 = vmatpush1.bf16.msra.mxu1 %v5355_v10 }
 0x47b   :  { %2006 = vmatprep.subr.bf16.mxu0 %v5358_v19  ;;  %2047 = vmatprep.subr.bf16.mxu1 %v5361_v9 }
 0x47e   :  { %2007 = vmatpush1.bf16.msra.mxu0 %v5364_v2  ;;  %2048 = vmatpush1.bf16.msra.mxu1 %v5367_v56 }
 0x47f   :  { %2008 = vmatprep.subr.bf16.mxu0 %v5370_v46  ;;  %2049 = vmatprep.subr.bf16.mxu1 %v5373_v13 }
 0x482   :  { %v4003_v0 = vpop.eup %4002  ;;  %2009 = vmatpush1.bf16.msra.mxu0 %v5376_v15  ;;  %2050 = vmatpush1.bf16.msra.mxu1 %v5379_v30 }
 0x483   :  { %2010 = vmatprep.subr.bf16.mxu0 %v5382_v35  ;;  %2051 = vmatprep.subr.bf16.mxu1 %v5385_v11  ;;  %v1911_v14 = vmul.f32 %v4003_v0, %v1905_v24  ;;  %v6821_v24 = vld [vmem:[#allocation64_spill] sm:$0xff]  ;;  %v6822_v0 = vld [vmem:[#allocation65_spill] sm:$0xff] }
 0x485   :  { %v1912_v18 = vpack.c.bf16 %v1911_v14, %v1911_v14  ;;  %v6823_v14 = vld [vmem:[#allocation66_spill] sm:$0xff] }
 0x486   :  { %2011 = vmatpush1.bf16.msra.mxu0 %v5388_v50  ;;  %2052 = vmatpush1.bf16.msra.mxu1 %v5391_v53 }
 0x487   :  { %2104 = vmatprep.subr.bf16.mxu0 %v6722_v6  ;;  %2145 = vmatprep.subr.bf16.mxu1 %v6723_v55  ;;  %v6794_v6 = vld [vmem:[#allocation71_spill] sm:$0xff]  ;;  %v6795_v55 = vld [vmem:[#allocation72_spill] sm:$0xff] }
 0x489   :  { %2029 = vmatmul.mubr.bf16.vlgmr.msra.gmra.mrb[44].mxu0 %v1912_v18  ;;  %2070 = vmatmul.mubr.bf16.vlgmr.msra.gmra.mrb[44].mxu1 %v1912_v18 }
 0x48a   :  { %2105 = vmatpush1.bf16.msra.mxu0 %v6724_v57  ;;  %2146 = vmatpush1.bf16.msra.mxu1 %v6725_v3  ;;  %v6796_v57 = vld [vmem:[#allocation74_spill] sm:$0xff]  ;;  %v6797_v3 = vld [vmem:[#allocation81_spill] sm:$0xff] }
 0x48b   :  { %2106 = vmatprep.subr.bf16.mxu0 %v6726_v7  ;;  %2147 = vmatprep.subr.bf16.mxu1 %v6727_v8  ;;  %v6798_v7 = vld [vmem:[#allocation40_spill] sm:$0xff]  ;;  %v6799_v8 = vld [vmem:[#allocation41_spill] sm:$0xff] }
 0x48c   :  { %2136 = vmatprep.mubr.bf16.mxu0 %v6546_v45  ;;  %2177 = vmatprep.mubr.bf16.mxu1 %v6546_v45 }
 0x48e   :  { %2107 = vmatpush1.bf16.msra.mxu0 %v6728_v21  ;;  %2148 = vmatpush1.bf16.msra.mxu1 %v6729_v22  ;;  %v6800_v21 = vld [vmem:[#allocation42_spill] sm:$0xff]  ;;  %v6801_v22 = vld [vmem:[#allocation43_spill] sm:$0xff] }
 0x48f   :  { %2108 = vmatprep.subr.bf16.mxu0 %v6730_v23  ;;  %2149 = vmatprep.subr.bf16.mxu1 %v6731_v52  ;;  %v6802_v23 = vld [vmem:[#allocation44_spill] sm:$0xff]  ;;  %v6803_v52 = vld [vmem:[#allocation45_spill] sm:$0xff] }
 0x492   :  { %2109 = vmatpush1.bf16.msra.mxu0 %v6732_v51  ;;  %2150 = vmatpush1.bf16.msra.mxu1 %v6733_v31  ;;  %v6804_v51 = vld [vmem:[#allocation46_spill] sm:$0xff]  ;;  %v6805_v31 = vld [vmem:[#allocation47_spill] sm:$0xff] }
 0x493   :  { %2110 = vmatprep.subr.bf16.mxu0 %v6734_v63  ;;  %2151 = vmatprep.subr.bf16.mxu1 %v6735_v43  ;;  %v6806_v63 = vld [vmem:[#allocation48_spill] sm:$0xff]  ;;  %v6807_v43 = vld [vmem:[#allocation49_spill] sm:$0xff] }
 0x496   :  { %2111 = vmatpush1.bf16.msra.mxu0 %v6736_v32  ;;  %2152 = vmatpush1.bf16.msra.mxu1 %v6737_v34  ;;  %v6808_v32 = vld [vmem:[#allocation50_spill] sm:$0xff]  ;;  %v6809_v34 = vld [vmem:[#allocation51_spill] sm:$0xff] }
 0x497   :  { %2112 = vmatprep.subr.bf16.mxu0 %v6738_v27  ;;  %2153 = vmatprep.subr.bf16.mxu1 %v6739_v36  ;;  %v6810_v27 = vld [vmem:[#allocation52_spill] sm:$0xff]  ;;  %v6811_v36 = vld [vmem:[#allocation53_spill] sm:$0xff] }
 0x49a   :  { %2113 = vmatpush1.bf16.msra.mxu0 %v6740_v33  ;;  %2154 = vmatpush1.bf16.msra.mxu1 %v6741_v38  ;;  %v6812_v33 = vld [vmem:[#allocation54_spill] sm:$0xff]  ;;  %v6813_v38 = vld [vmem:[#allocation55_spill] sm:$0xff] }
 0x49b   :  { %2114 = vmatprep.subr.bf16.mxu0 %v6742_v39  ;;  %2155 = vmatprep.subr.bf16.mxu1 %v6743_v41  ;;  %v6814_v39 = vld [vmem:[#allocation56_spill] sm:$0xff]  ;;  %v6815_v41 = vld [vmem:[#allocation57_spill] sm:$0xff] }
 0x49e   :  { %2115 = vmatpush1.bf16.msra.mxu0 %v6744_v44  ;;  %2156 = vmatpush1.bf16.msra.mxu1 %v6745_v17  ;;  %v6816_v44 = vld [vmem:[#allocation58_spill] sm:$0xff]  ;;  %v6817_v17 = vld [vmem:[#allocation60_spill] sm:$0xff] }
 0x49f   :  { %2116 = vmatprep.subr.bf16.mxu0 %v6794_v6  ;;  %2157 = vmatprep.subr.bf16.mxu1 %v6795_v55  ;;  %v6825_v6 = vld [vmem:[#allocation69_spill] sm:$0xff]  ;;  %v6826_v55 = vld [vmem:[#allocation67_spill] sm:$0xff] }
 0x4a2   :  { %2117 = vmatpush1.bf16.msra.mxu0 %v6796_v57  ;;  %2158 = vmatpush1.bf16.msra.mxu1 %v6797_v3  ;;  %v6827_v57 = vld [vmem:[#allocation15_spill] sm:$0xff]  ;;  %v6828_v3 = vld [vmem:[#allocation17_spill] sm:$0xff] }
 0x4a3   :  { %2118 = vmatprep.subr.bf16.mxu0 %v6798_v7  ;;  %2159 = vmatprep.subr.bf16.mxu1 %v6799_v8  ;;  %v6829_v7 = vld [vmem:[#allocation18_spill] sm:$0xff]  ;;  %v6830_v8 = vld [vmem:[#allocation20_spill] sm:$0xff] }
 0x4a6   :  { %2119 = vmatpush1.bf16.msra.mxu0 %v6800_v21  ;;  %2160 = vmatpush1.bf16.msra.mxu1 %v6801_v22  ;;  %v6831_v21 = vld [vmem:[#allocation19_spill] sm:$0xff]  ;;  %v6832_v22 = vld [vmem:[#allocation21_spill] sm:$0xff] }
 0x4a7   :  { %2210 = vmatprep.subr.bf16.mxu0 %v6802_v23  ;;  %2251 = vmatprep.subr.bf16.mxu1 %v6803_v52  ;;  %v6833_v23 = vld [vmem:[#allocation22_spill] sm:$0xff]  ;;  %v6834_v52 = vld [vmem:[#allocation24_spill] sm:$0xff] }
 0x4a9   :  { %2137 = vmatmul.mubr.bf16.vlgmr.msra.gmra.mrb[48].mxu0 %v1912_v18  ;;  %2178 = vmatmul.mubr.bf16.vlgmr.msra.gmra.mrb[48].mxu1 %v1912_v18  ;;  %v6824_v18 = vld [vmem:[#allocation68_spill] sm:$0xff] }
 0x4aa   :  { %2211 = vmatpush1.bf16.msra.mxu0 %v6804_v51  ;;  %2252 = vmatpush1.bf16.msra.mxu1 %v6805_v31  ;;  %v6835_v51 = vld [vmem:[#allocation23_spill] sm:$0xff] }
 0x4ab   :  { %2212 = vmatprep.subr.bf16.mxu0 %v6806_v63  ;;  %2253 = vmatprep.subr.bf16.mxu1 %v6807_v43 }
 0x4ac   :  { %2242 = vmatprep.mubr.bf16.mxu0 %v6546_v45  ;;  %2283 = vmatprep.mubr.bf16.mxu1 %v6546_v45 }
 0x4ae   :  { %2213 = vmatpush1.bf16.msra.mxu0 %v6808_v32  ;;  %2254 = vmatpush1.bf16.msra.mxu1 %v6809_v34 }
 0x4af   :  { %2214 = vmatprep.subr.bf16.mxu0 %v6810_v27  ;;  %2255 = vmatprep.subr.bf16.mxu1 %v6811_v36 }
 0x4b2   :  { %2215 = vmatpush1.bf16.msra.mxu0 %v6812_v33  ;;  %2256 = vmatpush1.bf16.msra.mxu1 %v6813_v38 }
 0x4b3   :  { %2216 = vmatprep.subr.bf16.mxu0 %v6814_v39  ;;  %2257 = vmatprep.subr.bf16.mxu1 %v6815_v41 }
 0x4b6   :  { %2217 = vmatpush1.bf16.msra.mxu0 %v6816_v44  ;;  %2258 = vmatpush1.bf16.msra.mxu1 %v6817_v17 }
 0x4b7   :  { %2218 = vmatprep.subr.bf16.mxu0 %v6818_v37  ;;  %2259 = vmatprep.subr.bf16.mxu1 %v6819_v12 }
 0x4ba   :  { %2219 = vmatpush1.bf16.msra.mxu0 %v6820_v1  ;;  %2260 = vmatpush1.bf16.msra.mxu1 %v6821_v24 }
 0x4bb   :  { %2220 = vmatprep.subr.bf16.mxu0 %v6822_v0  ;;  %2261 = vmatprep.subr.bf16.mxu1 %v6823_v14 }
 0x4be   :  { %2221 = vmatpush1.bf16.msra.mxu0 %v6824_v18  ;;  %2262 = vmatpush1.bf16.msra.mxu1 %v6825_v6 }
 0x4bf   :  { %2222 = vmatprep.subr.bf16.mxu0 %v6826_v55  ;;  %2263 = vmatprep.subr.bf16.mxu1 %v6827_v57  ;;  %v6836_v55 = vld [vmem:[#allocation13_spill] sm:$0xff] }
 0x4c2   :  { %2223 = vmatpush1.bf16.msra.mxu0 %v6828_v3  ;;  %2264 = vmatpush1.bf16.msra.mxu1 %v6829_v7 }
 0x4c3   :  { %2224 = vmatprep.subr.bf16.mxu0 %v6830_v8  ;;  %2265 = vmatprep.subr.bf16.mxu1 %v6831_v21 }
 0x4c6   :  { %2225 = vmatpush1.bf16.msra.mxu0 %v6832_v22  ;;  %2266 = vmatpush1.bf16.msra.mxu1 %v6833_v23 }
 0x4c7   :  { %2292 = vmatprep.subr.bf16.mxu0 %v6834_v52  ;;  %2333 = vmatprep.subr.bf16.mxu1 %v6835_v51 }
 0x53c   :  { %v1948_v31 = vpop.f32.mrb[40].mxu0  ;;  %v1989_v63 = vpop.f32.mrb[40].mxu1 }
 0x53d   :  { %v1950_v43 = vpop.f32.mrb[41].mxu0  ;;  %v1991_v32 = vpop.f32.mrb[41].mxu1 }
 0x53e   :  { %v1952_v34 = vpop.f32.mrb[42].mxu0  ;;  %v1993_v27 = vpop.f32.mrb[42].mxu1 }
 0x53f   :  { %v1953_v36 = vpop.f32.mrb[43].mxu0  ;;  %v1994_v33 = vpop.f32.mrb[43].mxu1 }
 0x540   :  { %v6837_v36 = vld [vmem:[#allocation14_spill] sm:$0xff] }
 0x55c   :  { %v2030_v38 = vpop.f32.mrb[44].mxu0  ;;  %v2071_v39 = vpop.f32.mrb[44].mxu1 }
 0x55d   :  { %v2031_v41 = vadd.f32 %v2030_v38, %v1948_v31  ;;  %v2072_v44 = vadd.f32 %v2071_v39, %v1989_v63  ;;  %v2032_v21 = vpop.f32.mrb[45].mxu0  ;;  %v2073_v22 = vpop.f32.mrb[45].mxu1  ;;  %v6838_v31 = vld [vmem:[#allocation16_spill] sm:$0xff] }
 0x55e   :  { %v2033_v8 = vadd.f32 %v2032_v21, %v1950_v43  ;;  %v2074_v23 = vadd.f32 %v2073_v22, %v1991_v32  ;;  %v2034_v7 = vpop.f32.mrb[46].mxu0  ;;  %v2075_v52 = vpop.f32.mrb[46].mxu1  ;;  %v6840_v39 = vld [vmem:[#allocation84_spill] sm:$0xff] }
 0x55f   :  { %v2078_v51 = vadd.f32 %v2031_v41, %v4878_v40  ;;  %v2035_v3 = vpop.f32.mrb[47].mxu0  ;;  %v2076_v57 = vpop.f32.mrb[47].mxu1  ;;  %v2080_v63 = vadd.f32 %v2072_v44, %v6838_v31  ;;  %v6843_v44 = vld [vmem:[#allocation25_spill] sm:$0xff] }
 0x560   :  { %v2079_v6 = vadd.f32 %v2033_v8, %v6836_v55  ;;  %v2081_v33 = vadd.f32 %v2074_v23, %v6837_v36  ;;  %v84_v57 = vpop.permute.xlu1 %83  ;;  %v6841_v23 = vld [vmem:[#allocation75_spill] sm:$0xff]  ;;  %v199_v31 = vpop.permute.xlu0 %198  ;;  %v6847_v55 = vld [vmem:[#allocation86_spill] sm:$0xff] }
 0x561   :  { %v2082_v34 = vmul.f32 0.5, %v2078_v51  ;;  %v2084_v38 = vmul.f32 0.5, %v2080_v63  ;;  %v6839_v51 = vld [vmem:[#allocation73_spill] sm:$0xff]  ;;  %v135_v41 = vmul.f32 %v6840_v39, %v84_v57 }
 0x562   :  { %v2083_v27 = vmul.f32 0.5, %v2079_v6  ;;  %v133_v6 = vmul.f32 %v6839_v51, %v84_v57  ;;  %v6849_v51 = vld [vmem:[#allocation79_spill] sm:$0xff] }
 0x563   :  { %4004 = vtanh.f32 %v2082_v34  ;;  %v134_v34 = vmul.f32 %v6841_v23, %v84_v57  ;;  %v246_v40 = vmul.f32 %v6849_v51, %v199_v31  ;;  %v6850_v23 = vld [vmem:[#allocation80_spill] sm:$0xff] }
 0x564   :  { %4006 = vtanh.f32 %v2083_v27  ;;  %v6842_v27 = vld [vmem:[#allocation76_spill] sm:$0xff] }
 0x565   :  { %4008 = vtanh.f32 %v2081_v33  ;;  %v136_v33 = vmul.f32 %v6842_v27, %v84_v57  ;;  %v166_v39 = vadd.f32 %v134_v34, %v6850_v23  ;;  %v6851_v57 = vld [vmem:[#allocation83_spill] sm:$0xff] }
 0x566   :  { %4010 = vtanh.f32 %v2084_v38 }
 0x567   :  { %v168_v27 = vadd.f32 %v136_v33, %v6851_v57 }
 0x56d   :  { %v4005_v21 = vpop.eup %4004 }
 0x56e   :  { %v2088_v22 = vmul.f32 0.5, %v4005_v21  ;;  %v4007_v7 = vpop.eup %4006 }
 0x56f   :  { %v2089_v43 = vmul.f32 0.5, %v4007_v7  ;;  %v4009_v3 = vpop.eup %4008  ;;  %v6846_v7 = vld [vmem:[#allocation78_spill] sm:$0xff] }
 0x570   :  { %v2091_v52 = vadd.f32 0.5, %v2088_v22  ;;  %v6845_v22 = vld [vmem:[#allocation77_spill] sm:$0xff]  ;;  %v165_v36 = vadd.f32 %v133_v6, %v6846_v7  ;;  %v278_v6 = vadd.f32 %v246_v40, %v166_v39 }
 0x571   :  { %v2092_v32 = vadd.f32 0.5, %v2089_v43  ;;  %v245_v38 = vmul.f32 %v6845_v22, %v199_v31  ;;  %v167_v43 = vadd.f32 %v135_v41, %v6847_v55 }
 0x572   :  { %v2096_v8 = vmul.f32 %v4009_v3, %v2091_v52  ;;  %v6848_v52 = vld [vmem:[#allocation85_spill] sm:$0xff] }
 0x573   :  { %v2095_v63 = vmul.f32 %v2092_v32, %v6843_v44  ;;  %v247_v3 = vmul.f32 %v6848_v52, %v199_v31  ;;  %v6852_v32 = vld [vmem:[#allocation82_spill] sm:$0xff] }
 0x574   :  { %v248_v44 = vmul.f32 %v6852_v32, %v199_v31 }
 0x575   :  { %v5473_v21 = vadd.f32 %v2096_v8, %v2095_v63  ;;  %v4011_v8 = vpop.eup %4010  ;;  %v277_v63 = vadd.f32 %v245_v38, %v165_v36  ;;  %v279_v18 = vadd.f32 %v247_v3, %v167_v43  ;;  %v5539_v43 = vld [vmem:[#allocation3 + $0x2c] ss:$16 sps:$4 sm:$0xff]   ;;  %v5547_v3 = vld [vmem:[#allocation3 + $0x28] ss:$16 sps:$4 sm:$0xff]  }
 0x576   :  { %v280_v7 = vadd.f32 %v248_v44, %v168_v27  ;;  %v2090_v41 = vmul.f32 0.5, %v4011_v8  ;;  %v5525_v27 = vld [vmem:[#allocation3 + $0xc] ss:$16 sps:$4 sm:$0xff]   ;;  %v5556_v44 = vld [vmem:[#allocation3 + $0x40] ss:$16 sps:$4 sm:$0xff]  }
 0x577   :  { %6844 = vst [vmem:[#allocation26_spill] sm:$0xff] %v5473_v21  ;;  %4012 = vtanh.f32 %v5473_v21  ;;  %v5559_v8 = vld [vmem:[#allocation3 + $0x48] ss:$16 sps:$4 sm:$0xff]  }
 0x578   :  { %v2093_v32 = vadd.f32 0.5, %v2090_v41  ;;  %6853 = vst [vmem:[#allocation28_spill] sm:$0xff] %v5559_v8  ;;  %v5568_v41 = vld [vmem:[#allocation3 + $0x60] ss:$16 sps:$4 sm:$0xff]  }
 0x579   :  { %6856 = vst [vmem:[#allocation30_spill] sm:$0xff] %v5568_v41 }
 0x57c   :  { %v2138_v22 = vpop.f32.mrb[48].mxu0  ;;  %v2179_v14 = vpop.f32.mrb[48].mxu1 }
 0x57d   :  { %v2186_v55 = vadd.f32 %v2138_v22, %v277_v63  ;;  %v2188_v52 = vadd.f32 %v2179_v14, %v279_v18  ;;  %v2140_v0 = vpop.f32.mrb[49].mxu0  ;;  %v2181_v51 = vpop.f32.mrb[49].mxu1  ;;  %v5533_v22 = vld [vmem:[#allocation3 + $0x8] ss:$16 sps:$4 sm:$0xff]   ;;  %v5562_v63 = vld [vmem:[#allocation3 + $0x64] ss:$16 sps:$4 sm:$0xff]  }
 0x57e   :  { %v2187_v24 = vadd.f32 %v2140_v0, %v278_v6  ;;  %v2189_v21 = vadd.f32 %v2181_v51, %v280_v7  ;;  %v2142_v1 = vpop.f32.mrb[50].mxu0  ;;  %v2183_v34 = vpop.f32.mrb[50].mxu1  ;;  %v5536_v7 = vld [vmem:[#allocation3 + $0x24] ss:$16 sps:$4 sm:$0xff]   ;;  %6854 = vst [vmem:[#allocation27_spill] sm:$0xff] %v5562_v63 }
 0x57f   :  { %v2190_v23 = vmul.f32 0.5, %v2186_v55  ;;  %v2143_v33 = vpop.f32.mrb[51].mxu0  ;;  %v2184_v57 = vpop.f32.mrb[51].mxu1  ;;  %v2192_v1 = vmul.f32 0.5, %v2188_v52  ;;  %v5544_v52 = vld [vmem:[#allocation3 + $0x20] ss:$16 sps:$4 sm:$0xff]  }
 0x580   :  { %v2191_v31 = vmul.f32 0.5, %v2187_v24  ;;  %v5550_v57 = vld [vmem:[#allocation3 + $0x44] ss:$16 sps:$4 sm:$0xff]   ;;  %v5565_v6 = vld [vmem:[#allocation3 + $0x6c] ss:$16 sps:$4 sm:$0xff]  }
 0x581   :  { %4014 = vtanh.f32 %v2190_v23  ;;  %v4013_v36 = vpop.eup %4012  ;;  %v5522_v23 = vld [vmem:[#allocation3 + $0x4] ss:$16 sps:$4 sm:$0xff]   ;;  %6855 = vst [vmem:[#allocation29_spill] sm:$0xff] %v5565_v6  ;;  %v5571_v34 = vld [vmem:[#allocation3 + $0x68] ss:$16 sps:$4 sm:$0xff]  }
 0x582   :  { %4016 = vtanh.f32 %v2191_v31  ;;  %v2099_v38 = vmul.f32 %v4013_v36, %v2093_v32  ;;  %v5553_v32 = vld [vmem:[#allocation3 + $0x4c] ss:$16 sps:$4 sm:$0xff]   ;;  %6857 = vst [vmem:[#allocation32_spill] sm:$0xff] %v5571_v34  ;;  %v5574_v33 = vld [vmem:[#allocation3 + $0x84] ss:$16 sps:$4 sm:$0xff]  }
 0x583   :  { %4018 = vtanh.f32 %v2189_v21  ;;  %v5530_v21 = vld [vmem:[#allocation3] ss:$16 sps:$4 sm:$0xff]   ;;  %6858 = vst [vmem:[#allocation31_spill] sm:$0xff] %v5574_v33  ;;  %v5577_v31 = vld [vmem:[#allocation3 + $0x8c] ss:$16 sps:$4 sm:$0xff]  }
 0x584   :  { %v2209_v40 = vpack.c.bf16 %v2099_v38, %v2099_v38  ;;  %4020 = vtanh.f32 %v2192_v1  ;;  %6859 = vst [vmem:[#allocation33_spill] sm:$0xff] %v5577_v31  ;;  %v5580_v36 = vld [vmem:[#allocation3 + $0x80] ss:$16 sps:$4 sm:$0xff]   ;;  %v5583_v38 = vld [vmem:[#allocation3 + $0x88] ss:$16 sps:$4 sm:$0xff]  }
 0x585   :  { %6860 = vst [vmem:[#allocation34_spill] sm:$0xff] %v5580_v36  ;;  %6861 = vst [vmem:[#allocation36_spill] sm:$0xff] %v5583_v38  ;;  %v5589_v1 = vld [vmem:[#allocation3 + $0xac] ss:$16 sps:$4 sm:$0xff]  }
 0x586   :  { %2243 = vmatmul.mubr.bf16.vlgmr.msra.gmra.mrb[52].mxu0 %v2209_v40  ;;  %2284 = vmatmul.mubr.bf16.vlgmr.msra.gmra.mrb[52].mxu1 %v2209_v40  ;;  %v5586_v40 = vld [vmem:[#allocation3 + $0xa4] ss:$16 sps:$4 sm:$0xff]   ;;  %6863 = vst [vmem:[#allocation37_spill] sm:$0xff] %v5589_v1 }
 0x587   :  { %2293 = vmatpush1.bf16.msra.mxu0 %v5134_v20  ;;  %2334 = vmatpush1.bf16.msra.mxu1 %v5137_v61  ;;  %6862 = vst [vmem:[#allocation35_spill] sm:$0xff] %v5586_v40 }
 0x588   :  { %2294 = vmatprep.subr.bf16.mxu0 %v5316_v5  ;;  %2335 = vmatprep.subr.bf16.mxu1 %v5319_v48 }
 0x589   :  { %2324 = vmatprep.mubr.bf16.mxu0 %v6546_v45  ;;  %2365 = vmatprep.mubr.bf16.mxu1 %v6546_v45 }
 0x58b   :  { %v4015_v24 = vpop.eup %4014  ;;  %2295 = vmatpush1.bf16.msra.mxu0 %v5144_v58  ;;  %2336 = vmatpush1.bf16.msra.mxu1 %v5147_v42 }
 0x58c   :  { %v2196_v0 = vmul.f32 0.5, %v4015_v24  ;;  %v4017_v14 = vpop.eup %4016  ;;  %2296 = vmatprep.subr.bf16.mxu0 %v5326_v59  ;;  %2337 = vmatprep.subr.bf16.mxu1 %v5329_v25  ;;  %v5592_v24 = vld [vmem:[#allocation3 + $0xa0] ss:$16 sps:$4 sm:$0xff]  }
 0x58d   :  { %v2197_v61 = vmul.f32 0.5, %v4017_v14  ;;  %v4019_v18 = vpop.eup %4018  ;;  %6864 = vst [vmem:[#allocation38_spill] sm:$0xff] %v5592_v24  ;;  %v5598_v14 = vld [vmem:[#allocation3 + $0xc4] ss:$16 sps:$4 sm:$0xff]  }
 0x58e   :  { %v2199_v20 = vadd.f32 0.5, %v2196_v0  ;;  %v5595_v0 = vld [vmem:[#allocation3 + $0xa8] ss:$16 sps:$4 sm:$0xff]   ;;  %6866 = vst [vmem:[#allocation59_spill] sm:$0xff] %v5598_v14 }
 0x58f   :  { %v2200_v55 = vadd.f32 0.5, %v2197_v61  ;;  %2297 = vmatpush1.bf16.msra.mxu0 %v5152_v16  ;;  %2338 = vmatpush1.bf16.msra.mxu1 %v5155_v54  ;;  %v4021_v16 = vpop.eup %4020  ;;  %6865 = vst [vmem:[#allocation39_spill] sm:$0xff] %v5595_v0  ;;  %v5604_v61 = vld [vmem:[#allocation3 + $0xc0] ss:$16 sps:$4 sm:$0xff]  }
 0x590   :  { %v2204_v51 = vmul.f32 %v4019_v18, %v2199_v20  ;;  %2298 = vmatprep.subr.bf16.mxu0 %v5334_v49  ;;  %2339 = vmatprep.subr.bf16.mxu1 %v5337_v60  ;;  %v2198_v54 = vmul.f32 0.5, %v4021_v16  ;;  %v5601_v20 = vld [vmem:[#allocation3 + $0xcc] ss:$16 sps:$4 sm:$0xff]   ;;  %6868 = vst [vmem:[#allocation72_spill] sm:$0xff] %v5604_v61  ;;  %v5607_v18 = vld [vmem:[#allocation3 + $0xc8] ss:$16 sps:$4 sm:$0xff]  }
 0x591   :  { %v2203_v58 = vmul.f32 %v2200_v55, %v5341_v62  ;;  %6867 = vst [vmem:[#allocation71_spill] sm:$0xff] %v5601_v20  ;;  %6869 = vst [vmem:[#allocation74_spill] sm:$0xff] %v5607_v18  ;;  %v5610_v55 = vld [vmem:[#allocation3 + $0xe4] ss:$16 sps:$4 sm:$0xff]   ;;  %v5619_v16 = vld [vmem:[#allocation3 + $0xe8] ss:$16 sps:$4 sm:$0xff]  }
 0x592   :  { %6870 = vst [vmem:[#allocation81_spill] sm:$0xff] %v5610_v55  ;;  %6873 = vst [vmem:[#allocation42_spill] sm:$0xff] %v5619_v16 }
 0x593   :  { %v5499_v42 = vadd.f32 %v2204_v51, %v2203_v58  ;;  %2299 = vmatpush1.bf16.msra.mxu0 %v5163_v26  ;;  %2340 = vmatpush1.bf16.msra.mxu1 %v5166_v29  ;;  %v2201_v26 = vadd.f32 0.5, %v2198_v54  ;;  %v5613_v51 = vld [vmem:[#allocation3 + $0xec] ss:$16 sps:$4 sm:$0xff]   ;;  %v5616_v58 = vld [vmem:[#allocation3 + $0xe0] ss:$16 sps:$4 sm:$0xff]  }
 0x594   :  { %2300 = vmatprep.subr.bf16.mxu0 %v5345_v4  ;;  %2341 = vmatprep.subr.bf16.mxu1 %v5348_v28  ;;  %6871 = vst [vmem:[#allocation40_spill] sm:$0xff] %v5613_v51  ;;  %6872 = vst [vmem:[#allocation41_spill] sm:$0xff] %v5616_v58  ;;  %v5622_v54 = vld [vmem:[#allocation3 + $0x204] ss:$16 sps:$4 sm:$0xff]  }
 0x595   :  { %4022 = vtanh.f32 %v5499_v42  ;;  %6874 = vst [vmem:[#allocation43_spill] sm:$0xff] %v5622_v54 }
 0x597   :  { %2301 = vmatpush1.bf16.msra.mxu0 %v5352_v47  ;;  %2342 = vmatpush1.bf16.msra.mxu1 %v5355_v10 }
 0x598   :  { %2302 = vmatprep.subr.bf16.mxu0 %v5358_v19  ;;  %2343 = vmatprep.subr.bf16.mxu1 %v5361_v9 }
 0x59b   :  { %2303 = vmatpush1.bf16.msra.mxu0 %v5364_v2  ;;  %2344 = vmatpush1.bf16.msra.mxu1 %v5367_v56 }
 0x59c   :  { %2304 = vmatprep.subr.bf16.mxu0 %v5370_v46  ;;  %2345 = vmatprep.subr.bf16.mxu1 %v5373_v13 }
 0x59f   :  { %v4023_v29 = vpop.eup %4022  ;;  %2305 = vmatpush1.bf16.msra.mxu0 %v5376_v15  ;;  %2346 = vmatpush1.bf16.msra.mxu1 %v5379_v30 }
 0x5a0   :  { %2306 = vmatprep.subr.bf16.mxu0 %v5382_v35  ;;  %2347 = vmatprep.subr.bf16.mxu1 %v5385_v11  ;;  %v2207_v62 = vmul.f32 %v4023_v29, %v2201_v26  ;;  %v5625_v26 = vld [vmem:[#allocation3 + $0x20c] ss:$16 sps:$4 sm:$0xff]   ;;  %v5630_v29 = vld [vmem:[#allocation3 + $0x200] ss:$16 sps:$4 sm:$0xff]  }
 0x5a1   :  { %6875 = vst [vmem:[#allocation44_spill] sm:$0xff] %v5625_v26  ;;  %6876 = vst [vmem:[#allocation45_spill] sm:$0xff] %v5630_v29 }
 0x5a2   :  { %v5518_v39 = vpack.c.bf16 %v2207_v62, %v2207_v62  ;;  %v5633_v62 = vld [vmem:[#allocation3 + $0x208] ss:$16 sps:$4 sm:$0xff]  }
 0x5a3   :  { %2307 = vmatpush1.bf16.msra.mxu0 %v5388_v50  ;;  %2348 = vmatpush1.bf16.msra.mxu1 %v5391_v53  ;;  %6877 = vst [vmem:[#allocation46_spill] sm:$0xff] %v5633_v62 }
 0x5a4   :  { %2400 = vmatprep.subr.bf16.mxu0 %v5522_v23  ;;  %2441 = vmatprep.subr.bf16.mxu1 %v5525_v27 }
 0x5a6   :  { %2325 = vmatmul.mubr.bf16.vlgmr.msra.gmra.mrb[56].mxu0 %v5518_v39  ;;  %2366 = vmatmul.mubr.bf16.vlgmr.msra.gmra.mrb[56].mxu1 %v5518_v39 }
 0x5a7   :  { %2401 = vmatpush1.bf16.msra.mxu0 %v5530_v21  ;;  %2442 = vmatpush1.bf16.msra.mxu1 %v5533_v22 }
 0x5a8   :  { %2402 = vmatprep.subr.bf16.mxu0 %v5536_v7  ;;  %2443 = vmatprep.subr.bf16.mxu1 %v5539_v43 }
 0x5a9   :  { %2432 = vmatprep.mubr.bf16.mxu0 %v6546_v45  ;;  %2473 = vmatprep.mubr.bf16.mxu1 %v6546_v45 }
 0x5ab   :  { %2403 = vmatpush1.bf16.msra.mxu0 %v5544_v52  ;;  %2444 = vmatpush1.bf16.msra.mxu1 %v5547_v3 }
 0x5ac   :  { %2404 = vmatprep.subr.bf16.mxu0 %v5550_v57  ;;  %2445 = vmatprep.subr.bf16.mxu1 %v5553_v32 }
 0x5af   :  { %2405 = vmatpush1.bf16.msra.mxu0 %v5556_v44  ;;  %2446 = vmatpush1.bf16.msra.mxu1 %v5559_v8 }
 0x5b0   :  { %2406 = vmatprep.subr.bf16.mxu0 %v5562_v63  ;;  %2447 = vmatprep.subr.bf16.mxu1 %v5565_v6 }
 0x5b3   :  { %2407 = vmatpush1.bf16.msra.mxu0 %v5568_v41  ;;  %2448 = vmatpush1.bf16.msra.mxu1 %v5571_v34 }
 0x5b4   :  { %2408 = vmatprep.subr.bf16.mxu0 %v5574_v33  ;;  %2449 = vmatprep.subr.bf16.mxu1 %v5577_v31  ;;  %v6906_v31 = vld [vmem:[#allocation13_spill] sm:$0xff] }
 0x5b7   :  { %2409 = vmatpush1.bf16.msra.mxu0 %v5580_v36  ;;  %2450 = vmatpush1.bf16.msra.mxu1 %v5583_v38 }
 0x5b8   :  { %2410 = vmatprep.subr.bf16.mxu0 %v5586_v40  ;;  %2451 = vmatprep.subr.bf16.mxu1 %v5589_v1  ;;  %v6905_v40 = vld [vmem:[#allocation12_spill] sm:$0xff] }
 0x5bb   :  { %2411 = vmatpush1.bf16.msra.mxu0 %v5592_v24  ;;  %2452 = vmatpush1.bf16.msra.mxu1 %v5595_v0 }
 0x5bc   :  { %2412 = vmatprep.subr.bf16.mxu0 %v5598_v14  ;;  %2453 = vmatprep.subr.bf16.mxu1 %v5601_v20 }
 0x5bf   :  { %2413 = vmatpush1.bf16.msra.mxu0 %v5604_v61  ;;  %2454 = vmatpush1.bf16.msra.mxu1 %v5607_v18 }
 0x5c0   :  { %2414 = vmatprep.subr.bf16.mxu0 %v5610_v55  ;;  %2455 = vmatprep.subr.bf16.mxu1 %v5613_v51  ;;  %v6895_v51 = vld [vmem:[#allocation67_spill] sm:$0xff] }
 0x5c3   :  { %2415 = vmatpush1.bf16.msra.mxu0 %v5616_v58  ;;  %2456 = vmatpush1.bf16.msra.mxu1 %v5619_v16  ;;  %v5636_v16 = vld [vmem:[#allocation3 + $0x224] ss:$16 sps:$4 sm:$0xff]   ;;  %v6893_v58 = vld [vmem:[#allocation68_spill] sm:$0xff] }
 0x5c4   :  { %2506 = vmatprep.subr.bf16.mxu0 %v5622_v54  ;;  %2547 = vmatprep.subr.bf16.mxu1 %v5625_v26  ;;  %6878 = vst [vmem:[#allocation47_spill] sm:$0xff] %v5636_v16  ;;  %v5639_v54 = vld [vmem:[#allocation3 + $0x22c] ss:$16 sps:$4 sm:$0xff]   ;;  %v5659_v26 = vld [vmem:[#allocation3 + $0x248] ss:$16 sps:$4 sm:$0xff]  }
 0x5c5   :  { %6879 = vst [vmem:[#allocation48_spill] sm:$0xff] %v5639_v54  ;;  %6885 = vst [vmem:[#allocation54_spill] sm:$0xff] %v5659_v26 }
 0x5c6   :  { %2433 = vmatmul.mubr.bf16.vlgmr.msra.gmra.mrb[60].mxu0 %v5518_v39  ;;  %2474 = vmatmul.mubr.bf16.vlgmr.msra.gmra.mrb[60].mxu1 %v5518_v39  ;;  %v5644_v39 = vld [vmem:[#allocation3 + $0x220] ss:$16 sps:$4 sm:$0xff]  }
 0x5c7   :  { %2507 = vmatpush1.bf16.msra.mxu0 %v5630_v29  ;;  %2548 = vmatpush1.bf16.msra.mxu1 %v5633_v62  ;;  %6880 = vst [vmem:[#allocation49_spill] sm:$0xff] %v5644_v39  ;;  %v5647_v29 = vld [vmem:[#allocation3 + $0x228] ss:$16 sps:$4 sm:$0xff]   ;;  %v5650_v62 = vld [vmem:[#allocation3 + $0x244] ss:$16 sps:$4 sm:$0xff]  }
 0x5c8   :  { %2508 = vmatprep.subr.bf16.mxu0 %v5636_v16  ;;  %2549 = vmatprep.subr.bf16.mxu1 %v5639_v54  ;;  %6881 = vst [vmem:[#allocation50_spill] sm:$0xff] %v5647_v29  ;;  %6882 = vst [vmem:[#allocation51_spill] sm:$0xff] %v5650_v62  ;;  %v5653_v16 = vld [vmem:[#allocation3 + $0x24c] ss:$16 sps:$4 sm:$0xff]   ;;  %v5656_v54 = vld [vmem:[#allocation3 + $0x240] ss:$16 sps:$4 sm:$0xff]  }
 0x5c9   :  { %2538 = vmatprep.mubr.bf16.mxu0 %v6546_v45  ;;  %2579 = vmatprep.mubr.bf16.mxu1 %v6546_v45  ;;  %6883 = vst [vmem:[#allocation52_spill] sm:$0xff] %v5653_v16  ;;  %6884 = vst [vmem:[#allocation53_spill] sm:$0xff] %v5656_v54 }
 0x5cb   :  { %2509 = vmatpush1.bf16.msra.mxu0 %v5644_v39  ;;  %2550 = vmatpush1.bf16.msra.mxu1 %v5647_v29  ;;  %v5662_v39 = vld [vmem:[#allocation3 + $0x264] ss:$16 sps:$4 sm:$0xff]   ;;  %v5665_v29 = vld [vmem:[#allocation3 + $0x26c] ss:$16 sps:$4 sm:$0xff]  }
 0x5cc   :  { %2510 = vmatprep.subr.bf16.mxu0 %v5650_v62  ;;  %2551 = vmatprep.subr.bf16.mxu1 %v5653_v16  ;;  %6886 = vst [vmem:[#allocation55_spill] sm:$0xff] %v5662_v39  ;;  %6887 = vst [vmem:[#allocation56_spill] sm:$0xff] %v5665_v29  ;;  %v5668_v62 = vld [vmem:[#allocation3 + $0x260] ss:$16 sps:$4 sm:$0xff]  }
 0x5cd   :  { %6888 = vst [vmem:[#allocation57_spill] sm:$0xff] %v5668_v62  ;;  %v6891_v16 = vld [vmem:[#allocation65_spill] sm:$0xff] }
 0x5cf   :  { %2511 = vmatpush1.bf16.msra.mxu0 %v5656_v54  ;;  %2552 = vmatpush1.bf16.msra.mxu1 %v5659_v26  ;;  %v6889_v54 = vld [vmem:[#allocation63_spill] sm:$0xff]  ;;  %v6890_v26 = vld [vmem:[#allocation64_spill] sm:$0xff] }
 0x5d0   :  { %2512 = vmatprep.subr.bf16.mxu0 %v5662_v39  ;;  %2553 = vmatprep.subr.bf16.mxu1 %v5665_v29  ;;  %v6892_v39 = vld [vmem:[#allocation66_spill] sm:$0xff]  ;;  %v6894_v29 = vld [vmem:[#allocation69_spill] sm:$0xff] }
 0x5d3   :  { %2513 = vmatpush1.bf16.msra.mxu0 %v5668_v62  ;;  %2554 = vmatpush1.bf16.msra.mxu1 %v6817_v17  ;;  %v6896_v62 = vld [vmem:[#allocation15_spill] sm:$0xff]  ;;  %v6897_v17 = vld [vmem:[#allocation17_spill] sm:$0xff] }
 0x5d4   :  { %2514 = vmatprep.subr.bf16.mxu0 %v6818_v37  ;;  %2555 = vmatprep.subr.bf16.mxu1 %v6819_v12  ;;  %v6898_v37 = vld [vmem:[#allocation18_spill] sm:$0xff]  ;;  %v6899_v12 = vld [vmem:[#allocation20_spill] sm:$0xff] }
 0x5d7   :  { %2515 = vmatpush1.bf16.msra.mxu0 %v6889_v54  ;;  %2556 = vmatpush1.bf16.msra.mxu1 %v6890_v26  ;;  %v6900_v54 = vld [vmem:[#allocation19_spill] sm:$0xff]  ;;  %v6901_v26 = vld [vmem:[#allocation21_spill] sm:$0xff] }
 0x5d8   :  { %2516 = vmatprep.subr.bf16.mxu0 %v6891_v16  ;;  %2557 = vmatprep.subr.bf16.mxu1 %v6892_v39  ;;  %v6902_v16 = vld [vmem:[#allocation22_spill] sm:$0xff]  ;;  %v6903_v39 = vld [vmem:[#allocation24_spill] sm:$0xff] }
 0x5db   :  { %2517 = vmatpush1.bf16.msra.mxu0 %v6893_v58  ;;  %2558 = vmatpush1.bf16.msra.mxu1 %v6894_v29  ;;  %v6904_v58 = vld [vmem:[#allocation23_spill] sm:$0xff] }
 0x5dc   :  { %2518 = vmatprep.subr.bf16.mxu0 %v6895_v51  ;;  %2559 = vmatprep.subr.bf16.mxu1 %v6896_v62 }
 0x5df   :  { %2519 = vmatpush1.bf16.msra.mxu0 %v6897_v17  ;;  %2560 = vmatpush1.bf16.msra.mxu1 %v6898_v37 }
 0x5e0   :  { %2520 = vmatprep.subr.bf16.mxu0 %v6899_v12  ;;  %2561 = vmatprep.subr.bf16.mxu1 %v6900_v54 }
 0x5e3   :  { %2521 = vmatpush1.bf16.msra.mxu0 %v6901_v26  ;;  %2562 = vmatpush1.bf16.msra.mxu1 %v6902_v16 }
 0x5e4   :  { %2588 = vmatprep.subr.bf16.mxu0 %v6903_v39  ;;  %2629 = vmatprep.subr.bf16.mxu1 %v6904_v58 }
 0x659   :  { %v2244_v29 = vpop.f32.mrb[52].mxu0  ;;  %v2285_v51 = vpop.f32.mrb[52].mxu1 }
 0x65a   :  { %v2246_v55 = vpop.f32.mrb[53].mxu0  ;;  %v2287_v62 = vpop.f32.mrb[53].mxu1 }
 0x65b   :  { %v2248_v18 = vpop.f32.mrb[54].mxu0  ;;  %v2289_v17 = vpop.f32.mrb[54].mxu1 }
 0x65c   :  { %v2249_v61 = vpop.f32.mrb[55].mxu0  ;;  %v2290_v37 = vpop.f32.mrb[55].mxu1 }
 0x65d   :  { %v6907_v61 = vld [vmem:[#allocation14_spill] sm:$0xff] }
 0x679   :  { %v2326_v20 = vpop.f32.mrb[56].mxu0  ;;  %v2367_v12 = vpop.f32.mrb[56].mxu1 }
 0x67a   :  { %v2327_v14 = vadd.f32 %v2326_v20, %v2244_v29  ;;  %v2368_v54 = vadd.f32 %v2367_v12, %v2285_v51  ;;  %v2328_v0 = vpop.f32.mrb[57].mxu0  ;;  %v2369_v26 = vpop.f32.mrb[57].mxu1  ;;  %v6908_v20 = vld [vmem:[#allocation16_spill] sm:$0xff] }
 0x67b   :  { %v2329_v24 = vadd.f32 %v2328_v0, %v2246_v55  ;;  %v2370_v16 = vadd.f32 %v2369_v26, %v2287_v62  ;;  %v2330_v1 = vpop.f32.mrb[58].mxu0  ;;  %v2371_v39 = vpop.f32.mrb[58].mxu1  ;;  %v6909_v26 = vld [vmem:[#allocation73_spill] sm:$0xff] }
 0x67c   :  { %v2374_v58 = vadd.f32 %v2327_v14, %v6905_v40  ;;  %v2331_v38 = vpop.f32.mrb[59].mxu0  ;;  %v2372_v36 = vpop.f32.mrb[59].mxu1  ;;  %v2376_v29 = vadd.f32 %v2368_v54, %v6908_v20  ;;  %v6910_v39 = vld [vmem:[#allocation84_spill] sm:$0xff]  ;;  %v6913_v54 = vld [vmem:[#allocation26_spill] sm:$0xff] }
 0x67d   :  { %v2375_v33 = vadd.f32 %v2329_v24, %v6906_v31  ;;  %v2377_v37 = vadd.f32 %v2370_v16, %v6907_v61  ;;  %v89_v36 = vpop.permute.xlu1 %88  ;;  %v6911_v16 = vld [vmem:[#allocation75_spill] sm:$0xff]  ;;  %v203_v20 = vpop.permute.xlu0 %202  ;;  %v6917_v31 = vld [vmem:[#allocation86_spill] sm:$0xff] }
 0x67e   :  { %v2378_v18 = vmul.f32 0.5, %v2374_v58  ;;  %v2380_v51 = vmul.f32 0.5, %v2376_v29  ;;  %v139_v58 = vmul.f32 %v6910_v39, %v89_v36 }
 0x67f   :  { %v2379_v17 = vmul.f32 0.5, %v2375_v33  ;;  %v137_v33 = vmul.f32 %v6909_v26, %v89_v36  ;;  %v6919_v26 = vld [vmem:[#allocation79_spill] sm:$0xff] }
 0x680   :  { %4024 = vtanh.f32 %v2378_v18  ;;  %v138_v18 = vmul.f32 %v6911_v16, %v89_v36  ;;  %v250_v40 = vmul.f32 %v6919_v26, %v203_v20  ;;  %v6920_v16 = vld [vmem:[#allocation80_spill] sm:$0xff] }
 0x681   :  { %4026 = vtanh.f32 %v2379_v17  ;;  %v6912_v17 = vld [vmem:[#allocation76_spill] sm:$0xff] }
 0x682   :  { %4028 = vtanh.f32 %v2377_v37  ;;  %v140_v37 = vmul.f32 %v6912_v17, %v89_v36  ;;  %v170_v39 = vadd.f32 %v138_v18, %v6920_v16  ;;  %v6921_v36 = vld [vmem:[#allocation83_spill] sm:$0xff] }
 0x683   :  { %4030 = vtanh.f32 %v2380_v51 }
 0x684   :  { %v172_v17 = vadd.f32 %v140_v37, %v6921_v36 }
 0x68a   :  { %v4025_v0 = vpop.eup %4024 }
 0x68b   :  { %v2384_v55 = vmul.f32 0.5, %v4025_v0  ;;  %v4027_v1 = vpop.eup %4026 }
 0x68c   :  { %v2385_v14 = vmul.f32 0.5, %v4027_v1  ;;  %v4029_v38 = vpop.eup %4028  ;;  %v6916_v1 = vld [vmem:[#allocation78_spill] sm:$0xff] }
 0x68d   :  { %v2387_v62 = vadd.f32 0.5, %v2384_v55  ;;  %v6915_v55 = vld [vmem:[#allocation77_spill] sm:$0xff]  ;;  %v169_v61 = vadd.f32 %v137_v33, %v6916_v1  ;;  %v282_v33 = vadd.f32 %v250_v40, %v170_v39 }
 0x68e   :  { %v2388_v12 = vadd.f32 0.5, %v2385_v14  ;;  %v249_v51 = vmul.f32 %v6915_v55, %v203_v20  ;;  %v171_v14 = vadd.f32 %v139_v58, %v6917_v31 }
 0x68f   :  { %v2392_v24 = vmul.f32 %v4029_v38, %v2387_v62  ;;  %v6918_v62 = vld [vmem:[#allocation85_spill] sm:$0xff] }
 0x690   :  { %v2391_v29 = vmul.f32 %v2388_v12, %v6913_v54  ;;  %v251_v38 = vmul.f32 %v6918_v62, %v203_v20  ;;  %v6922_v12 = vld [vmem:[#allocation82_spill] sm:$0xff] }
 0x691   :  { %v252_v54 = vmul.f32 %v6922_v12, %v203_v20 }
 0x692   :  { %v5699_v0 = vadd.f32 %v2392_v24, %v2391_v29  ;;  %v4031_v24 = vpop.eup %4030  ;;  %v281_v29 = vadd.f32 %v249_v51, %v169_v61  ;;  %v283_v34 = vadd.f32 %v251_v38, %v171_v14  ;;  %v5739_v14 = vld [vmem:[#allocation3 + $0x160] ss:$16 sps:$4 sm:$0xff]  }
 0x693   :  { %v284_v1 = vadd.f32 %v252_v54, %v172_v17  ;;  %v2386_v58 = vmul.f32 0.5, %v4031_v24  ;;  %v6936_v38 = vld [vmem:[#allocation59_spill] sm:$0xff]  ;;  %v6939_v54 = vld [vmem:[#allocation74_spill] sm:$0xff]  ;;  %v6940_v24 = vld [vmem:[#allocation81_spill] sm:$0xff] }
 0x694   :  { %6914 = vst [vmem:[#allocation58_spill] sm:$0xff] %v5699_v0  ;;  %4032 = vtanh.f32 %v5699_v0 }
 0x695   :  { %v2389_v12 = vadd.f32 0.5, %v2386_v58  ;;  %v6943_v58 = vld [vmem:[#allocation42_spill] sm:$0xff] }
 0x699   :  { %v2434_v55 = vpop.f32.mrb[60].mxu0  ;;  %v2475_v41 = vpop.f32.mrb[60].mxu1 }
 0x69a   :  { %v2482_v31 = vadd.f32 %v2434_v55, %v281_v29  ;;  %v2484_v62 = vadd.f32 %v2475_v41, %v283_v34  ;;  %v2436_v6 = vpop.f32.mrb[61].mxu0  ;;  %v2477_v26 = vpop.f32.mrb[61].mxu1  ;;  %v5710_v41 = vld [vmem:[#allocation3 + $0x100] ss:$16 sps:$4 sm:$0xff]   ;;  %v6941_v29 = vld [vmem:[#allocation40_spill] sm:$0xff] }
 0x69b   :  { %v2483_v63 = vadd.f32 %v2436_v6, %v282_v33  ;;  %v2485_v0 = vadd.f32 %v2477_v26, %v284_v1  ;;  %v2438_v8 = vpop.f32.mrb[62].mxu0  ;;  %v2479_v18 = vpop.f32.mrb[62].mxu1  ;;  %v5713_v6 = vld [vmem:[#allocation3 + $0x108] ss:$16 sps:$4 sm:$0xff]   ;;  %v5728_v55 = vld [vmem:[#allocation3 + $0x140] ss:$16 sps:$4 sm:$0xff]  }
 0x69c   :  { %v2486_v16 = vmul.f32 0.5, %v2482_v31  ;;  %v2439_v37 = vpop.f32.mrb[63].mxu0  ;;  %v2480_v36 = vpop.f32.mrb[63].mxu1  ;;  %v2488_v8 = vmul.f32 0.5, %v2484_v62  ;;  %v5720_v31 = vld [vmem:[#allocation3 + $0x120] ss:$16 sps:$4 sm:$0xff]  }
 0x69d   :  { %v2487_v20 = vmul.f32 0.5, %v2483_v63  ;;  %v5723_v26 = vld [vmem:[#allocation3 + $0x128] ss:$16 sps:$4 sm:$0xff]   ;;  %v6937_v36 = vld [vmem:[#allocation71_spill] sm:$0xff]  ;;  %v6942_v33 = vld [vmem:[#allocation41_spill] sm:$0xff] }
 0x69e   :  { %4034 = vtanh.f32 %v2486_v16  ;;  %v4033_v61 = vpop.eup %4032  ;;  %v5731_v1 = vld [vmem:[#allocation3 + $0x148] ss:$16 sps:$4 sm:$0xff]   ;;  %v6944_v18 = vld [vmem:[#allocation43_spill] sm:$0xff] }
 0x69f   :  { %4036 = vtanh.f32 %v2487_v20  ;;  %v2395_v51 = vmul.f32 %v4033_v61, %v2389_v12  ;;  %v5742_v62 = vld [vmem:[#allocation3 + $0x168] ss:$16 sps:$4 sm:$0xff]   ;;  %v6946_v20 = vld [vmem:[#allocation45_spill] sm:$0xff] }
 0x6a0   :  { %4038 = vtanh.f32 %v2485_v0  ;;  %v6938_v12 = vld [vmem:[#allocation72_spill] sm:$0xff]  ;;  %v6947_v61 = vld [vmem:[#allocation46_spill] sm:$0xff] }
 0x6a1   :  { %v2505_v40 = vpack.c.bf16 %v2395_v51, %v2395_v51  ;;  %4040 = vtanh.f32 %v2488_v8  ;;  %v6945_v37 = vld [vmem:[#allocation44_spill] sm:$0xff]  ;;  %v6948_v51 = vld [vmem:[#allocation47_spill] sm:$0xff]  ;;  %v6950_v8 = vld [vmem:[#allocation49_spill] sm:$0xff] }
 0x6a3   :  { %2539 = vmatmul.mubr.bf16.vlgmr.msra.gmra.mrb[64].mxu0 %v2505_v40  ;;  %2580 = vmatmul.mubr.bf16.vlgmr.msra.gmra.mrb[64].mxu1 %v2505_v40  ;;  %v6949_v40 = vld [vmem:[#allocation48_spill] sm:$0xff] }
 0x6a4   :  { %2589 = vmatpush1.bf16.msra.mxu0 %v5710_v41  ;;  %2630 = vmatpush1.bf16.msra.mxu1 %v5713_v6 }
 0x6a5   :  { %2590 = vmatprep.subr.bf16.mxu0 %v5316_v5  ;;  %2631 = vmatprep.subr.bf16.mxu1 %v5319_v48 }
 0x6a6   :  { %2620 = vmatprep.mubr.bf16.mxu0 %v6546_v45  ;;  %2661 = vmatprep.mubr.bf16.mxu1 %v6546_v45 }
 0x6a8   :  { %v4035_v63 = vpop.eup %4034  ;;  %2591 = vmatpush1.bf16.msra.mxu0 %v5720_v31  ;;  %2632 = vmatpush1.bf16.msra.mxu1 %v5723_v26 }
 0x6a9   :  { %v2492_v34 = vmul.f32 0.5, %v4035_v63  ;;  %v4037_v39 = vpop.eup %4036  ;;  %2592 = vmatprep.subr.bf16.mxu0 %v5326_v59  ;;  %2633 = vmatprep.subr.bf16.mxu1 %v5329_v25  ;;  %v6951_v63 = vld [vmem:[#allocation50_spill] sm:$0xff] }
 0x6aa   :  { %v2493_v48 = vmul.f32 0.5, %v4037_v39  ;;  %v4039_v16 = vpop.eup %4038  ;;  %v6953_v39 = vld [vmem:[#allocation52_spill] sm:$0xff] }
 0x6ab   :  { %v2495_v5 = vadd.f32 0.5, %v2492_v34  ;;  %v6952_v34 = vld [vmem:[#allocation51_spill] sm:$0xff] }
 0x6ac   :  { %v2496_v17 = vadd.f32 0.5, %v2493_v48  ;;  %2593 = vmatpush1.bf16.msra.mxu0 %v5728_v55  ;;  %2634 = vmatpush1.bf16.msra.mxu1 %v5731_v1  ;;  %v6955_v48 = vld [vmem:[#allocation54_spill] sm:$0xff] }
 0x6ad   :  { %v2500_v0 = vmul.f32 %v4039_v16, %v2495_v5  ;;  %2594 = vmatprep.subr.bf16.mxu0 %v5334_v49  ;;  %2635 = vmatprep.subr.bf16.mxu1 %v5337_v60  ;;  %v4041_v49 = vpop.eup %4040  ;;  %v6954_v5 = vld [vmem:[#allocation53_spill] sm:$0xff]  ;;  %v6956_v16 = vld [vmem:[#allocation55_spill] sm:$0xff] }
 0x6ae   :  { %v2499_v59 = vmul.f32 %v2496_v17, %v5499_v42  ;;  %v2494_v60 = vmul.f32 0.5, %v4041_v49  ;;  %v6935_v42 = vld [vmem:[#allocation39_spill] sm:$0xff]  ;;  %v6957_v17 = vld [vmem:[#allocation56_spill] sm:$0xff] }
 0x6af   :  { %v5816_v49 = vld [vmem:[#allocation3 + $0x284] ss:$16 sps:$4 sm:$0xff]  }
 0x6b0   :  { %v5737_v25 = vadd.f32 %v2500_v0, %v2499_v59  ;;  %2595 = vmatpush1.bf16.msra.mxu0 %v5739_v14  ;;  %2636 = vmatpush1.bf16.msra.mxu1 %v5742_v62  ;;  %v6958_v0 = vld [vmem:[#allocation57_spill] sm:$0xff]  ;;  %v5813_v59 = vld [vmem:[#allocation3 + $0x268] ss:$16 sps:$4 sm:$0xff]   ;;  %6960 = vst [vmem:[#allocation61_spill] sm:$0xff] %v5816_v49 }
 0x6b1   :  { %2596 = vmatprep.subr.bf16.mxu0 %v5345_v4  ;;  %2637 = vmatprep.subr.bf16.mxu1 %v5348_v28  ;;  %v2497_v4 = vadd.f32 0.5, %v2494_v60  ;;  %6959 = vst [vmem:[#allocation60_spill] sm:$0xff] %v5813_v59  ;;  %v5819_v60 = vld [vmem:[#allocation3 + $0x28c] ss:$16 sps:$4 sm:$0xff]  }
 0x6b2   :  { %4042 = vtanh.f32 %v5737_v25  ;;  %6961 = vst [vmem:[#allocation62_spill] sm:$0xff] %v5819_v60 }
 0x6b4   :  { %2597 = vmatpush1.bf16.msra.mxu0 %v5352_v47  ;;  %2638 = vmatpush1.bf16.msra.mxu1 %v5355_v10 }
 0x6b5   :  { %2598 = vmatprep.subr.bf16.mxu0 %v5358_v19  ;;  %2639 = vmatprep.subr.bf16.mxu1 %v5361_v9  ;;  %v6923_v19 = vld [vmem:[#allocation28_spill] sm:$0xff]  ;;  %v6924_v9 = vld [vmem:[#allocation27_spill] sm:$0xff] }
 0x6b8   :  { %2599 = vmatpush1.bf16.msra.mxu0 %v5364_v2  ;;  %2640 = vmatpush1.bf16.msra.mxu1 %v5367_v56  ;;  %v6925_v2 = vld [vmem:[#allocation29_spill] sm:$0xff]  ;;  %v6926_v56 = vld [vmem:[#allocation30_spill] sm:$0xff] }
 0x6b9   :  { %2600 = vmatprep.subr.bf16.mxu0 %v5370_v46  ;;  %2641 = vmatprep.subr.bf16.mxu1 %v5373_v13  ;;  %v6927_v46 = vld [vmem:[#allocation32_spill] sm:$0xff]  ;;  %v6928_v13 = vld [vmem:[#allocation31_spill] sm:$0xff] }
 0x6bc   :  { %v4043_v28 = vpop.eup %4042  ;;  %2601 = vmatpush1.bf16.msra.mxu0 %v5376_v15  ;;  %2642 = vmatpush1.bf16.msra.mxu1 %v5379_v30  ;;  %v6929_v15 = vld [vmem:[#allocation33_spill] sm:$0xff]  ;;  %v6930_v30 = vld [vmem:[#allocation34_spill] sm:$0xff] }
 0x6bd   :  { %2602 = vmatprep.subr.bf16.mxu0 %v5382_v35  ;;  %2643 = vmatprep.subr.bf16.mxu1 %v5385_v11  ;;  %v2503_v47 = vmul.f32 %v4043_v28, %v2497_v4  ;;  %v6931_v35 = vld [vmem:[#allocation36_spill] sm:$0xff]  ;;  %v6932_v11 = vld [vmem:[#allocation35_spill] sm:$0xff] }
 0x6be   :  { %v5822_v4 = vld [vmem:[#allocation3 + $0x280] ss:$16 sps:$4 sm:$0xff]   ;;  %v5825_v28 = vld [vmem:[#allocation3 + $0x288] ss:$16 sps:$4 sm:$0xff]  }
 0x6bf   :  { %v2504_v10 = vpack.c.bf16 %v2503_v47, %v2503_v47  ;;  %6962 = vst [vmem:[#allocation25_spill] sm:$0xff] %v5822_v4  ;;  %6963 = vst [vmem:[#allocation63_spill] sm:$0xff] %v5825_v28  ;;  %v5828_v47 = vld [vmem:[#allocation3 + $0x2a4] ss:$16 sps:$4 sm:$0xff]  }
 0x6c0   :  { %2603 = vmatpush1.bf16.msra.mxu0 %v5388_v50  ;;  %2644 = vmatpush1.bf16.msra.mxu1 %v5391_v53  ;;  %v6933_v50 = vld [vmem:[#allocation37_spill] sm:$0xff]  ;;  %v6934_v53 = vld [vmem:[#allocation38_spill] sm:$0xff]  ;;  %6964 = vst [vmem:[#allocation64_spill] sm:$0xff] %v5828_v47 }
 0x6c1   :  { %2696 = vmatprep.subr.bf16.mxu0 %v5522_v23  ;;  %2737 = vmatprep.subr.bf16.mxu1 %v5525_v27 }
 0x6c3   :  { %2621 = vmatmul.mubr.bf16.vlgmr.msra.gmra.mrb[68].mxu0 %v2504_v10  ;;  %2662 = vmatmul.mubr.bf16.vlgmr.msra.gmra.mrb[68].mxu1 %v2504_v10 }
 0x6c4   :  { %2697 = vmatpush1.bf16.msra.mxu0 %v5530_v21  ;;  %2738 = vmatpush1.bf16.msra.mxu1 %v5533_v22 }
 0x6c5   :  { %2698 = vmatprep.subr.bf16.mxu0 %v5536_v7  ;;  %2739 = vmatprep.subr.bf16.mxu1 %v5539_v43 }
 0x6c6   :  { %2728 = vmatprep.mubr.bf16.mxu0 %v6546_v45  ;;  %2769 = vmatprep.mubr.bf16.mxu1 %v6546_v45 }
 0x6c8   :  { %2699 = vmatpush1.bf16.msra.mxu0 %v5544_v52  ;;  %2740 = vmatpush1.bf16.msra.mxu1 %v5547_v3 }
 0x6c9   :  { %2700 = vmatprep.subr.bf16.mxu0 %v5550_v57  ;;  %2741 = vmatprep.subr.bf16.mxu1 %v5553_v32 }
 0x6cc   :  { %2701 = vmatpush1.bf16.msra.mxu0 %v5556_v44  ;;  %2742 = vmatpush1.bf16.msra.mxu1 %v6923_v19 }
 0x6cd   :  { %2702 = vmatprep.subr.bf16.mxu0 %v6924_v9  ;;  %2743 = vmatprep.subr.bf16.mxu1 %v6925_v2 }
 0x6d0   :  { %2703 = vmatpush1.bf16.msra.mxu0 %v6926_v56  ;;  %2744 = vmatpush1.bf16.msra.mxu1 %v6927_v46 }
 0x6d1   :  { %2704 = vmatprep.subr.bf16.mxu0 %v6928_v13  ;;  %2745 = vmatprep.subr.bf16.mxu1 %v6929_v15 }
 0x6d4   :  { %2705 = vmatpush1.bf16.msra.mxu0 %v6930_v30  ;;  %2746 = vmatpush1.bf16.msra.mxu1 %v6931_v35 }
 0x6d5   :  { %2706 = vmatprep.subr.bf16.mxu0 %v6932_v11  ;;  %2747 = vmatprep.subr.bf16.mxu1 %v6933_v50 }
 0x6d8   :  { %2707 = vmatpush1.bf16.msra.mxu0 %v6934_v53  ;;  %2748 = vmatpush1.bf16.msra.mxu1 %v6935_v42 }
 0x6d9   :  { %2708 = vmatprep.subr.bf16.mxu0 %v6936_v38  ;;  %2749 = vmatprep.subr.bf16.mxu1 %v6937_v36 }
 0x6dc   :  { %2709 = vmatpush1.bf16.msra.mxu0 %v6938_v12  ;;  %2750 = vmatpush1.bf16.msra.mxu1 %v6939_v54 }
 0x6dd   :  { %2710 = vmatprep.subr.bf16.mxu0 %v6940_v24  ;;  %2751 = vmatprep.subr.bf16.mxu1 %v6941_v29 }
 0x6e0   :  { %2711 = vmatpush1.bf16.msra.mxu0 %v6942_v33  ;;  %2752 = vmatpush1.bf16.msra.mxu1 %v6943_v58  ;;  %v6979_v58 = vld [vmem:[#allocation13_spill] sm:$0xff] }
 0x6e1   :  { %2802 = vmatprep.subr.bf16.mxu0 %v6944_v18  ;;  %2843 = vmatprep.subr.bf16.mxu1 %v6945_v37 }
 0x6e3   :  { %2729 = vmatmul.mubr.bf16.vlgmr.msra.gmra.mrb[72].mxu0 %v2504_v10  ;;  %2770 = vmatmul.mubr.bf16.vlgmr.msra.gmra.mrb[72].mxu1 %v2504_v10  ;;  %v5831_v10 = vld [vmem:[#allocation3 + $0x2ac] ss:$16 sps:$4 sm:$0xff]  }
 0x6e4   :  { %2803 = vmatpush1.bf16.msra.mxu0 %v6946_v20  ;;  %2844 = vmatpush1.bf16.msra.mxu1 %v6947_v61  ;;  %6965 = vst [vmem:[#allocation65_spill] sm:$0xff] %v5831_v10  ;;  %v6978_v20 = vld [vmem:[#allocation12_spill] sm:$0xff] }
 0x6e5   :  { %2804 = vmatprep.subr.bf16.mxu0 %v6948_v51  ;;  %2845 = vmatprep.subr.bf16.mxu1 %v6949_v40 }
 0x6e6   :  { %2834 = vmatprep.mubr.bf16.mxu0 %v6546_v45  ;;  %2875 = vmatprep.mubr.bf16.mxu1 %v6546_v45 }
 0x6e8   :  { %2805 = vmatpush1.bf16.msra.mxu0 %v6950_v8  ;;  %2846 = vmatpush1.bf16.msra.mxu1 %v6951_v63 }
 0x6e9   :  { %2806 = vmatprep.subr.bf16.mxu0 %v6952_v34  ;;  %2847 = vmatprep.subr.bf16.mxu1 %v6953_v39 }
 0x6ec   :  { %2807 = vmatpush1.bf16.msra.mxu0 %v6954_v5  ;;  %2848 = vmatpush1.bf16.msra.mxu1 %v6955_v48 }
 0x6ed   :  { %2808 = vmatprep.subr.bf16.mxu0 %v6956_v16  ;;  %2849 = vmatprep.subr.bf16.mxu1 %v6957_v17 }
 0x6f0   :  { %2809 = vmatpush1.bf16.msra.mxu0 %v6958_v0  ;;  %2850 = vmatpush1.bf16.msra.mxu1 %v5813_v59 }
 0x6f1   :  { %2810 = vmatprep.subr.bf16.mxu0 %v5816_v49  ;;  %2851 = vmatprep.subr.bf16.mxu1 %v5819_v60  ;;  %v5834_v49 = vld [vmem:[#allocation3 + $0x2a0] ss:$16 sps:$4 sm:$0xff]   ;;  %v5837_v60 = vld [vmem:[#allocation3 + $0x2a8] ss:$16 sps:$4 sm:$0xff]  }
 0x6f2   :  { %6966 = vst [vmem:[#allocation66_spill] sm:$0xff] %v5834_v49  ;;  %6967 = vst [vmem:[#allocation68_spill] sm:$0xff] %v5837_v60 }
 0x6f4   :  { %2811 = vmatpush1.bf16.msra.mxu0 %v5822_v4  ;;  %2852 = vmatpush1.bf16.msra.mxu1 %v5825_v28  ;;  %v5840_v4 = vld [vmem:[#allocation3 + $0x2c4] ss:$16 sps:$4 sm:$0xff]   ;;  %v5843_v28 = vld [vmem:[#allocation3 + $0x2cc] ss:$16 sps:$4 sm:$0xff]  }
 0x6f5   :  { %2812 = vmatprep.subr.bf16.mxu0 %v5828_v47  ;;  %2853 = vmatprep.subr.bf16.mxu1 %v5831_v10  ;;  %6968 = vst [vmem:[#allocation69_spill] sm:$0xff] %v5840_v4  ;;  %6969 = vst [vmem:[#allocation67_spill] sm:$0xff] %v5843_v28  ;;  %v5846_v47 = vld [vmem:[#allocation3 + $0x2c0] ss:$16 sps:$4 sm:$0xff]   ;;  %v5849_v10 = vld [vmem:[#allocation3 + $0x2c8] ss:$16 sps:$4 sm:$0xff]  }
 0x6f6   :  { %6970 = vst [vmem:[#allocation15_spill] sm:$0xff] %v5846_v47  ;;  %6971 = vst [vmem:[#allocation17_spill] sm:$0xff] %v5849_v10 }
 0x6f8   :  { %2813 = vmatpush1.bf16.msra.mxu0 %v5834_v49  ;;  %2854 = vmatpush1.bf16.msra.mxu1 %v5837_v60  ;;  %v5852_v49 = vld [vmem:[#allocation3 + $0x2e4] ss:$16 sps:$4 sm:$0xff]   ;;  %v5855_v60 = vld [vmem:[#allocation3 + $0x2ec] ss:$16 sps:$4 sm:$0xff]  }
 0x6f9   :  { %2814 = vmatprep.subr.bf16.mxu0 %v5840_v4  ;;  %2855 = vmatprep.subr.bf16.mxu1 %v5843_v28  ;;  %6972 = vst [vmem:[#allocation18_spill] sm:$0xff] %v5852_v49  ;;  %6973 = vst [vmem:[#allocation20_spill] sm:$0xff] %v5855_v60  ;;  %v5858_v4 = vld [vmem:[#allocation3 + $0x2e0] ss:$16 sps:$4 sm:$0xff]   ;;  %v5861_v28 = vld [vmem:[#allocation3 + $0x2e8] ss:$16 sps:$4 sm:$0xff]  }
 0x6fa   :  { %6974 = vst [vmem:[#allocation19_spill] sm:$0xff] %v5858_v4  ;;  %6975 = vst [vmem:[#allocation21_spill] sm:$0xff] %v5861_v28 }
 0x6fc   :  { %2815 = vmatpush1.bf16.msra.mxu0 %v5846_v47  ;;  %2856 = vmatpush1.bf16.msra.mxu1 %v5849_v10  ;;  %v5864_v47 = vld [vmem:[#allocation3 + $0x104] ss:$16 sps:$4 sm:$0xff]   ;;  %v5867_v10 = vld [vmem:[#allocation3 + $0x10c] ss:$16 sps:$4 sm:$0xff]  }
 0x6fd   :  { %2816 = vmatprep.subr.bf16.mxu0 %v5852_v49  ;;  %2857 = vmatprep.subr.bf16.mxu1 %v5855_v60  ;;  %6976 = vst [vmem:[#allocation22_spill] sm:$0xff] %v5864_v47  ;;  %6977 = vst [vmem:[#allocation24_spill] sm:$0xff] %v5867_v10 }
 0x700   :  { %2817 = vmatpush1.bf16.msra.mxu0 %v5858_v4  ;;  %2858 = vmatpush1.bf16.msra.mxu1 %v5861_v28 }
 0x701   :  { %2884 = vmatprep.subr.bf16.mxu0 %v5864_v47  ;;  %2925 = vmatprep.subr.bf16.mxu1 %v5867_v10 }
 0x776   :  { %v2540_v49 = vpop.f32.mrb[64].mxu0  ;;  %v2581_v59 = vpop.f32.mrb[64].mxu1 }
 0x777   :  { %v2542_v0 = vpop.f32.mrb[65].mxu0  ;;  %v2583_v60 = vpop.f32.mrb[65].mxu1 }
 0x778   :  { %v2544_v17 = vpop.f32.mrb[66].mxu0  ;;  %v2585_v16 = vpop.f32.mrb[66].mxu1 }
 0x779   :  { %v2545_v48 = vpop.f32.mrb[67].mxu0  ;;  %v2586_v4 = vpop.f32.mrb[67].mxu1 }
 0x77a   :  { %v6980_v48 = vld [vmem:[#allocation14_spill] sm:$0xff] }
 0x796   :  { %v2622_v5 = vpop.f32.mrb[68].mxu0  ;;  %v2663_v39 = vpop.f32.mrb[68].mxu1 }
 0x797   :  { %v2623_v34 = vadd.f32 %v2622_v5, %v2540_v49  ;;  %v2664_v28 = vadd.f32 %v2663_v39, %v2581_v59  ;;  %v2624_v63 = vpop.f32.mrb[69].mxu0  ;;  %v2665_v8 = vpop.f32.mrb[69].mxu1  ;;  %v6981_v39 = vld [vmem:[#allocation16_spill] sm:$0xff]  ;;  %v6982_v49 = vld [vmem:[#allocation73_spill] sm:$0xff] }
 0x798   :  { %v2625_v40 = vadd.f32 %v2624_v63, %v2542_v0  ;;  %v2666_v47 = vadd.f32 %v2665_v8, %v2583_v60  ;;  %v2626_v51 = vpop.f32.mrb[70].mxu0  ;;  %v2667_v61 = vpop.f32.mrb[70].mxu1  ;;  %v6983_v60 = vld [vmem:[#allocation84_spill] sm:$0xff] }
 0x799   :  { %v2670_v10 = vadd.f32 %v2623_v34, %v6978_v20  ;;  %v2627_v37 = vpop.f32.mrb[71].mxu0  ;;  %v2668_v18 = vpop.f32.mrb[71].mxu1  ;;  %v2672_v5 = vadd.f32 %v2664_v28, %v6981_v39  ;;  %v6986_v28 = vld [vmem:[#allocation58_spill] sm:$0xff] }
 0x79a   :  { %v2671_v33 = vadd.f32 %v2625_v40, %v6979_v58  ;;  %v2673_v4 = vadd.f32 %v2666_v47, %v6980_v48  ;;  %v94_v18 = vpop.permute.xlu1 %93  ;;  %v6984_v47 = vld [vmem:[#allocation75_spill] sm:$0xff]  ;;  %v207_v39 = vpop.permute.xlu0 %206  ;;  %v6990_v58 = vld [vmem:[#allocation86_spill] sm:$0xff] }
 0x79b   :  { %v2674_v17 = vmul.f32 0.5, %v2670_v10  ;;  %v2676_v59 = vmul.f32 0.5, %v2672_v5  ;;  %v143_v10 = vmul.f32 %v6983_v60, %v94_v18 }
 0x79c   :  { %v2675_v16 = vmul.f32 0.5, %v2671_v33  ;;  %v141_v33 = vmul.f32 %v6982_v49, %v94_v18  ;;  %v6992_v49 = vld [vmem:[#allocation79_spill] sm:$0xff] }
 0x79d   :  { %4044 = vtanh.f32 %v2674_v17  ;;  %v142_v17 = vmul.f32 %v6984_v47, %v94_v18  ;;  %v254_v20 = vmul.f32 %v6992_v49, %v207_v39  ;;  %v6993_v47 = vld [vmem:[#allocation80_spill] sm:$0xff] }
 0x79e   :  { %4046 = vtanh.f32 %v2675_v16  ;;  %v6985_v16 = vld [vmem:[#allocation76_spill] sm:$0xff] }
 0x79f   :  { %4048 = vtanh.f32 %v2673_v4  ;;  %v144_v4 = vmul.f32 %v6985_v16, %v94_v18  ;;  %v174_v60 = vadd.f32 %v142_v17, %v6993_v47  ;;  %v6994_v18 = vld [vmem:[#allocation83_spill] sm:$0xff] }
 0x7a0   :  { %4050 = vtanh.f32 %v2676_v59 }
 0x7a1   :  { %v176_v16 = vadd.f32 %v144_v4, %v6994_v18 }
 0x7a7   :  { %v4045_v63 = vpop.eup %4044 }
 0x7a8   :  { %v2680_v8 = vmul.f32 0.5, %v4045_v63  ;;  %v4047_v51 = vpop.eup %4046 }
 0x7a9   :  { %v2681_v34 = vmul.f32 0.5, %v4047_v51  ;;  %v4049_v37 = vpop.eup %4048  ;;  %v6989_v51 = vld [vmem:[#allocation78_spill] sm:$0xff] }
 0x7aa   :  { %v2683_v61 = vadd.f32 0.5, %v2680_v8  ;;  %v6988_v8 = vld [vmem:[#allocation77_spill] sm:$0xff]  ;;  %v173_v48 = vadd.f32 %v141_v33, %v6989_v51  ;;  %v286_v33 = vadd.f32 %v254_v20, %v174_v60  ;;  %v5905_v60 = vld [vmem:[#allocation3 + $0x14c] ss:$16 sps:$4 sm:$0xff]  }
 0x7ab   :  { %v2684_v0 = vadd.f32 0.5, %v2681_v34  ;;  %v253_v59 = vmul.f32 %v6988_v8, %v207_v39  ;;  %v175_v34 = vadd.f32 %v143_v10, %v6990_v58 }
 0x7ac   :  { %v2688_v40 = vmul.f32 %v4049_v37, %v2683_v61  ;;  %v6991_v61 = vld [vmem:[#allocation85_spill] sm:$0xff] }
 0x7ad   :  { %v2687_v5 = vmul.f32 %v2684_v0, %v6986_v28  ;;  %v255_v37 = vmul.f32 %v6991_v61, %v207_v39  ;;  %v6995_v0 = vld [vmem:[#allocation82_spill] sm:$0xff] }
 0x7ae   :  { %v256_v28 = vmul.f32 %v6995_v0, %v207_v39 }
 0x7af   :  { %v5879_v63 = vadd.f32 %v2688_v40, %v2687_v5  ;;  %v4051_v40 = vpop.eup %4050  ;;  %v285_v5 = vadd.f32 %v253_v59, %v173_v48  ;;  %v287_v29 = vadd.f32 %v255_v37, %v175_v34  ;;  %v5910_v34 = vld [vmem:[#allocation3 + $0x164] ss:$16 sps:$4 sm:$0xff]  }
 0x7b0   :  { %v288_v51 = vadd.f32 %v256_v28, %v176_v16  ;;  %v2682_v10 = vmul.f32 0.5, %v4051_v40  ;;  %v5924_v28 = vld [vmem:[#allocation3 + $0x18c] ss:$16 sps:$4 sm:$0xff]  }
 0x7b1   :  { %6987 = vst [vmem:[#allocation23_spill] sm:$0xff] %v5879_v63  ;;  %4052 = vtanh.f32 %v5879_v63 }
 0x7b2   :  { %v2685_v0 = vadd.f32 0.5, %v2682_v10  ;;  %v5937_v10 = vld [vmem:[#allocation3 + $0x1ac] ss:$16 sps:$4 sm:$0xff]  }
 0x7b6   :  { %v2730_v8 = vpop.f32.mrb[72].mxu0  ;;  %v2771_v24 = vpop.f32.mrb[72].mxu1 }
 0x7b7   :  { %v2778_v58 = vadd.f32 %v2730_v8, %v285_v5  ;;  %v2780_v61 = vadd.f32 %v2771_v24, %v287_v29  ;;  %v2732_v54 = vpop.f32.mrb[73].mxu0  ;;  %v2773_v49 = vpop.f32.mrb[73].mxu1  ;;  %v5928_v5 = vld [vmem:[#allocation3 + $0x180] ss:$16 sps:$4 sm:$0xff]  }
 0x7b8   :  { %v2779_v12 = vadd.f32 %v2732_v54, %v286_v33  ;;  %v2781_v63 = vadd.f32 %v2773_v49, %v288_v51  ;;  %v2734_v36 = vpop.f32.mrb[74].mxu0  ;;  %v2775_v17 = vpop.f32.mrb[74].mxu1  ;;  %v5892_v54 = vld [vmem:[#allocation3 + $0x124] ss:$16 sps:$4 sm:$0xff]  }
 0x7b9   :  { %v2782_v47 = vmul.f32 0.5, %v2778_v58  ;;  %v2735_v4 = vpop.f32.mrb[75].mxu0  ;;  %v2776_v18 = vpop.f32.mrb[75].mxu1  ;;  %v5895_v36 = vld [vmem:[#allocation3 + $0x12c] ss:$16 sps:$4 sm:$0xff]  }
 0x7ba   :  { %v2783_v39 = vmul.f32 0.5, %v2779_v12  ;;  %v2784_v12 = vmul.f32 0.5, %v2780_v61  ;;  %v5902_v49 = vld [vmem:[#allocation3 + $0x144] ss:$16 sps:$4 sm:$0xff]   ;;  %v5913_v61 = vld [vmem:[#allocation3 + $0x16c] ss:$16 sps:$4 sm:$0xff]  }
 0x7bb   :  { %4054 = vtanh.f32 %v2782_v47  ;;  %v4053_v48 = vpop.eup %4052  ;;  %v5934_v33 = vld [vmem:[#allocation3 + $0x1a4] ss:$16 sps:$4 sm:$0xff]   ;;  %v5940_v4 = vld [vmem:[#allocation3 + $0x1a0] ss:$16 sps:$4 sm:$0xff]  }
 0x7bc   :  { %4056 = vtanh.f32 %v2783_v39  ;;  %v2691_v59 = vmul.f32 %v4053_v48, %v2685_v0  ;;  %v5921_v0 = vld [vmem:[#allocation3 + $0x184] ss:$16 sps:$4 sm:$0xff]   ;;  %v5943_v39 = vld [vmem:[#allocation3 + $0x1a8] ss:$16 sps:$4 sm:$0xff]  }
 0x7bd   :  { %4058 = vtanh.f32 %v2781_v63  ;;  %v5946_v48 = vld [vmem:[#allocation3 + $0x1c4] ss:$16 sps:$4 sm:$0xff]  }
 0x7be   :  { %v2801_v20 = vpack.c.bf16 %v2691_v59, %v2691_v59  ;;  %4060 = vtanh.f32 %v2784_v12  ;;  %v5949_v59 = vld [vmem:[#allocation3 + $0x1cc] ss:$16 sps:$4 sm:$0xff]  }
 0x7c0   :  { %2835 = vmatmul.mubr.bf16.vlgmr.msra.gmra.mrb[76].mxu0 %v2801_v20  ;;  %2876 = vmatmul.mubr.bf16.vlgmr.msra.gmra.mrb[76].mxu1 %v2801_v20 }
 0x7c1   :  { %2885 = vmatpush1.bf16.msra.mxu0 %v5710_v41  ;;  %2926 = vmatpush1.bf16.msra.mxu1 %v5713_v6 }
 0x7c2   :  { %2886 = vmatprep.subr.bf16.mxu0 %v5892_v54  ;;  %2927 = vmatprep.subr.bf16.mxu1 %v5895_v36 }
 0x7c3   :  { %2916 = vmatprep.mubr.bf16.mxu0 %v6546_v45  ;;  %2957 = vmatprep.mubr.bf16.mxu1 %v6546_v45 }
 0x7c5   :  { %v4055_v24 = vpop.eup %4054  ;;  %2887 = vmatpush1.bf16.msra.mxu0 %v5720_v31  ;;  %2928 = vmatpush1.bf16.msra.mxu1 %v5723_v26 }
 0x7c6   :  { %v2788_v29 = vmul.f32 0.5, %v4055_v24  ;;  %v4057_v58 = vpop.eup %4056  ;;  %2888 = vmatprep.subr.bf16.mxu0 %v5902_v49  ;;  %2929 = vmatprep.subr.bf16.mxu1 %v5905_v60  ;;  %v5952_v24 = vld [vmem:[#allocation3 + $0x1c0] ss:$16 sps:$4 sm:$0xff]  }
 0x7c7   :  { %v2789_v16 = vmul.f32 0.5, %v4057_v58  ;;  %v4059_v63 = vpop.eup %4058  ;;  %v5958_v58 = vld [vmem:[#allocation3 + $0x1e4] ss:$16 sps:$4 sm:$0xff]  }
 0x7c8   :  { %v2791_v47 = vadd.f32 0.5, %v2788_v29  ;;  %v4061_v40 = vpop.eup %4060  ;;  %v5955_v29 = vld [vmem:[#allocation3 + $0x1c8] ss:$16 sps:$4 sm:$0xff]  }
 0x7c9   :  { %v2792_v8 = vadd.f32 0.5, %v2789_v16  ;;  %2889 = vmatpush1.bf16.msra.mxu0 %v5728_v55  ;;  %2930 = vmatpush1.bf16.msra.mxu1 %v5731_v1  ;;  %v2790_v17 = vmul.f32 0.5, %v4061_v40  ;;  %v7022_v40 = vld [vmem:[#allocation63_spill] sm:$0xff] }
 0x7ca   :  { %v2796_v51 = vmul.f32 %v4059_v63, %v2791_v47  ;;  %2890 = vmatprep.subr.bf16.mxu0 %v5910_v34  ;;  %2931 = vmatprep.subr.bf16.mxu1 %v5913_v61  ;;  %v5961_v47 = vld [vmem:[#allocation3 + $0x1ec] ss:$16 sps:$4 sm:$0xff]  }
 0x7cb   :  { %v2795_v37 = vmul.f32 %v2792_v8, %v5737_v25  ;;  %v5931_v25 = vld [vmem:[#allocation3 + $0x188] ss:$16 sps:$4 sm:$0xff]   ;;  %v2793_v20 = vadd.f32 0.5, %v2790_v17  ;;  %v5964_v8 = vld [vmem:[#allocation3 + $0x1e0] ss:$16 sps:$4 sm:$0xff]  }
 0x7cc   :  { %v7023_v17 = vld [vmem:[#allocation64_spill] sm:$0xff] }
 0x7cd   :  { %v5917_v18 = vadd.f32 %v2796_v51, %v2795_v37  ;;  %2891 = vmatpush1.bf16.msra.mxu0 %v5739_v14  ;;  %2932 = vmatpush1.bf16.msra.mxu1 %v5742_v62  ;;  %v5967_v51 = vld [vmem:[#allocation3 + $0x1e8] ss:$16 sps:$4 sm:$0xff]   ;;  %v7021_v37 = vld [vmem:[#allocation25_spill] sm:$0xff] }
 0x7ce   :  { %2892 = vmatprep.subr.bf16.mxu0 %v5921_v0  ;;  %2933 = vmatprep.subr.bf16.mxu1 %v5924_v28 }
 0x7cf   :  { %4062 = vtanh.f32 %v5917_v18 }
 0x7d1   :  { %2893 = vmatpush1.bf16.msra.mxu0 %v5928_v5  ;;  %2934 = vmatpush1.bf16.msra.mxu1 %v5931_v25 }
 0x7d2   :  { %2894 = vmatprep.subr.bf16.mxu0 %v5934_v33  ;;  %2935 = vmatprep.subr.bf16.mxu1 %v5937_v10 }
 0x7d5   :  { %2895 = vmatpush1.bf16.msra.mxu0 %v5940_v4  ;;  %2936 = vmatpush1.bf16.msra.mxu1 %v5943_v39 }
 0x7d6   :  { %2896 = vmatprep.subr.bf16.mxu0 %v5946_v48  ;;  %2937 = vmatprep.subr.bf16.mxu1 %v5949_v59 }
 0x7d9   :  { %v4063_v12 = vpop.eup %4062  ;;  %2897 = vmatpush1.bf16.msra.mxu0 %v5952_v24  ;;  %2938 = vmatpush1.bf16.msra.mxu1 %v5955_v29 }
 0x7da   :  { %2898 = vmatprep.subr.bf16.mxu0 %v5958_v58  ;;  %2939 = vmatprep.subr.bf16.mxu1 %v5961_v47  ;;  %v2799_v16 = vmul.f32 %v4063_v12, %v2793_v20  ;;  %v7024_v20 = vld [vmem:[#allocation65_spill] sm:$0xff]  ;;  %v7025_v12 = vld [vmem:[#allocation66_spill] sm:$0xff] }
 0x7dc   :  { %v2800_v63 = vpack.c.bf16 %v2799_v16, %v2799_v16  ;;  %v7026_v16 = vld [vmem:[#allocation68_spill] sm:$0xff] }
 0x7dd   :  { %2899 = vmatpush1.bf16.msra.mxu0 %v5964_v8  ;;  %2940 = vmatpush1.bf16.msra.mxu1 %v5967_v51 }
 0x7de   :  { %2992 = vmatprep.subr.bf16.mxu0 %v5522_v23  ;;  %3033 = vmatprep.subr.bf16.mxu1 %v5525_v27  ;;  %v6996_v23 = vld [vmem:[#allocation71_spill] sm:$0xff]  ;;  %v6997_v27 = vld [vmem:[#allocation72_spill] sm:$0xff] }
 0x7e0   :  { %2917 = vmatmul.mubr.bf16.vlgmr.msra.gmra.mrb[80].mxu0 %v2800_v63  ;;  %2958 = vmatmul.mubr.bf16.vlgmr.msra.gmra.mrb[80].mxu1 %v2800_v63 }
 0x7e1   :  { %2993 = vmatpush1.bf16.msra.mxu0 %v5530_v21  ;;  %3034 = vmatpush1.bf16.msra.mxu1 %v5533_v22  ;;  %v6998_v21 = vld [vmem:[#allocation74_spill] sm:$0xff]  ;;  %v6999_v22 = vld [vmem:[#allocation81_spill] sm:$0xff] }
 0x7e2   :  { %2994 = vmatprep.subr.bf16.mxu0 %v5536_v7  ;;  %3035 = vmatprep.subr.bf16.mxu1 %v5539_v43  ;;  %v7000_v7 = vld [vmem:[#allocation40_spill] sm:$0xff]  ;;  %v7001_v43 = vld [vmem:[#allocation41_spill] sm:$0xff] }
 0x7e3   :  { %3024 = vmatprep.mubr.bf16.mxu0 %v6546_v45  ;;  %3065 = vmatprep.mubr.bf16.mxu1 %v6546_v45 }
 0x7e5   :  { %2995 = vmatpush1.bf16.msra.mxu0 %v5544_v52  ;;  %3036 = vmatpush1.bf16.msra.mxu1 %v5547_v3  ;;  %v7002_v52 = vld [vmem:[#allocation42_spill] sm:$0xff]  ;;  %v7003_v3 = vld [vmem:[#allocation43_spill] sm:$0xff] }
 0x7e6   :  { %2996 = vmatprep.subr.bf16.mxu0 %v5550_v57  ;;  %3037 = vmatprep.subr.bf16.mxu1 %v5553_v32  ;;  %v7004_v57 = vld [vmem:[#allocation44_spill] sm:$0xff]  ;;  %v7005_v32 = vld [vmem:[#allocation45_spill] sm:$0xff] }
 0x7e9   :  { %2997 = vmatpush1.bf16.msra.mxu0 %v5556_v44  ;;  %3038 = vmatpush1.bf16.msra.mxu1 %v6923_v19  ;;  %v7006_v44 = vld [vmem:[#allocation46_spill] sm:$0xff]  ;;  %v7007_v19 = vld [vmem:[#allocation47_spill] sm:$0xff] }
 0x7ea   :  { %2998 = vmatprep.subr.bf16.mxu0 %v6924_v9  ;;  %3039 = vmatprep.subr.bf16.mxu1 %v6925_v2  ;;  %v7008_v9 = vld [vmem:[#allocation48_spill] sm:$0xff]  ;;  %v7009_v2 = vld [vmem:[#allocation49_spill] sm:$0xff] }
 0x7ed   :  { %2999 = vmatpush1.bf16.msra.mxu0 %v6926_v56  ;;  %3040 = vmatpush1.bf16.msra.mxu1 %v6927_v46  ;;  %v7010_v56 = vld [vmem:[#allocation50_spill] sm:$0xff]  ;;  %v7011_v46 = vld [vmem:[#allocation51_spill] sm:$0xff] }
 0x7ee   :  { %3000 = vmatprep.subr.bf16.mxu0 %v6928_v13  ;;  %3041 = vmatprep.subr.bf16.mxu1 %v6929_v15  ;;  %v7012_v13 = vld [vmem:[#allocation52_spill] sm:$0xff]  ;;  %v7013_v15 = vld [vmem:[#allocation53_spill] sm:$0xff] }
 0x7f1   :  { %3001 = vmatpush1.bf16.msra.mxu0 %v6930_v30  ;;  %3042 = vmatpush1.bf16.msra.mxu1 %v6931_v35  ;;  %v7014_v30 = vld [vmem:[#allocation54_spill] sm:$0xff]  ;;  %v7015_v35 = vld [vmem:[#allocation55_spill] sm:$0xff] }
 0x7f2   :  { %3002 = vmatprep.subr.bf16.mxu0 %v6932_v11  ;;  %3043 = vmatprep.subr.bf16.mxu1 %v6933_v50  ;;  %v7016_v11 = vld [vmem:[#allocation56_spill] sm:$0xff]  ;;  %v7017_v50 = vld [vmem:[#allocation57_spill] sm:$0xff] }
 0x7f5   :  { %3003 = vmatpush1.bf16.msra.mxu0 %v6934_v53  ;;  %3044 = vmatpush1.bf16.msra.mxu1 %v6935_v42  ;;  %v7018_v53 = vld [vmem:[#allocation60_spill] sm:$0xff]  ;;  %v7019_v42 = vld [vmem:[#allocation61_spill] sm:$0xff] }
 0x7f6   :  { %3004 = vmatprep.subr.bf16.mxu0 %v6936_v38  ;;  %3045 = vmatprep.subr.bf16.mxu1 %v6996_v23  ;;  %v7020_v38 = vld [vmem:[#allocation62_spill] sm:$0xff]  ;;  %v7028_v23 = vld [vmem:[#allocation67_spill] sm:$0xff] }
 0x7f9   :  { %3005 = vmatpush1.bf16.msra.mxu0 %v6997_v27  ;;  %3046 = vmatpush1.bf16.msra.mxu1 %v6998_v21  ;;  %v7029_v27 = vld [vmem:[#allocation15_spill] sm:$0xff]  ;;  %v7030_v21 = vld [vmem:[#allocation17_spill] sm:$0xff] }
 0x7fa   :  { %3006 = vmatprep.subr.bf16.mxu0 %v6999_v22  ;;  %3047 = vmatprep.subr.bf16.mxu1 %v7000_v7  ;;  %v7031_v22 = vld [vmem:[#allocation18_spill] sm:$0xff]  ;;  %v7032_v7 = vld [vmem:[#allocation20_spill] sm:$0xff] }
 0x7fd   :  { %3007 = vmatpush1.bf16.msra.mxu0 %v7001_v43  ;;  %3048 = vmatpush1.bf16.msra.mxu1 %v7002_v52  ;;  %v7033_v43 = vld [vmem:[#allocation19_spill] sm:$0xff]  ;;  %v7034_v52 = vld [vmem:[#allocation21_spill] sm:$0xff] }
 0x7fe   :  { %3098 = vmatprep.subr.bf16.mxu0 %v7003_v3  ;;  %3139 = vmatprep.subr.bf16.mxu1 %v7004_v57  ;;  %v7035_v3 = vld [vmem:[#allocation22_spill] sm:$0xff]  ;;  %v7036_v57 = vld [vmem:[#allocation24_spill] sm:$0xff] }
 0x800   :  { %3025 = vmatmul.mubr.bf16.vlgmr.msra.gmra.mrb[84].mxu0 %v2800_v63  ;;  %3066 = vmatmul.mubr.bf16.vlgmr.msra.gmra.mrb[84].mxu1 %v2800_v63  ;;  %v7027_v63 = vld [vmem:[#allocation69_spill] sm:$0xff] }
 0x801   :  { %3099 = vmatpush1.bf16.msra.mxu0 %v7005_v32  ;;  %3140 = vmatpush1.bf16.msra.mxu1 %v7006_v44 }
 0x802   :  { %3100 = vmatprep.subr.bf16.mxu0 %v7007_v19  ;;  %3141 = vmatprep.subr.bf16.mxu1 %v7008_v9 }
 0x803   :  { %3130 = vmatprep.mubr.bf16.mxu0 %v6546_v45  ;;  %3171 = vmatprep.mubr.bf16.mxu1 %v6546_v45 }
 0x805   :  { %3101 = vmatpush1.bf16.msra.mxu0 %v7009_v2  ;;  %3142 = vmatpush1.bf16.msra.mxu1 %v7010_v56 }
 0x806   :  { %3102 = vmatprep.subr.bf16.mxu0 %v7011_v46  ;;  %3143 = vmatprep.subr.bf16.mxu1 %v7012_v13 }
 0x809   :  { %3103 = vmatpush1.bf16.msra.mxu0 %v7013_v15  ;;  %3144 = vmatpush1.bf16.msra.mxu1 %v7014_v30 }
 0x80a   :  { %3104 = vmatprep.subr.bf16.mxu0 %v7015_v35  ;;  %3145 = vmatprep.subr.bf16.mxu1 %v7016_v11 }
 0x80d   :  { %3105 = vmatpush1.bf16.msra.mxu0 %v7017_v50  ;;  %3146 = vmatpush1.bf16.msra.mxu1 %v7018_v53 }
 0x80e   :  { %3106 = vmatprep.subr.bf16.mxu0 %v7019_v42  ;;  %3147 = vmatprep.subr.bf16.mxu1 %v7020_v38 }
 0x811   :  { %3107 = vmatpush1.bf16.msra.mxu0 %v7021_v37  ;;  %3148 = vmatpush1.bf16.msra.mxu1 %v7022_v40 }
 0x812   :  { %3108 = vmatprep.subr.bf16.mxu0 %v7023_v17  ;;  %3149 = vmatprep.subr.bf16.mxu1 %v7024_v20  ;;  %v7037_v17 = vld [vmem:[#allocation12_spill] sm:$0xff] }
 0x815   :  { %3109 = vmatpush1.bf16.msra.mxu0 %v7025_v12  ;;  %3150 = vmatpush1.bf16.msra.mxu1 %v7026_v16 }
 0x816   :  { %3110 = vmatprep.subr.bf16.mxu0 %v7027_v63  ;;  %3151 = vmatprep.subr.bf16.mxu1 %v7028_v23  ;;  %v7038_v63 = vld [vmem:[#allocation13_spill] sm:$0xff] }
 0x819   :  { %3111 = vmatpush1.bf16.msra.mxu0 %v7029_v27  ;;  %3152 = vmatpush1.bf16.msra.mxu1 %v7030_v21 }
 0x81a   :  { %3112 = vmatprep.subr.bf16.mxu0 %v7031_v22  ;;  %3153 = vmatprep.subr.bf16.mxu1 %v7032_v7  ;;  %v7039_v22 = vld [vmem:[#allocation14_spill] sm:$0xff] }
 0x81d   :  { %3113 = vmatpush1.bf16.msra.mxu0 %v7033_v43  ;;  %3154 = vmatpush1.bf16.msra.mxu1 %v7034_v52  ;;  %v7040_v43 = vld [vmem:[#allocation16_spill] sm:$0xff] }
 0x81e   :  { %3180 = vmatprep.subr.bf16.mxu0 %v7035_v3  ;;  %3221 = vmatprep.subr.bf16.mxu1 %v7036_v57 }
 0x893   :  { %v2836_v32 = vpop.f32.mrb[76].mxu0  ;;  %v2877_v44 = vpop.f32.mrb[76].mxu1 }
 0x894   :  { %v2838_v19 = vpop.f32.mrb[77].mxu0  ;;  %v2879_v9 = vpop.f32.mrb[77].mxu1 }
 0x895   :  { %v2840_v2 = vpop.f32.mrb[78].mxu0  ;;  %v2881_v56 = vpop.f32.mrb[78].mxu1 }
 0x896   :  { %v2841_v46 = vpop.f32.mrb[79].mxu0  ;;  %v2882_v13 = vpop.f32.mrb[79].mxu1 }
 0x8b3   :  { %v2918_v15 = vpop.f32.mrb[80].mxu0  ;;  %v2959_v30 = vpop.f32.mrb[80].mxu1 }
 0x8b4   :  { %v2919_v35 = vadd.f32 %v2918_v15, %v2836_v32  ;;  %v2960_v11 = vadd.f32 %v2959_v30, %v2877_v44  ;;  %v2920_v50 = vpop.f32.mrb[81].mxu0  ;;  %v2961_v53 = vpop.f32.mrb[81].mxu1  ;;  %v7041_v15 = vld [vmem:[#allocation73_spill] sm:$0xff] }
 0x8b5   :  { %v2921_v42 = vadd.f32 %v2920_v50, %v2838_v19  ;;  %v2962_v38 = vadd.f32 %v2961_v53, %v2879_v9  ;;  %v2922_v37 = vpop.f32.mrb[82].mxu0  ;;  %v2963_v40 = vpop.f32.mrb[82].mxu1 }
 0x8b6   :  { %v2966_v20 = vadd.f32 %v2919_v35, %v7037_v17  ;;  %v2923_v12 = vpop.f32.mrb[83].mxu0  ;;  %v2964_v16 = vpop.f32.mrb[83].mxu1  ;;  %v2968_v52 = vadd.f32 %v2960_v11, %v7040_v43  ;;  %v7042_v35 = vld [vmem:[#allocation84_spill] sm:$0xff]  ;;  %v7045_v40 = vld [vmem:[#allocation23_spill] sm:$0xff] }
 0x8b7   :  { %v2967_v23 = vadd.f32 %v2921_v42, %v7038_v63  ;;  %v2969_v7 = vadd.f32 %v2962_v38, %v7039_v22  ;;  %v99_v19 = vpop.permute.xlu1 %98  ;;  %v211_v53 = vpop.permute.xlu0 %210  ;;  %v7043_v42 = vld [vmem:[#allocation75_spill] sm:$0xff]  ;;  %v7044_v37 = vld [vmem:[#allocation76_spill] sm:$0xff]  ;;  %v7046_v12 = vld [vmem:[#allocation77_spill] sm:$0xff] }
 0x8b8   :  { %v2970_v27 = vmul.f32 0.5, %v2966_v20  ;;  %v2972_v3 = vmul.f32 0.5, %v2968_v52  ;;  %v145_v30 = vmul.f32 %v7041_v15, %v99_v19  ;;  %v147_v50 = vmul.f32 %v7042_v35, %v99_v19  ;;  %v7054_v15 = vld [vmem:[#allocation83_spill] sm:$0xff] }
 0x8b9   :  { %v2971_v21 = vmul.f32 0.5, %v2967_v23  ;;  %v146_v38 = vmul.f32 %v7043_v42, %v99_v19  ;;  %v148_v11 = vmul.f32 %v7044_v37, %v99_v19  ;;  %v257_v16 = vmul.f32 %v7046_v12, %v211_v53 }
 0x8ba   :  { %4064 = vtanh.f32 %v2970_v27  ;;  %v7048_v27 = vld [vmem:[#allocation79_spill] sm:$0xff] }
 0x8bb   :  { %4066 = vtanh.f32 %v2971_v21  ;;  %v258_v21 = vmul.f32 %v7048_v27, %v211_v53 }
 0x8bc   :  { %4068 = vtanh.f32 %v2969_v7  ;;  %v7049_v7 = vld [vmem:[#allocation85_spill] sm:$0xff] }
 0x8bd   :  { %4070 = vtanh.f32 %v2972_v3  ;;  %v259_v52 = vmul.f32 %v7049_v7, %v211_v53  ;;  %v7050_v3 = vld [vmem:[#allocation78_spill] sm:$0xff] }
 0x8c4   :  { %v4065_v57 = vpop.eup %4064 }
 0x8c5   :  { %v2976_v32 = vmul.f32 0.5, %v4065_v57  ;;  %v4067_v44 = vpop.eup %4066  ;;  %v177_v57 = vadd.f32 %v145_v30, %v7050_v3 }
 0x8c6   :  { %v2977_v2 = vmul.f32 0.5, %v4067_v44  ;;  %v4069_v56 = vpop.eup %4068 }
 0x8c7   :  { %v2979_v9 = vadd.f32 0.5, %v2976_v32  ;;  %v7051_v32 = vld [vmem:[#allocation86_spill] sm:$0xff]  ;;  %v4071_v35 = vpop.eup %4070  ;;  %v289_v42 = vadd.f32 %v257_v16, %v177_v57 }
 0x8c8   :  { %v2980_v46 = vadd.f32 0.5, %v2977_v2  ;;  %v179_v44 = vadd.f32 %v147_v50, %v7051_v32  ;;  %v2978_v27 = vmul.f32 0.5, %v4071_v35  ;;  %v3919_v35 = vld [vmem:[#allocation3 + $0x3a8] ss:$16 sps:$4 sm:$0xff]  }
 0x8c9   :  { %v2984_v13 = vmul.f32 %v4069_v56, %v2979_v9  ;;  %v7052_v9 = vld [vmem:[#allocation82_spill] sm:$0xff]  ;;  %v7053_v56 = vld [vmem:[#allocation80_spill] sm:$0xff] }
 0x8ca   :  { %v2983_v20 = vmul.f32 %v2980_v46, %v7045_v40  ;;  %v260_v2 = vmul.f32 %v7052_v9, %v211_v53  ;;  %v178_v19 = vadd.f32 %v146_v38, %v7053_v56  ;;  %v180_v46 = vadd.f32 %v148_v11, %v7054_v15 }
 0x8cb   :  { %v2981_v15 = vadd.f32 0.5, %v2978_v27  ;;  %v3933_v27 = vld [vmem:[#allocation3 + $0x3ec] ss:$16 sps:$4 sm:$0xff]  }
 0x8cc   :  { %v6050_v23 = vadd.f32 %v2984_v13, %v2983_v20  ;;  %v291_v13 = vadd.f32 %v259_v52, %v179_v44  ;;  %v290_v20 = vadd.f32 %v258_v21, %v178_v19  ;;  %v292_v12 = vadd.f32 %v260_v2, %v180_v46  ;;  %v3916_v19 = vld [vmem:[#allocation3 + $0x3a0] ss:$16 sps:$4 sm:$0xff]   ;;  %v3918_v46 = vld [vmem:[#allocation3 + $0x3a4] ss:$16 sps:$4 sm:$0xff]  }
 0x8ce   :  { %7047 = vst [vmem:[#allocation26_spill] sm:$0xff] %v6050_v23  ;;  %4072 = vtanh.f32 %v6050_v23 }
 0x8d3   :  { %v3026_v37 = vpop.f32.mrb[84].mxu0  ;;  %v3067_v40 = vpop.f32.mrb[84].mxu1 }
 0x8d4   :  { %v3074_v7 = vadd.f32 %v3026_v37, %v289_v42  ;;  %v3076_v30 = vadd.f32 %v3067_v40, %v291_v13  ;;  %v3028_v3 = vpop.f32.mrb[85].mxu0  ;;  %v3069_v50 = vpop.f32.mrb[85].mxu1  ;;  %v3921_v42 = vld [vmem:[#allocation3 + $0x3ac] ss:$16 sps:$4 sm:$0xff]   ;;  %v3924_v13 = vld [vmem:[#allocation3 + $0x3c4] ss:$16 sps:$4 sm:$0xff]  }
 0x8d5   :  { %v3075_v32 = vadd.f32 %v3028_v3, %v290_v20  ;;  %v3077_v53 = vadd.f32 %v3069_v50, %v292_v12  ;;  %v3030_v9 = vpop.f32.mrb[86].mxu0  ;;  %v3071_v23 = vpop.f32.mrb[86].mxu1  ;;  %v3927_v37 = vld [vmem:[#allocation3 + $0x3cc] ss:$16 sps:$4 sm:$0xff]   ;;  %v3922_v40 = vld [vmem:[#allocation3 + $0x3c0] ss:$16 sps:$4 sm:$0xff]  }
 0x8d6   :  { %v3078_v43 = vmul.f32 0.5, %v3074_v7  ;;  %v3031_v38 = vpop.f32.mrb[87].mxu0  ;;  %v3072_v56 = vpop.f32.mrb[87].mxu1  ;;  %v3080_v23 = vmul.f32 0.5, %v3076_v30  ;;  %v3925_v20 = vld [vmem:[#allocation3 + $0x3c8] ss:$16 sps:$4 sm:$0xff]  }
 0x8d7   :  { %v3079_v11 = vmul.f32 0.5, %v3075_v32  ;;  %v3930_v12 = vld [vmem:[#allocation3 + $0x3e4] ss:$16 sps:$4 sm:$0xff]   ;;  %v3928_v7 = vld [vmem:[#allocation3 + $0x3e0] ss:$16 sps:$4 sm:$0xff]  }
 0x8d8   :  { %4074 = vtanh.f32 %v3078_v43  ;;  %v4073_v16 = vpop.eup %4072  ;;  %v3931_v30 = vld [vmem:[#allocation3 + $0x3e8] ss:$16 sps:$4 sm:$0xff]  }
 0x8d9   :  { %4076 = vtanh.f32 %v3079_v11  ;;  %v2987_v52 = vmul.f32 %v4073_v16, %v2981_v15 }
 0x8da   :  { %4078 = vtanh.f32 %v3077_v53 }
 0x8db   :  { %v3097_v21 = vpack.c.bf16 %v2987_v52, %v2987_v52  ;;  %4080 = vtanh.f32 %v3080_v23 }
 0x8dd   :  { %3131 = vmatmul.mubr.bf16.vlgmr.msra.gmra.mrb[88].mxu0 %v3097_v21  ;;  %3172 = vmatmul.mubr.bf16.vlgmr.msra.gmra.mrb[88].mxu1 %v3097_v21 }
 0x8de   :  { %3181 = vmatpush1.bf16.msra.mxu0 %v5710_v41  ;;  %3222 = vmatpush1.bf16.msra.mxu1 %v5713_v6 }
 0x8df   :  { %3182 = vmatprep.subr.bf16.mxu0 %v5892_v54  ;;  %3223 = vmatprep.subr.bf16.mxu1 %v5895_v36 }
 0x8e0   :  { %3212 = vmatprep.mubr.bf16.mxu0 %v6546_v45  ;;  %3253 = vmatprep.mubr.bf16.mxu1 %v6546_v45 }
 0x8e2   :  { %v4075_v43 = vpop.eup %4074  ;;  %3183 = vmatpush1.bf16.msra.mxu0 %v5720_v31  ;;  %3224 = vmatpush1.bf16.msra.mxu1 %v5723_v26 }
 0x8e3   :  { %v3084_v57 = vmul.f32 0.5, %v4075_v43  ;;  %v4077_v44 = vpop.eup %4076  ;;  %3184 = vmatprep.subr.bf16.mxu0 %v5902_v49  ;;  %3225 = vmatprep.subr.bf16.mxu1 %v5905_v60 }
 0x8e4   :  { %v3085_v6 = vmul.f32 0.5, %v4077_v44  ;;  %v4079_v54 = vpop.eup %4078 }
 0x8e5   :  { %v3087_v41 = vadd.f32 0.5, %v3084_v57  ;;  %v4081_v49 = vpop.eup %4080 }
 0x8e6   :  { %v3088_v36 = vadd.f32 0.5, %v3085_v6  ;;  %3185 = vmatpush1.bf16.msra.mxu0 %v5728_v55  ;;  %3226 = vmatpush1.bf16.msra.mxu1 %v5731_v1  ;;  %v3086_v55 = vmul.f32 0.5, %v4081_v49 }
 0x8e7   :  { %v3092_v2 = vmul.f32 %v4079_v54, %v3087_v41  ;;  %3186 = vmatprep.subr.bf16.mxu0 %v5910_v34  ;;  %3227 = vmatprep.subr.bf16.mxu1 %v5913_v61  ;;  %v3888_v34 = vld [vmem:[#allocation3 + $0x304] ss:$16 sps:$4 sm:$0xff]   ;;  %v3891_v61 = vld [vmem:[#allocation3 + $0x30c] ss:$16 sps:$4 sm:$0xff]  }
 0x8e8   :  { %v3091_v31 = vmul.f32 %v3088_v36, %v5917_v18  ;;  %v3089_v1 = vadd.f32 0.5, %v3086_v55  ;;  %v3886_v18 = vld [vmem:[#allocation3 + $0x300] ss:$16 sps:$4 sm:$0xff]  }
 0x8ea   :  { %v3093_v26 = vadd.f32 %v3092_v2, %v3091_v31  ;;  %3187 = vmatpush1.bf16.msra.mxu0 %v5739_v14  ;;  %3228 = vmatpush1.bf16.msra.mxu1 %v5742_v62 }
 0x8eb   :  { %3188 = vmatprep.subr.bf16.mxu0 %v5921_v0  ;;  %3229 = vmatprep.subr.bf16.mxu1 %v5924_v28  ;;  %v3889_v0 = vld [vmem:[#allocation3 + $0x308] ss:$16 sps:$4 sm:$0xff]   ;;  %v3894_v28 = vld [vmem:[#allocation3 + $0x324] ss:$16 sps:$4 sm:$0xff]  }
 0x8ec   :  { %4082 = vtanh.f32 %v3093_v26 }
 0x8ee   :  { %3189 = vmatpush1.bf16.msra.mxu0 %v5928_v5  ;;  %3230 = vmatpush1.bf16.msra.mxu1 %v5931_v25  ;;  %v3897_v5 = vld [vmem:[#allocation3 + $0x32c] ss:$16 sps:$4 sm:$0xff]   ;;  %v3892_v25 = vld [vmem:[#allocation3 + $0x320] ss:$16 sps:$4 sm:$0xff]  }
 0x8ef   :  { %3190 = vmatprep.subr.bf16.mxu0 %v5934_v33  ;;  %3231 = vmatprep.subr.bf16.mxu1 %v5937_v10  ;;  %v3895_v33 = vld [vmem:[#allocation3 + $0x328] ss:$16 sps:$4 sm:$0xff]   ;;  %v3900_v10 = vld [vmem:[#allocation3 + $0x344] ss:$16 sps:$4 sm:$0xff]  }
 0x8f2   :  { %3191 = vmatpush1.bf16.msra.mxu0 %v5940_v4  ;;  %3232 = vmatpush1.bf16.msra.mxu1 %v5943_v39  ;;  %v3903_v4 = vld [vmem:[#allocation3 + $0x34c] ss:$16 sps:$4 sm:$0xff]   ;;  %v3898_v39 = vld [vmem:[#allocation3 + $0x340] ss:$16 sps:$4 sm:$0xff]  }
 0x8f3   :  { %3192 = vmatprep.subr.bf16.mxu0 %v5946_v48  ;;  %3233 = vmatprep.subr.bf16.mxu1 %v5949_v59  ;;  %v3906_v48 = vld [vmem:[#allocation3 + $0x364] ss:$16 sps:$4 sm:$0xff]   ;;  %v3909_v59 = vld [vmem:[#allocation3 + $0x36c] ss:$16 sps:$4 sm:$0xff]  }
 0x8f6   :  { %v4083_v14 = vpop.eup %4082  ;;  %3193 = vmatpush1.bf16.msra.mxu0 %v5952_v24  ;;  %3234 = vmatpush1.bf16.msra.mxu1 %v5955_v29  ;;  %v3904_v24 = vld [vmem:[#allocation3 + $0x360] ss:$16 sps:$4 sm:$0xff]   ;;  %v3907_v29 = vld [vmem:[#allocation3 + $0x368] ss:$16 sps:$4 sm:$0xff]  }
 0x8f7   :  { %3194 = vmatprep.subr.bf16.mxu0 %v5958_v58  ;;  %3235 = vmatprep.subr.bf16.mxu1 %v5961_v47  ;;  %v3095_v62 = vmul.f32 %v4083_v14, %v3089_v1  ;;  %v3912_v58 = vld [vmem:[#allocation3 + $0x384] ss:$16 sps:$4 sm:$0xff]   ;;  %v3915_v47 = vld [vmem:[#allocation3 + $0x38c] ss:$16 sps:$4 sm:$0xff]  }
 0x8f8   :  { %v7055_v1 = vld [vmem:[#allocation16_spill] sm:$0xff] }
 0x8f9   :  { %v3096_v60 = vpack.c.bf16 %v3095_v62, %v3095_v62 }
 0x8fa   :  { %3195 = vmatpush1.bf16.msra.mxu0 %v5964_v8  ;;  %3236 = vmatpush1.bf16.msra.mxu1 %v5967_v51  ;;  %v3910_v8 = vld [vmem:[#allocation3 + $0x380] ss:$16 sps:$4 sm:$0xff]   ;;  %v3913_v51 = vld [vmem:[#allocation3 + $0x388] ss:$16 sps:$4 sm:$0xff]  }
 0x8fb   :  { %3489 = vmatprep.subr.bf16.mxu0 %v3888_v34  ;;  %3530 = vmatprep.subr.bf16.mxu1 %v3891_v61 }
 0x8fd   :  { %3213 = vmatmul.mubr.bf16.vlgmr.msra.gmra.mrb[92].mxu0 %v3096_v60  ;;  %3254 = vmatmul.mubr.bf16.vlgmr.msra.gmra.mrb[92].mxu1 %v3096_v60 }
 0x8fe   :  { %3521 = vmatprep.mubr.bf16.mxu0 %v6546_v45  ;;  %3562 = vmatprep.mubr.bf16.mxu1 %v6546_v45  ;;  %v3901_v45 = vld [vmem:[#allocation3 + $0x348] ss:$16 sps:$4 sm:$0xff]  }
 0x8ff   :  { %3490 = vmatpush1.bf16.msra.mxu0 %v3886_v18  ;;  %3531 = vmatpush1.bf16.msra.mxu1 %v3889_v0 }
 0x900   :  { %3491 = vmatprep.subr.bf16.mxu0 %v3894_v28  ;;  %3532 = vmatprep.subr.bf16.mxu1 %v3897_v5 }
 0x903   :  { %3492 = vmatpush1.bf16.msra.mxu0 %v3892_v25  ;;  %3533 = vmatpush1.bf16.msra.mxu1 %v3895_v33 }
 0x904   :  { %3493 = vmatprep.subr.bf16.mxu0 %v3900_v10  ;;  %3534 = vmatprep.subr.bf16.mxu1 %v3903_v4 }
 0x907   :  { %3494 = vmatpush1.bf16.msra.mxu0 %v3898_v39  ;;  %3535 = vmatpush1.bf16.msra.mxu1 %v3901_v45 }
 0x908   :  { %3495 = vmatprep.subr.bf16.mxu0 %v3906_v48  ;;  %3536 = vmatprep.subr.bf16.mxu1 %v3909_v59  ;;  %v7057_v59 = vld [vmem:[#allocation70_spill] sm:$0xff] }
 0x90b   :  { %3496 = vmatpush1.bf16.msra.mxu0 %v3904_v24  ;;  %3537 = vmatpush1.bf16.msra.mxu1 %v3907_v29  ;;  %v3319_v24 = vsub.s32 2, %v7057_v59  ;;  %v4286_v29 = vld [vmem:[%s6143_s2] sm:$0xff] }
 0x90c   :  { %3497 = vmatprep.subr.bf16.mxu0 %v3912_v58  ;;  %3538 = vmatprep.subr.bf16.mxu1 %v3915_v47  ;;  %v4287_v47 = vld [vmem:[%s6143_s2 + $0x10] sm:$0xff] }
 0x90d   :  { %v3320_v58 = vrot.slane %v4286_v29, %v3319_v24 }
 0x90f   :  { %3498 = vmatpush1.bf16.msra.mxu0 %v3910_v8  ;;  %3539 = vmatpush1.bf16.msra.mxu1 %v3913_v51  ;;  %v3328_v8 = vrot.slane %v4287_v47, %v3319_v24  ;;  %v4288_v51 = vld [vmem:[%s6143_s2 + $0x8] sm:$0xff]  ;;  %s4311_s2 = scalar_lea.vmem %s3580_s5, 128 }
 0x910   :  { %3499 = vmatprep.subr.bf16.mxu0 %v3918_v46  ;;  %3540 = vmatprep.subr.bf16.mxu1 %v3921_v42  ;;  %p4312_p8 = scmp.ne.s32.totalorder %s3580_s5, %s4311_s2  ;;  %p4317_p10 = scmp.lt.s32.totalorder %s4311_s2, %s4311_s2 }
 0x912   :  { %p4318_p11 = por %p4317_p10, %p4316_p9 }
 0x913   :  { %3500 = vmatpush1.bf16.msra.mxu0 %v3916_v19  ;;  %3541 = vmatpush1.bf16.msra.mxu1 %v3919_v35  ;;  %v3324_v19 = vrot.slane %v4288_v51, %v3319_v24 }
 0x914   :  { %3501 = vmatprep.subr.bf16.mxu0 %v3924_v13  ;;  %3542 = vmatprep.subr.bf16.mxu1 %v3927_v37  ;;  %p4319_p12 = pnand %p4318_p11, %p4312_p8 }
 0x917   :  { %3502 = vmatpush1.bf16.msra.mxu0 %v3922_v40  ;;  %3543 = vmatpush1.bf16.msra.mxu1 %v3925_v20 }
 0x918   :  { %3503 = vmatprep.subr.bf16.mxu0 %v3930_v12  ;;  %3544 = vmatprep.subr.bf16.mxu1 %v3933_v27 }
 0x91b   :  { %3504 = vmatpush1.bf16.msra.mxu0 %v3928_v7  ;;  %3545 = vmatpush1.bf16.msra.mxu1 %v3931_v30 }
 0x9b0   :  { %v3132_v3 = vpop.f32.mrb[88].mxu0  ;;  %v3173_v50 = vpop.f32.mrb[88].mxu1 }
 0x9b1   :  { %v3134_v32 = vpop.f32.mrb[89].mxu0  ;;  %v3175_v53 = vpop.f32.mrb[89].mxu1 }
 0x9b2   :  { %v3136_v9 = vpop.f32.mrb[90].mxu0  ;;  %v3177_v38 = vpop.f32.mrb[90].mxu1 }
 0x9b3   :  { %v3137_v56 = vpop.f32.mrb[91].mxu0  ;;  %v3178_v11 = vpop.f32.mrb[91].mxu1 }
 0x9d0   :  { %v3214_v15 = vpop.f32.mrb[92].mxu0  ;;  %v3255_v16 = vpop.f32.mrb[92].mxu1 }
 0x9d1   :  { %v3215_v52 = vadd.f32 %v3214_v15, %v3132_v3  ;;  %v3256_v21 = vadd.f32 %v3255_v16, %v3173_v50  ;;  %v3216_v23 = vpop.f32.mrb[93].mxu0  ;;  %v3257_v43 = vpop.f32.mrb[93].mxu1 }
 0x9d2   :  { %v3217_v57 = vadd.f32 %v3216_v23, %v3134_v32  ;;  %v3258_v44 = vadd.f32 %v3257_v43, %v3175_v53  ;;  %v3218_v41 = vpop.f32.mrb[94].mxu0  ;;  %v3259_v6 = vpop.f32.mrb[94].mxu1 }
 0x9d3   :  { %v3262_v54 = vadd.f32 %v3215_v52, %v7037_v17  ;;  %v3219_v36 = vpop.f32.mrb[95].mxu0  ;;  %v3260_v2 = vpop.f32.mrb[95].mxu1  ;;  %v3264_v14 = vadd.f32 %v3256_v21, %v7055_v1 }
 0x9d4   :  { %v3263_v31 = vadd.f32 %v3217_v57, %v7038_v63  ;;  %v3265_v55 = vadd.f32 %v3258_v44, %v7039_v22  ;;  %v7056_v63 = vld [vmem:[#allocation26_spill] sm:$0xff] }
 0x9d5   :  { %v3266_v26 = vmul.f32 0.5, %v3262_v54  ;;  %v3268_v62 = vmul.f32 0.5, %v3264_v14 }
 0x9d6   :  { %v3267_v49 = vmul.f32 0.5, %v3263_v31 }
 0x9d7   :  { %4084 = vtanh.f32 %v3266_v26 }
 0x9d8   :  { %4086 = vtanh.f32 %v3267_v49 }
 0x9d9   :  { %4088 = vtanh.f32 %v3265_v55 }
 0x9da   :  { %4090 = vtanh.f32 %v3268_v62 }
 0x9e1   :  { %v4085_v60 = vpop.eup %4084 }
 0x9e2   :  { %v3272_v34 = vmul.f32 0.5, %v4085_v60  ;;  %v4087_v61 = vpop.eup %4086 }
 0x9e3   :  { %v3273_v17 = vmul.f32 0.5, %v4087_v61  ;;  %v4089_v0 = vpop.eup %4088 }
 0x9e4   :  { %v3275_v18 = vadd.f32 0.5, %v3272_v34  ;;  %v4091_v10 = vpop.eup %4090 }
 0x9e5   :  { %v3276_v28 = vadd.f32 0.5, %v3273_v17  ;;  %v3274_v22 = vmul.f32 0.5, %v4091_v10 }
 0x9e6   :  { %v3280_v5 = vmul.f32 %v4089_v0, %v3275_v18 }
 0x9e7   :  { %v3279_v25 = vmul.f32 %v3276_v28, %v7056_v63  ;;  %v3277_v4 = vadd.f32 0.5, %v3274_v22 }
 0x9e9   :  { %v3281_v33 = vadd.f32 %v3280_v5, %v3279_v25 }
 0x9eb   :  { %4092 = vtanh.f32 %v3281_v33 }
 0x9f5   :  { %v4093_v39 = vpop.eup %4092 }
 0x9f6   :  { %v3283_v45 = vmul.f32 %v4093_v39, %v3277_v4 }
 0x9f8   :  { %v3284_v48 = vpack.c.bf16 %v3283_v45, %v3283_v45 }
 0x9fa   :  { %3522 = vmatmul.mubr.bf16.vlgmr.msra.gmra.mrb[96].mxu0 %v3284_v48  ;;  %3563 = vmatmul.mubr.bf16.vlgmr.msra.gmra.mrb[96].mxu1 %v3284_v48 }
 0xacd   :  { %v3523_v46 = vpop.f32.mrb[96].mxu0  ;;  %v3564_v35 = vpop.f32.mrb[96].mxu1 }
 0xace   :  { %v3524_v42 = vadd.f32 %v3523_v46, %v3320_v58  ;;  %v3565_v13 = vadd.f32 %v3564_v35, %v3328_v8  ;;  %v3525_v37 = vpop.f32.mrb[97].mxu0  ;;  %v3566_v40 = vpop.f32.mrb[97].mxu1 }
 0xacf   :  { %v3526_v20 = vadd.f32 %v3525_v37, %v3324_v19  ;;  %v3527_v12 = vpop.f32.mrb[98].mxu0  ;;  %v3567_v27 = vpop.f32.mrb[98].mxu1 }
 0xad0   :  { %3570 = vst [vmem:[#allocation6] sm:$0xff] %v3524_v42  ;;  %3572 = vst [vmem:[#allocation7 + $0x8] sm:$0xff] %v3565_v13  ;;  %v3528_v7 = vpop.f32.mrb[99].mxu0  ;;  %v3568_v30 = vpop.f32.mrb[99].mxu1 }
 0xad1   :  { %3571 = vst [vmem:[#allocation7] sm:$0xff] %v3526_v20 }
 0xad2   :  { %4322 = shalt.err (!%p4319_p12)
}
 0xad3   :  { %s4323_s10 = scalar_lea.hbm %s6144_s3, 128 }
 0xad4   :  { %p4324_p13 = scmp.ne.s32.totalorder %s6144_s3, %s4323_s10  ;;  %p4327_p0 = scmp.lt.u32.totalorder %s4323_s10, %s6144_s3 }
 0xad6   :  { %p4329_p1 = pnand %p4327_p0, %p4324_p13 }
 0xad8   :  { %4332 = shalt.err (!%p4329_p1)
}
 0xad9   :  { %3582 = dma.vmem_to_hbm [thread:$0]  %s3580_s5, 128, %s6144_s3, [#allocation5]  }
 0xada   :  { %s4333_s17 = scalar_lea.vmem %s6110_s7, 256  ;;  %p4338_p3 = scmp.lt.s32.totalorder %s6110_s7, %s6110_s7 }
 0xadb   :  { %p4334_p2 = scmp.ne.s32.totalorder %s6110_s7, %s4333_s17  ;;  %p4339_p4 = scmp.lt.s32.totalorder %s4333_s17, %s4333_s17 }
 0xadd   :  { %p4340_p5 = por %p4339_p4, %p4338_p3 }
 0xadf   :  { %p4341_p6 = pnand %p4340_p5, %p4334_p2 }
 0xae1   :  { %4344 = shalt.err (!%p4341_p6)
}
 0xae2   :  { %s4345_s19 = scalar_lea.hbm %s6145_s4, 256 }
 0xae3   :  { %p4346_p7 = scmp.ne.s32.totalorder %s6145_s4, %s4345_s19  ;;  %p4349_p8 = scmp.lt.u32.totalorder %s4345_s19, %s6145_s4 }
 0xae5   :  { %p4351_p9 = pnand %p4349_p8, %p4346_p7 }
 0xae7   :  { %4354 = shalt.err (!%p4351_p9)
}
 0xae8   :  { %3592 = dma.vmem_to_hbm [thread:$0]  %s6110_s7, 256, %s6145_s4, [#allocation8]  }
 0xae9   :  { %4357 = dma.done.wait [#allocation5], 128  }
 0xaea   :  { %4358 = vsyncadd [#allocation5], 4294967168 }
 0xaeb   :  { %4359 = dma.done.wait [#allocation8], 256  }
 0xaec   :  { %4360 = vsyncadd [#allocation8], 4294967040 }
 0xaed   :  { %3599 = vsyncpa [#allocation4], 1 }
 0xaee   :  { %3600 = vsyncpa [#allocation5], 1 }
 0xaef   :  { %3601 = vsyncpa [#allocation8], 1 }

</bundles_post_ra>
